<compile_context>
chip_gen: v7x
topology: tpu7x:2x2x1
jax: 0.10.0
libtpu: 0.0.40
codegen_flags: <defaults>
</compile_context>

<pallas_src>
from functools import partial

import numpy as np
import jax
import jax.numpy as jnp
from jax.experimental import pallas as pl
from jax.experimental.pallas import tpu as pltpu

EPS = 1e-5
_VMEM = pl.BlockSpec(memory_space=pltpu.MemorySpace.VMEM)


# ----------------------------------------------------------------------------
# Fused Pallas kernel
# ----------------------------------------------------------------------------
def _encoder_kernel(p1_ref, w1_ref, b1_ref, w2b_ref, g2_ref, be2_ref,
                    w3b_ref, b3_ref, wl1_ref, bl1_ref, wl2_ref, bl2_ref,
                    o_ref, o1_ref, o2_ref, *, reshape_flatten):
    f32 = jnp.float32
    n = o1_ref.shape[0]
    m = n * 64                              # rows = (n, I, J) over the block grid

    # -------- conv1 (stride 2, pad 1) + ReLU ---------------------------------
    # One block-diagonal matmul over the 16 output parities; the result IS the
    # block-4 space-to-depth layout -> one dense 128-lane store.
    h1 = jnp.dot(p1_ref[...], w1_ref[...], preferred_element_type=f32)
    h1 = jnp.maximum(h1 + b1_ref[...], 0.0)                      # (m, 128)
    # zero only the low-side pad ring (block row/col -1) of the scratch
    o1_ref[:, 0:1, :, :] = jnp.zeros((n, 1, 9, 128), f32)
    o1_ref[:, :, 0:1, :] = jnp.zeros((n, 9, 1, 128), f32)
    o1_ref[:, 1:9, 1:9, :] = h1.reshape(n, 8, 8, 128)

    # -------- conv2 (stride 2, pad 1) + BatchNorm2d(train) + ReLU ------------
    # 4 full-lane (128-wide) box reads x zero-padded box weights, summed on the
    # MXU.  conv2's bias is dropped: it cancels under train-mode BatchNorm.
    h2 = None
    for k in range(4):
        a, b = divmod(k, 2)                  # box (dh, dw) = (a - 1, b - 1)
        box = o1_ref[:, a:a + 8, b:b + 8, :].reshape(m, 128)
        t = jnp.dot(box, w2b_ref[k], preferred_element_type=f32)
        h2 = t if h2 is None else h2 + t     # (m, 64): 4 parity groups x 16 ch
    inv = 1.0 / (4.0 * m)
    ssum = jnp.sum(h2, axis=0, keepdims=True)                    # (1, 64)
    mu = (ssum[:, 0:16] + ssum[:, 16:32] + ssum[:, 32:48] + ssum[:, 48:64]) * inv
    mu4 = jnp.concatenate([mu, mu, mu, mu], axis=-1)             # (1, 64)
    d = h2 - mu4
    vsum = jnp.sum(d * d, axis=0, keepdims=True)                 # biased var (train)
    var = (vsum[:, 0:16] + vsum[:, 16:32] + vsum[:, 32:48] + vsum[:, 48:64]) * inv
    scale = g2_ref[...] * jax.lax.rsqrt(var + EPS)               # (1, 16)
    shift = be2_ref[...] - mu * scale
    scale4 = jnp.concatenate([scale, scale, scale, scale], axis=-1)
    shift4 = jnp.concatenate([shift, shift, shift, shift], axis=-1)
    y2 = jnp.maximum(h2 * scale4 + shift4, 0.0)                  # (m, 64)
    # zero only the high-side pad ring (block row/col 8) of the scratch
    o2_ref[:, 8:9, :, :] = jnp.zeros((n, 1, 9, 64), f32)
    o2_ref[:, :, 8:9, :] = jnp.zeros((n, 9, 1, 64), f32)
    o2_ref[:, 0:8, 0:8, :] = y2.reshape(n, 8, 8, 64)             # dense 64-lane store

    # -------- conv3 (stride 2, pad 0) + ReLU ---------------------------------
    # Same full-lane box scheme on the block-2 layout.  The 8th output row/col
    # is junk (relu of the bias); it is annihilated by the exactly-zero rows of
    # the padded wl1 below, so no masking/slicing is needed.
    h3 = None
    for k in range(4):
        dh, dw = divmod(k, 2)
        box = o2_ref[:, dh:dh + 8, dw:dw + 8, :].reshape(m, 64)
        t = jnp.dot(box, w3b_ref[k], preferred_element_type=f32)
        h3 = t if h3 is None else h3 + t
    h3 = jnp.maximum(h3 + b3_ref[...], 0.0)                      # (m, 32)

    # -------- flatten + Linear(7*7*32 -> 128 via padded 2048) + ReLU + Linear -
    if reshape_flatten:
        flat = h3.reshape(n, 8 * 8 * 32)                         # (n, 2048), (h, w, c)
    else:
        # conservative fallback: 64 static slices + one lane concat
        x3v = h3.reshape(n, 8, 8, 32)
        flat = jnp.concatenate([x3v[:, ii, jj, :]
                                for ii in range(8) for jj in range(8)], axis=-1)
    z = jnp.dot(flat, wl1_ref[...], preferred_element_type=f32) + bl1_ref[...]
    z = jnp.maximum(z, 0.0)
    o_ref[...] = jnp.dot(z, wl2_ref[...], preferred_element_type=f32) + bl2_ref[...]


# ----------------------------------------------------------------------------
# Parameters
# ----------------------------------------------------------------------------
def init_params(key, in_channels, encoded_space_dim):
    keys = jax.random.split(key, 12)

    def norm(k, shape, scale=0.05):
        return scale * jax.random.normal(k, shape, dtype=jnp.float32)

    return {
        # conv weights stored as (KH, KW, Cin, Cout)
        "w1": norm(keys[0], (3, 3, in_channels, 8)),
        "b1": norm(keys[1], (8,)),
        "w2": norm(keys[2], (3, 3, 8, 16)),
        "b2": norm(keys[3], (16,)),           # used by the reference; cancels under BN
        "bn_gamma": 1.0 + norm(keys[4], (16,)),
        "bn_beta": norm(keys[5], (16,)),
        "w3": norm(keys[6], (3, 3, 16, 32)),
        "b3": norm(keys[7], (32,)),
        # linear weights stored as (in, out)  (== PyTorch weight.T)
        "wl1": norm(keys[8], (7 * 7 * 32, 128)),
        "bl1": norm(keys[9], (128,)),
        "wl2": norm(keys[10], (128, encoded_space_dim)),
        "bl2": norm(keys[11], (encoded_space_dim,)),
    }


def prepare_kernel_params(params):
    """One-time repack of the parameters into the layout the fused kernel wants."""
    f32 = jnp.float32

    # conv1: block-diagonal over the 16 (u, v) output parities.
    w1 = np.asarray(params["w1"])                               # (3, 3, cin, 8)
    kin = w1.shape[0] * w1.shape[1] * w1.shape[2]
    w1m = w1.reshape(kin, 8)
    w1_bd = np.kron(np.eye(16, dtype=np.float32), w1m)         # (16*kin, 128)
    b1_t = np.tile(np.asarray(params["b1"]), 16).reshape(1, 128)

    # conv2: per-(dh, dw) box weights on the block-4 input layout, output lanes
    # grouped by the 4 (r, s) output parities.
    # NOTE: conv2's bias (params["b2"]) is intentionally NOT used -- it cancels
    # exactly under TRAIN-mode BatchNorm.  Reinstate it for eval-mode stats.
    w2 = np.asarray(params["w2"])                               # (3, 3, 8, 16)
    w2_boxes = np.zeros((4, 128, 64), np.float32)
    for i in range(4):                                          # parity i = r*2 + s
        r, s = divmod(i, 2)
        for kh in range(3):
            for kw in range(3):
                dh, u = divmod(2 * r + kh - 1, 4)
                dw, v = divmod(2 * s + kw - 1, 4)
                k = (dh + 1) * 2 + (dw + 1)
                row0 = (u * 4 + v) * 8
                w2_boxes[k, row0:row0 + 8, i * 16:(i + 1) * 16] += w2[kh, kw]

    # conv3: per-(dh, dw) box weights on the block-2 input layout.
    w3 = np.asarray(params["w3"])                               # (3, 3, 16, 32)
    w3_boxes = np.zeros((4, 64, 32), np.float32)
    for kh in range(3):
        for kw in range(3):
            dh, u = divmod(kh, 2)
            dw, v = divmod(kw, 2)
            k = dh * 2 + dw
            row0 = (u * 2 + v) * 16
            w3_boxes[k, row0:row0 + 16, :] += w3[kh, kw]

    # wl1: permute rows from PyTorch's NCHW flatten order (c, h, w) to the
    # kernel's (h, w, c) order, zero-padded from 7x7 to 8x8 (2048 rows); the
    # zero rows annihilate the junk 8th conv3 row/col.
    out_dim = params["wl1"].shape[1]
    wl1_hwc = np.asarray(params["wl1"]).reshape(32, 7, 7, out_dim).transpose(1, 2, 0, 3)
    wl1_pad = np.zeros((8, 8, 32, out_dim), np.float32)
    wl1_pad[:7, :7] = wl1_hwc
    wl1_pad = wl1_pad.reshape(8 * 8 * 32, out_dim)

    as_f32 = lambda a: jnp.asarray(a, f32)
    return (as_f32(w1_bd), as_f32(b1_t), as_f32(w2_boxes),
            jnp.reshape(params["bn_gamma"], (1, -1)).astype(f32),
            jnp.reshape(params["bn_beta"], (1, -1)).astype(f32),
            as_f32(w3_boxes), jnp.reshape(params["b3"], (1, -1)).astype(f32),
            as_f32(wl1_pad), jnp.reshape(params["bl1"], (1, -1)).astype(f32),
            params["wl2"].astype(f32), jnp.reshape(params["bl2"], (1, -1)).astype(f32))


# ----------------------------------------------------------------------------
# Forward pass (Encoder.forward equivalent)
# ----------------------------------------------------------------------------
@partial(jax.jit, static_argnums=(2,))
def encoder_forward(kparams, x_nchw, aggressive=True):
    n, cin, h, w = x_nchw.shape
    assert h == 64 and w == 64, "Linear(7*7*32, ...) head implies 64x64 inputs"
    enc_dim = kparams[-2].shape[1]                              # wl2: (128, enc_dim)
    kin = 9 * cin

    # conv1 im2col glue (only conv1's patches are built host-side; everything
    # downstream stays in VMEM).  Rows ordered (n, I, J); the 16 (u, v) output
    # parities are laid out along K so the kernel does ONE block-diagonal
    # matmul whose result is already the space-to-depth blocked layout.
    x = jnp.transpose(x_nchw, (0, 2, 3, 1))
    xp = jnp.pad(x, ((0, 0), (1, 0), (1, 0), (0, 0)))
    taps = [xp[:, kh:kh + 63:2, kw:kw + 63:2, :]
            for kh in range(3) for kw in range(3)]
    patches = jnp.concatenate(taps, axis=-1)                    # (n, 32, 32, 9*cin)
    p1 = patches.reshape(n, 8, 4, 8, 4, kin)
    p1 = p1.transpose(0, 1, 3, 2, 4, 5).reshape(n * 64, 16 * kin)

    compiler_kwargs = dict(vmem_limit_bytes=32 * 1024 * 1024)
    if aggressive:
        # let XLA fuse the small im2col glue above into the pallas_call operand
        compiler_kwargs["allow_input_fusion"] = [True] + [False] * 11

    return pl.pallas_call(
        partial(_encoder_kernel, reshape_flatten=aggressive),
        out_shape=jax.ShapeDtypeStruct((n, enc_dim), jnp.float32),
        in_specs=[_VMEM] * 12,
        out_specs=_VMEM,
        scratch_shapes=[
            pltpu.VMEM((n, 9, 9, 128), jnp.float32),   # blocked conv1 out (+low pad)
            pltpu.VMEM((n, 9, 9, 64), jnp.float32),    # blocked conv2 out (+high pad)
        ],
        compiler_params=pltpu.CompilerParams(**compiler_kwargs),
    )(p1, *kparams)


# ----------------------------------------------------------------------------
# Pure-JAX reference (for correctness check)
# ----------------------------------------------------------------------------
def reference_forward(params, x_nchw):
    hp = jax.lax.Precision.HIGHEST
    x = jnp.transpose(x_nchw, (0, 2, 3, 1))
    dn = ("NHWC", "HWIO", "NHWC")

    x = jax.lax.conv_general_dilated(x, params["w1"], (2, 2), ((1, 1), (1, 1)),
                                     dimension_numbers=dn, precision=hp) + params["b1"]
    x = jnp.maximum(x, 0.0)

    x = jax.lax.conv_general_dilated(x, params["w2"], (2, 2), ((1, 1), (1, 1)),
                                     dimension_numbers=dn, precision=hp) + params["b2"]
    mu = jnp.mean(x, axis=(0, 1, 2), keepdims=True)
    var = jnp.mean((x - mu) ** 2, axis=(0, 1, 2), keepdims=True)
    x = (x - mu) * jax.lax.rsqrt(var + EPS) * params["bn_gamma"] + params["bn_beta"]
    x = jnp.maximum(x, 0.0)

    x = jax.lax.conv_general_dilated(x, params["w3"], (2, 2), ((0, 0), (0, 0)),
                                     dimension_numbers=dn, precision=hp) + params["b3"]
    x = jnp.maximum(x, 0.0)

    x = jnp.transpose(x, (0, 3, 1, 2)).reshape(x.shape[0], -1)
    x = jnp.maximum(jnp.dot(x, params["wl1"], precision=hp) + params["bl1"], 0.0)
    x = jnp.dot(x, params["wl2"], precision=hp) + params["bl2"]
    return x


if __name__ == "__main__":
    # The Linear(7*7*32, 128) hard-codes a 7x7 final spatial map, which implies
    # a 64x64 input: 64 -> 32 -> 16 -> 7 through the three stride-2 convs.
    N, CIN, H, W = 2, 3, 64, 64
    ENCODED_DIM = 16

    key = jax.random.PRNGKey(0)
    k_params, k_x = jax.random.split(key)
    params = init_params(k_params, CIN, ENCODED_DIM)
    x = jax.random.normal(k_x, (N, CIN, H, W), dtype=jnp.float32)

    kparams = prepare_kernel_params(params)

    # Unit check (correctness-review item): the padded wl1 rows corresponding to
    # the invalid 8th conv3 row/col must be exactly zero so the junk there is
    # annihilated by the flatten matmul.
    wl1_chk = np.asarray(kparams[7]).reshape(8, 8, 32, -1)
    assert np.all(wl1_chk[7] == 0.0) and np.all(wl1_chk[:, 7] == 0.0)

    try:
        out = jax.block_until_ready(encoder_forward(kparams, x, True))
    except Exception:
        # TODO(synk): conservative fallback (64-slice lane concat for the
        # flatten, no operand fusion) in case Mosaic rejects the sublane->lane
        # merging reshape or operand fusion on this toolchain.
        out = jax.block_until_ready(encoder_forward(kparams, x, False))
    assert out.shape == (N, ENCODED_DIM), out.shape

    ref = jax.block_until_ready(reference_forward(params, x))
    # All-f32 path: 10x tighter than the previous 1e-2 check, with margin left
    # for MXU f32 multi-pass rounding / different reduction orders.
    assert jnp.allclose(out, ref, rtol=1e-3, atol=1e-3), (
        float(jnp.max(jnp.abs(out - ref))))

    print("KERNEL_OK")
</pallas_src>

<mosaic_0001>
module attributes {stable_mosaic.version = 11 : i64} {
  func.func @_encoder_kernel(%arg0: memref<128x432xf32, #tpu.memory_space<vmem>>, %arg1: memref<432x128xf32, #tpu.memory_space<vmem>>, %arg2: memref<1x128xf32, #tpu.memory_space<vmem>>, %arg3: memref<4x128x64xf32, #tpu.memory_space<vmem>>, %arg4: memref<1x16xf32, #tpu.memory_space<vmem>>, %arg5: memref<1x16xf32, #tpu.memory_space<vmem>>, %arg6: memref<4x64x32xf32, #tpu.memory_space<vmem>>, %arg7: memref<1x32xf32, #tpu.memory_space<vmem>>, %arg8: memref<2048x128xf32, #tpu.memory_space<vmem>>, %arg9: memref<1x128xf32, #tpu.memory_space<vmem>>, %arg10: memref<128x16xf32, #tpu.memory_space<vmem>>, %arg11: memref<1x16xf32, #tpu.memory_space<vmem>>, %arg12: memref<2x16xf32, #tpu.memory_space<vmem>>, %arg13: memref<2x9x9x128xf32, #tpu.memory_space<vmem>>, %arg14: memref<2x9x9x64xf32, #tpu.memory_space<vmem>>) attributes {dimension_semantics = [], scalar_prefetch = 0 : i64, scratch_operands = 2 : i64, tpu.core_type = #tpu.core_type<tc>} {
    %c0 = arith.constant 0 : index
    %c0_0 = arith.constant 0 : index
    %0 = vector.load %arg0[%c0, %c0_0] : memref<128x432xf32, #tpu.memory_space<vmem>>, vector<128x432xf32>
    %c0_1 = arith.constant 0 : index
    %c0_2 = arith.constant 0 : index
    %1 = vector.load %arg1[%c0_1, %c0_2] : memref<432x128xf32, #tpu.memory_space<vmem>>, vector<432x128xf32>
    %cst = arith.constant dense<0.000000e+00> : vector<128x128xf32>
    %2 = tpu.matmul %0, %1, %cst {dimension_numbers = #tpu.dot_dimension_numbers<[1], [0], [0], [1], [0, 0, 1, 1], [], []>} : vector<128x432xf32>, vector<432x128xf32>, vector<128x128xf32> -> vector<128x128xf32>
    %c0_3 = arith.constant 0 : index
    %c0_4 = arith.constant 0 : index
    %3 = vector.load %arg2[%c0_3, %c0_4] : memref<1x128xf32, #tpu.memory_space<vmem>>, vector<1x128xf32>
    %4 = vector.broadcast %3 : vector<1x128xf32> to vector<128x128xf32>
    %5 = arith.addf %2, %4 : vector<128x128xf32>
    %cst_5 = arith.constant 0.000000e+00 : f32
    %6 = vector.broadcast %cst_5 : f32 to vector<128x128xf32>
    %7 = arith.maximumf %5, %6 : vector<128x128xf32>
    %cst_6 = arith.constant 0.000000e+00 : f32
    %8 = vector.broadcast %cst_6 : f32 to vector<2x1x9x128xf32>
    %c0_7 = arith.constant 0 : index
    %c0_8 = arith.constant 0 : index
    %c0_9 = arith.constant 0 : index
    %c0_10 = arith.constant 0 : index
    %9 = vector.load %arg13[%c0_7, %c0_8, %c0_9, %c0_10] : memref<2x9x9x128xf32, #tpu.memory_space<vmem>>, vector<2x1x9x128xf32>
    tpu.vector_store %arg13[%c0_7, %c0_8, %c0_9, %c0_10], %8 {strides = array<i32>} : memref<2x9x9x128xf32, #tpu.memory_space<vmem>>, vector<2x1x9x128xf32>,
    %cst_11 = arith.constant 0.000000e+00 : f32
    %10 = vector.broadcast %cst_11 : f32 to vector<2x9x1x128xf32>
    %c0_12 = arith.constant 0 : index
    %c0_13 = arith.constant 0 : index
    %c0_14 = arith.constant 0 : index
    %c0_15 = arith.constant 0 : index
    %11 = vector.load %arg13[%c0_12, %c0_13, %c0_14, %c0_15] : memref<2x9x9x128xf32, #tpu.memory_space<vmem>>, vector<2x9x1x128xf32>
    tpu.vector_store %arg13[%c0_12, %c0_13, %c0_14, %c0_15], %10 {strides = array<i32>} : memref<2x9x9x128xf32, #tpu.memory_space<vmem>>, vector<2x9x1x128xf32>,
    %12 = vector.shape_cast %7 : vector<128x128xf32> to vector<2x8x8x128xf32>
    %c0_16 = arith.constant 0 : index
    %c1 = arith.constant 1 : index
    %c1_17 = arith.constant 1 : index
    %c0_18 = arith.constant 0 : index
    %13 = vector.load %arg13[%c0_16, %c1, %c1_17, %c0_18] : memref<2x9x9x128xf32, #tpu.memory_space<vmem>>, vector<2x8x8x128xf32>
    tpu.vector_store %arg13[%c0_16, %c1, %c1_17, %c0_18], %12 {strides = array<i32>} : memref<2x9x9x128xf32, #tpu.memory_space<vmem>>, vector<2x8x8x128xf32>,
    %c0_19 = arith.constant 0 : index
    %c0_20 = arith.constant 0 : index
    %c0_21 = arith.constant 0 : index
    %c0_22 = arith.constant 0 : index
    %14 = vector.load %arg13[%c0_19, %c0_20, %c0_21, %c0_22] : memref<2x9x9x128xf32, #tpu.memory_space<vmem>>, vector<2x8x8x128xf32>
    %15 = vector.shape_cast %14 : vector<2x8x8x128xf32> to vector<128x128xf32>
    %c0_23 = arith.constant 0 : index
    %c0_24 = arith.constant 0 : index
    %c0_25 = arith.constant 0 : index
    %16 = vector.load %arg3[%c0_23, %c0_24, %c0_25] : memref<4x128x64xf32, #tpu.memory_space<vmem>>, vector<1x128x64xf32>
    %17 = vector.shape_cast %16 : vector<1x128x64xf32> to vector<128x64xf32>
    %cst_26 = arith.constant dense<0.000000e+00> : vector<128x64xf32>
    %18 = tpu.matmul %15, %17, %cst_26 {dimension_numbers = #tpu.dot_dimension_numbers<[1], [0], [0], [1], [0, 0, 1, 1], [], []>} : vector<128x128xf32>, vector<128x64xf32>, vector<128x64xf32> -> vector<128x64xf32>
    %c0_27 = arith.constant 0 : index
    %c0_28 = arith.constant 0 : index
    %c1_29 = arith.constant 1 : index
    %c0_30 = arith.constant 0 : index
    %19 = vector.load %arg13[%c0_27, %c0_28, %c1_29, %c0_30] : memref<2x9x9x128xf32, #tpu.memory_space<vmem>>, vector<2x8x8x128xf32>
    %20 = vector.shape_cast %19 : vector<2x8x8x128xf32> to vector<128x128xf32>
    %c1_31 = arith.constant 1 : index
    %c0_32 = arith.constant 0 : index
    %c0_33 = arith.constant 0 : index
    %21 = vector.load %arg3[%c1_31, %c0_32, %c0_33] : memref<4x128x64xf32, #tpu.memory_space<vmem>>, vector<1x128x64xf32>
    %22 = vector.shape_cast %21 : vector<1x128x64xf32> to vector<128x64xf32>
    %cst_34 = arith.constant dense<0.000000e+00> : vector<128x64xf32>
    %23 = tpu.matmul %20, %22, %cst_34 {dimension_numbers = #tpu.dot_dimension_numbers<[1], [0], [0], [1], [0, 0, 1, 1], [], []>} : vector<128x128xf32>, vector<128x64xf32>, vector<128x64xf32> -> vector<128x64xf32>
    %24 = arith.addf %18, %23 : vector<128x64xf32>
    %c0_35 = arith.constant 0 : index
    %c1_36 = arith.constant 1 : index
    %c0_37 = arith.constant 0 : index
    %c0_38 = arith.constant 0 : index
    %25 = vector.load %arg13[%c0_35, %c1_36, %c0_37, %c0_38] : memref<2x9x9x128xf32, #tpu.memory_space<vmem>>, vector<2x8x8x128xf32>
    %26 = vector.shape_cast %25 : vector<2x8x8x128xf32> to vector<128x128xf32>
    %c2 = arith.constant 2 : index
    %c0_39 = arith.constant 0 : index
    %c0_40 = arith.constant 0 : index
    %27 = vector.load %arg3[%c2, %c0_39, %c0_40] : memref<4x128x64xf32, #tpu.memory_space<vmem>>, vector<1x128x64xf32>
    %28 = vector.shape_cast %27 : vector<1x128x64xf32> to vector<128x64xf32>
    %cst_41 = arith.constant dense<0.000000e+00> : vector<128x64xf32>
    %29 = tpu.matmul %26, %28, %cst_41 {dimension_numbers = #tpu.dot_dimension_numbers<[1], [0], [0], [1], [0, 0, 1, 1], [], []>} : vector<128x128xf32>, vector<128x64xf32>, vector<128x64xf32> -> vector<128x64xf32>
    %30 = arith.addf %24, %29 : vector<128x64xf32>
    %c0_42 = arith.constant 0 : index
    %c1_43 = arith.constant 1 : index
    %c1_44 = arith.constant 1 : index
    %c0_45 = arith.constant 0 : index
    %31 = vector.load %arg13[%c0_42, %c1_43, %c1_44, %c0_45] : memref<2x9x9x128xf32, #tpu.memory_space<vmem>>, vector<2x8x8x128xf32>
    %32 = vector.shape_cast %31 : vector<2x8x8x128xf32> to vector<128x128xf32>
    %c3 = arith.constant 3 : index
    %c0_46 = arith.constant 0 : index
    %c0_47 = arith.constant 0 : index
    %33 = vector.load %arg3[%c3, %c0_46, %c0_47] : memref<4x128x64xf32, #tpu.memory_space<vmem>>, vector<1x128x64xf32>
    %34 = vector.shape_cast %33 : vector<1x128x64xf32> to vector<128x64xf32>
    %cst_48 = arith.constant dense<0.000000e+00> : vector<128x64xf32>
    %35 = tpu.matmul %32, %34, %cst_48 {dimension_numbers = #tpu.dot_dimension_numbers<[1], [0], [0], [1], [0, 0, 1, 1], [], []>} : vector<128x128xf32>, vector<128x64xf32>, vector<128x64xf32> -> vector<128x64xf32>
    %36 = arith.addf %30, %35 : vector<128x64xf32>
    %cst_49 = arith.constant dense<0.000000e+00> : vector<64xf32>
    %37 = vector.multi_reduction <add>, %36, %cst_49 [0] : vector<128x64xf32> to vector<64xf32>
    %38 = vector.shape_cast %37 : vector<64xf32> to vector<1x64xf32>
    %39 = vector.extract_strided_slice %38 {offsets = [0, 0], sizes = [1, 16], strides = [1, 1]} : vector<1x64xf32> to vector<1x16xf32>
    %40 = vector.extract_strided_slice %38 {offsets = [0, 16], sizes = [1, 16], strides = [1, 1]} : vector<1x64xf32> to vector<1x16xf32>
    %41 = arith.addf %39, %40 : vector<1x16xf32>
    %42 = vector.extract_strided_slice %38 {offsets = [0, 32], sizes = [1, 16], strides = [1, 1]} : vector<1x64xf32> to vector<1x16xf32>
    %43 = arith.addf %41, %42 : vector<1x16xf32>
    %44 = vector.extract_strided_slice %38 {offsets = [0, 48], sizes = [1, 16], strides = [1, 1]} : vector<1x64xf32> to vector<1x16xf32>
    %45 = arith.addf %43, %44 : vector<1x16xf32>
    %cst_50 = arith.constant 0.001953125 : f32
    %46 = vector.broadcast %cst_50 : f32 to vector<1x16xf32>
    %47 = arith.mulf %45, %46 : vector<1x16xf32>
    %48 = tpu.concatenate %47, %47, %47, %47 in 1 : vector<1x16xf32>, vector<1x16xf32>, vector<1x16xf32>, vector<1x16xf32> -> vector<1x64xf32>
    %49 = vector.broadcast %48 : vector<1x64xf32> to vector<128x64xf32>
    %50 = arith.subf %36, %49 : vector<128x64xf32>
    %51 = arith.mulf %50, %50 : vector<128x64xf32>
    %cst_51 = arith.constant dense<0.000000e+00> : vector<64xf32>
    %52 = vector.multi_reduction <add>, %51, %cst_51 [0] : vector<128x64xf32> to vector<64xf32>
    %53 = vector.shape_cast %52 : vector<64xf32> to vector<1x64xf32>
    %54 = vector.extract_strided_slice %53 {offsets = [0, 0], sizes = [1, 16], strides = [1, 1]} : vector<1x64xf32> to vector<1x16xf32>
    %55 = vector.extract_strided_slice %53 {offsets = [0, 16], sizes = [1, 16], strides = [1, 1]} : vector<1x64xf32> to vector<1x16xf32>
    %56 = arith.addf %54, %55 : vector<1x16xf32>
    %57 = vector.extract_strided_slice %53 {offsets = [0, 32], sizes = [1, 16], strides = [1, 1]} : vector<1x64xf32> to vector<1x16xf32>
    %58 = arith.addf %56, %57 : vector<1x16xf32>
    %59 = vector.extract_strided_slice %53 {offsets = [0, 48], sizes = [1, 16], strides = [1, 1]} : vector<1x64xf32> to vector<1x16xf32>
    %60 = arith.addf %58, %59 : vector<1x16xf32>
    %cst_52 = arith.constant 0.001953125 : f32
    %61 = vector.broadcast %cst_52 : f32 to vector<1x16xf32>
    %62 = arith.mulf %60, %61 : vector<1x16xf32>
    %c0_53 = arith.constant 0 : index
    %c0_54 = arith.constant 0 : index
    %63 = vector.load %arg4[%c0_53, %c0_54] : memref<1x16xf32, #tpu.memory_space<vmem>>, vector<1x16xf32>
    %cst_55 = arith.constant 9.99999974E-6 : f32
    %64 = vector.broadcast %cst_55 : f32 to vector<1x16xf32>
    %65 = arith.addf %62, %64 : vector<1x16xf32>
    %66 = math.rsqrt %65 : vector<1x16xf32>
    %67 = arith.mulf %63, %66 : vector<1x16xf32>
    %c0_56 = arith.constant 0 : index
    %c0_57 = arith.constant 0 : index
    %68 = vector.load %arg5[%c0_56, %c0_57] : memref<1x16xf32, #tpu.memory_space<vmem>>, vector<1x16xf32>
    %69 = arith.mulf %47, %67 : vector<1x16xf32>
    %70 = arith.subf %68, %69 : vector<1x16xf32>
    %71 = tpu.concatenate %67, %67, %67, %67 in 1 : vector<1x16xf32>, vector<1x16xf32>, vector<1x16xf32>, vector<1x16xf32> -> vector<1x64xf32>
    %72 = tpu.concatenate %70, %70, %70, %70 in 1 : vector<1x16xf32>, vector<1x16xf32>, vector<1x16xf32>, vector<1x16xf32> -> vector<1x64xf32>
    %73 = vector.broadcast %71 : vector<1x64xf32> to vector<128x64xf32>
    %74 = arith.mulf %36, %73 : vector<128x64xf32>
    %75 = vector.broadcast %72 : vector<1x64xf32> to vector<128x64xf32>
    %76 = arith.addf %74, %75 : vector<128x64xf32>
    %cst_58 = arith.constant 0.000000e+00 : f32
    %77 = vector.broadcast %cst_58 : f32 to vector<128x64xf32>
    %78 = arith.maximumf %76, %77 : vector<128x64xf32>
    %cst_59 = arith.constant 0.000000e+00 : f32
    %79 = vector.broadcast %cst_59 : f32 to vector<2x1x9x64xf32>
    %c0_60 = arith.constant 0 : index
    %c8 = arith.constant 8 : index
    %c0_61 = arith.constant 0 : index
    %c0_62 = arith.constant 0 : index
    %80 = vector.load %arg14[%c0_60, %c8, %c0_61, %c0_62] : memref<2x9x9x64xf32, #tpu.memory_space<vmem>>, vector<2x1x9x64xf32>
    tpu.vector_store %arg14[%c0_60, %c8, %c0_61, %c0_62], %79 {strides = array<i32>} : memref<2x9x9x64xf32, #tpu.memory_space<vmem>>, vector<2x1x9x64xf32>,
    %cst_63 = arith.constant 0.000000e+00 : f32
    %81 = vector.broadcast %cst_63 : f32 to vector<2x9x1x64xf32>
    %c0_64 = arith.constant 0 : index
    %c0_65 = arith.constant 0 : index
    %c8_66 = arith.constant 8 : index
    %c0_67 = arith.constant 0 : index
    %82 = vector.load %arg14[%c0_64, %c0_65, %c8_66, %c0_67] : memref<2x9x9x64xf32, #tpu.memory_space<vmem>>, vector<2x9x1x64xf32>
    tpu.vector_store %arg14[%c0_64, %c0_65, %c8_66, %c0_67], %81 {strides = array<i32>} : memref<2x9x9x64xf32, #tpu.memory_space<vmem>>, vector<2x9x1x64xf32>,
    %83 = vector.shape_cast %78 : vector<128x64xf32> to vector<2x8x8x64xf32>
    %c0_68 = arith.constant 0 : index
    %c0_69 = arith.constant 0 : index
    %c0_70 = arith.constant 0 : index
    %c0_71 = arith.constant 0 : index
    %84 = vector.load %arg14[%c0_68, %c0_69, %c0_70, %c0_71] : memref<2x9x9x64xf32, #tpu.memory_space<vmem>>, vector<2x8x8x64xf32>
    tpu.vector_store %arg14[%c0_68, %c0_69, %c0_70, %c0_71], %83 {strides = array<i32>} : memref<2x9x9x64xf32, #tpu.memory_space<vmem>>, vector<2x8x8x64xf32>,
    %c0_72 = arith.constant 0 : index
    %c0_73 = arith.constant 0 : index
    %c0_74 = arith.constant 0 : index
    %c0_75 = arith.constant 0 : index
    %85 = vector.load %arg14[%c0_72, %c0_73, %c0_74, %c0_75] : memref<2x9x9x64xf32, #tpu.memory_space<vmem>>, vector<2x8x8x64xf32>
    %86 = vector.shape_cast %85 : vector<2x8x8x64xf32> to vector<128x64xf32>
    %c0_76 = arith.constant 0 : index
    %c0_77 = arith.constant 0 : index
    %c0_78 = arith.constant 0 : index
    %87 = vector.load %arg6[%c0_76, %c0_77, %c0_78] : memref<4x64x32xf32, #tpu.memory_space<vmem>>, vector<1x64x32xf32>
    %88 = vector.shape_cast %87 : vector<1x64x32xf32> to vector<64x32xf32>
    %cst_79 = arith.constant dense<0.000000e+00> : vector<128x32xf32>
    %89 = tpu.matmul %86, %88, %cst_79 {dimension_numbers = #tpu.dot_dimension_numbers<[1], [0], [0], [1], [0, 0, 1, 1], [], []>} : vector<128x64xf32>, vector<64x32xf32>, vector<128x32xf32> -> vector<128x32xf32>
    %c0_80 = arith.constant 0 : index
    %c0_81 = arith.constant 0 : index
    %c1_82 = arith.constant 1 : index
    %c0_83 = arith.constant 0 : index
    %90 = vector.load %arg14[%c0_80, %c0_81, %c1_82, %c0_83] : memref<2x9x9x64xf32, #tpu.memory_space<vmem>>, vector<2x8x8x64xf32>
    %91 = vector.shape_cast %90 : vector<2x8x8x64xf32> to vector<128x64xf32>
    %c1_84 = arith.constant 1 : index
    %c0_85 = arith.constant 0 : index
    %c0_86 = arith.constant 0 : index
    %92 = vector.load %arg6[%c1_84, %c0_85, %c0_86] : memref<4x64x32xf32, #tpu.memory_space<vmem>>, vector<1x64x32xf32>
    %93 = vector.shape_cast %92 : vector<1x64x32xf32> to vector<64x32xf32>
    %cst_87 = arith.constant dense<0.000000e+00> : vector<128x32xf32>
    %94 = tpu.matmul %91, %93, %cst_87 {dimension_numbers = #tpu.dot_dimension_numbers<[1], [0], [0], [1], [0, 0, 1, 1], [], []>} : vector<128x64xf32>, vector<64x32xf32>, vector<128x32xf32> -> vector<128x32xf32>
    %95 = arith.addf %89, %94 : vector<128x32xf32>
    %c0_88 = arith.constant 0 : index
    %c1_89 = arith.constant 1 : index
    %c0_90 = arith.constant 0 : index
    %c0_91 = arith.constant 0 : index
    %96 = vector.load %arg14[%c0_88, %c1_89, %c0_90, %c0_91] : memref<2x9x9x64xf32, #tpu.memory_space<vmem>>, vector<2x8x8x64xf32>
    %97 = vector.shape_cast %96 : vector<2x8x8x64xf32> to vector<128x64xf32>
    %c2_92 = arith.constant 2 : index
    %c0_93 = arith.constant 0 : index
    %c0_94 = arith.constant 0 : index
    %98 = vector.load %arg6[%c2_92, %c0_93, %c0_94] : memref<4x64x32xf32, #tpu.memory_space<vmem>>, vector<1x64x32xf32>
    %99 = vector.shape_cast %98 : vector<1x64x32xf32> to vector<64x32xf32>
    %cst_95 = arith.constant dense<0.000000e+00> : vector<128x32xf32>
    %100 = tpu.matmul %97, %99, %cst_95 {dimension_numbers = #tpu.dot_dimension_numbers<[1], [0], [0], [1], [0, 0, 1, 1], [], []>} : vector<128x64xf32>, vector<64x32xf32>, vector<128x32xf32> -> vector<128x32xf32>
    %101 = arith.addf %95, %100 : vector<128x32xf32>
    %c0_96 = arith.constant 0 : index
    %c1_97 = arith.constant 1 : index
    %c1_98 = arith.constant 1 : index
    %c0_99 = arith.constant 0 : index
    %102 = vector.load %arg14[%c0_96, %c1_97, %c1_98, %c0_99] : memref<2x9x9x64xf32, #tpu.memory_space<vmem>>, vector<2x8x8x64xf32>
    %103 = vector.shape_cast %102 : vector<2x8x8x64xf32> to vector<128x64xf32>
    %c3_100 = arith.constant 3 : index
    %c0_101 = arith.constant 0 : index
    %c0_102 = arith.constant 0 : index
    %104 = vector.load %arg6[%c3_100, %c0_101, %c0_102] : memref<4x64x32xf32, #tpu.memory_space<vmem>>, vector<1x64x32xf32>
    %105 = vector.shape_cast %104 : vector<1x64x32xf32> to vector<64x32xf32>
    %cst_103 = arith.constant dense<0.000000e+00> : vector<128x32xf32>
    %106 = tpu.matmul %103, %105, %cst_103 {dimension_numbers = #tpu.dot_dimension_numbers<[1], [0], [0], [1], [0, 0, 1, 1], [], []>} : vector<128x64xf32>, vector<64x32xf32>, vector<128x32xf32> -> vector<128x32xf32>
    %107 = arith.addf %101, %106 : vector<128x32xf32>
    %c0_104 = arith.constant 0 : index
    %c0_105 = arith.constant 0 : index
    %108 = vector.load %arg7[%c0_104, %c0_105] : memref<1x32xf32, #tpu.memory_space<vmem>>, vector<1x32xf32>
    %109 = vector.broadcast %108 : vector<1x32xf32> to vector<128x32xf32>
    %110 = arith.addf %107, %109 : vector<128x32xf32>
    %cst_106 = arith.constant 0.000000e+00 : f32
    %111 = vector.broadcast %cst_106 : f32 to vector<128x32xf32>
    %112 = arith.maximumf %110, %111 : vector<128x32xf32>
    %113 = vector.shape_cast %112 : vector<128x32xf32> to vector<2x2048xf32>
    %c0_107 = arith.constant 0 : index
    %c0_108 = arith.constant 0 : index
    %114 = vector.load %arg8[%c0_107, %c0_108] : memref<2048x128xf32, #tpu.memory_space<vmem>>, vector<2048x128xf32>
    %cst_109 = arith.constant dense<0.000000e+00> : vector<2x128xf32>
    %115 = tpu.matmul %113, %114, %cst_109 {dimension_numbers = #tpu.dot_dimension_numbers<[1], [0], [0], [1], [0, 0, 1, 1], [], []>} : vector<2x2048xf32>, vector<2048x128xf32>, vector<2x128xf32> -> vector<2x128xf32>
    %c0_110 = arith.constant 0 : index
    %c0_111 = arith.constant 0 : index
    %116 = vector.load %arg9[%c0_110, %c0_111] : memref<1x128xf32, #tpu.memory_space<vmem>>, vector<1x128xf32>
    %117 = vector.broadcast %116 : vector<1x128xf32> to vector<2x128xf32>
    %118 = arith.addf %115, %117 : vector<2x128xf32>
    %cst_112 = arith.constant 0.000000e+00 : f32
    %119 = vector.broadcast %cst_112 : f32 to vector<2x128xf32>
    %120 = arith.maximumf %118, %119 : vector<2x128xf32>
    %c0_113 = arith.constant 0 : index
    %c0_114 = arith.constant 0 : index
    %121 = vector.load %arg10[%c0_113, %c0_114] : memref<128x16xf32, #tpu.memory_space<vmem>>, vector<128x16xf32>
    %cst_115 = arith.constant dense<0.000000e+00> : vector<2x16xf32>
    %122 = tpu.matmul %120, %121, %cst_115 {dimension_numbers = #tpu.dot_dimension_numbers<[1], [0], [0], [1], [0, 0, 1, 1], [], []>} : vector<2x128xf32>, vector<128x16xf32>, vector<2x16xf32> -> vector<2x16xf32>
    %c0_116 = arith.constant 0 : index
    %c0_117 = arith.constant 0 : index
    %123 = vector.load %arg11[%c0_116, %c0_117] : memref<1x16xf32, #tpu.memory_space<vmem>>, vector<1x16xf32>
    %124 = vector.broadcast %123 : vector<1x16xf32> to vector<2x16xf32>
    %125 = arith.addf %122, %124 : vector<2x16xf32>
    %c0_118 = arith.constant 0 : index
    %c0_119 = arith.constant 0 : index
    %126 = vector.load %arg12[%c0_118, %c0_119] : memref<2x16xf32, #tpu.memory_space<vmem>>, vector<2x16xf32>
    tpu.vector_store %arg12[%c0_118, %c0_119], %125 {strides = array<i32>} : memref<2x16xf32, #tpu.memory_space<vmem>>, vector<2x16xf32>,
    return
  }
}

module attributes {stable_mosaic.version = 11 : i64} {
  func.func @_encoder_kernel(%arg0: memref<128x432xf32, #tpu.memory_space<vmem>>, %arg1: memref<432x128xf32, #tpu.memory_space<vmem>>, %arg2: memref<1x128xf32, #tpu.memory_space<vmem>>, %arg3: memref<4x128x64xf32, #tpu.memory_space<vmem>>, %arg4: memref<1x16xf32, #tpu.memory_space<vmem>>, %arg5: memref<1x16xf32, #tpu.memory_space<vmem>>, %arg6: memref<4x64x32xf32, #tpu.memory_space<vmem>>, %arg7: memref<1x32xf32, #tpu.memory_space<vmem>>, %arg8: memref<2048x128xf32, #tpu.memory_space<vmem>>, %arg9: memref<1x128xf32, #tpu.memory_space<vmem>>, %arg10: memref<128x16xf32, #tpu.memory_space<vmem>>, %arg11: memref<1x16xf32, #tpu.memory_space<vmem>>, %arg12: memref<2x16xf32, #tpu.memory_space<vmem>>, %arg13: memref<2x9x9x128xf32, #tpu.memory_space<vmem>>, %arg14: memref<2x9x9x64xf32, #tpu.memory_space<vmem>>) attributes {dimension_semantics = [], scalar_prefetch = 0 : i64, scratch_operands = 2 : i64, tpu.core_type = #tpu.core_type<tc>} {
    %c0 = arith.constant 0 : index
    %c0_0 = arith.constant 0 : index
    %0 = vector.load %arg0[%c0, %c0_0] : memref<128x432xf32, #tpu.memory_space<vmem>>, vector<128x432xf32>
    %c0_1 = arith.constant 0 : index
    %c0_2 = arith.constant 0 : index
    %1 = vector.load %arg1[%c0_1, %c0_2] : memref<432x128xf32, #tpu.memory_space<vmem>>, vector<432x128xf32>
    %cst = arith.constant dense<0.000000e+00> : vector<128x128xf32>
    %2 = tpu.matmul %0, %1, %cst {dimension_numbers = #tpu.dot_dimension_numbers<[1], [0], [0], [1], [0, 0, 1, 1], [], []>} : vector<128x432xf32>, vector<432x128xf32>, vector<128x128xf32> -> vector<128x128xf32>
    %c0_3 = arith.constant 0 : index
    %c0_4 = arith.constant 0 : index
    %3 = vector.load %arg2[%c0_3, %c0_4] : memref<1x128xf32, #tpu.memory_space<vmem>>, vector<1x128xf32>
    %4 = vector.broadcast %3 : vector<1x128xf32> to vector<128x128xf32>
    %5 = arith.addf %2, %4 : vector<128x128xf32>
    %cst_5 = arith.constant 0.000000e+00 : f32
    %6 = vector.broadcast %cst_5 : f32 to vector<128x128xf32>
    %7 = arith.maximumf %5, %6 : vector<128x128xf32>
    %cst_6 = arith.constant 0.000000e+00 : f32
    %8 = vector.broadcast %cst_6 : f32 to vector<2x1x9x128xf32>
    %c0_7 = arith.constant 0 : index
    %c0_8 = arith.constant 0 : index
    %c0_9 = arith.constant 0 : index
    %c0_10 = arith.constant 0 : index
    %9 = vector.load %arg13[%c0_7, %c0_8, %c0_9, %c0_10] : memref<2x9x9x128xf32, #tpu.memory_space<vmem>>, vector<2x1x9x128xf32>
    tpu.vector_store %arg13[%c0_7, %c0_8, %c0_9, %c0_10], %8 {strides = array<i32>} : memref<2x9x9x128xf32, #tpu.memory_space<vmem>>, vector<2x1x9x128xf32>,
    %cst_11 = arith.constant 0.000000e+00 : f32
    %10 = vector.broadcast %cst_11 : f32 to vector<2x9x1x128xf32>
    %c0_12 = arith.constant 0 : index
    %c0_13 = arith.constant 0 : index
    %c0_14 = arith.constant 0 : index
    %c0_15 = arith.constant 0 : index
    %11 = vector.load %arg13[%c0_12, %c0_13, %c0_14, %c0_15] : memref<2x9x9x128xf32, #tpu.memory_space<vmem>>, vector<2x9x1x128xf32>
    tpu.vector_store %arg13[%c0_12, %c0_13, %c0_14, %c0_15], %10 {strides = array<i32>} : memref<2x9x9x128xf32, #tpu.memory_space<vmem>>, vector<2x9x1x128xf32>,
    %12 = vector.shape_cast %7 : vector<128x128xf32> to vector<2x8x8x128xf32>
    %c0_16 = arith.constant 0 : index
    %c1 = arith.constant 1 : index
    %c1_17 = arith.constant 1 : index
    %c0_18 = arith.constant 0 : index
    %13 = vector.load %arg13[%c0_16, %c1, %c1_17, %c0_18] : memref<2x9x9x128xf32, #tpu.memory_space<vmem>>, vector<2x8x8x128xf32>
    tpu.vector_store %arg13[%c0_16, %c1, %c1_17, %c0_18], %12 {strides = array<i32>} : memref<2x9x9x128xf32, #tpu.memory_space<vmem>>, vector<2x8x8x128xf32>,
    %c0_19 = arith.constant 0 : index
    %c0_20 = arith.constant 0 : index
    %c0_21 = arith.constant 0 : index
    %c0_22 = arith.constant 0 : index
    %14 = vector.load %arg13[%c0_19, %c0_20, %c0_21, %c0_22] : memref<2x9x9x128xf32, #tpu.memory_space<vmem>>, vector<2x8x8x128xf32>
    %15 = vector.shape_cast %14 : vector<2x8x8x128xf32> to vector<128x128xf32>
    %c0_23 = arith.constant 0 : index
    %c0_24 = arith.constant 0 : index
    %c0_25 = arith.constant 0 : index
    %16 = vector.load %arg3[%c0_23, %c0_24, %c0_25] : memref<4x128x64xf32, #tpu.memory_space<vmem>>, vector<1x128x64xf32>
    %17 = vector.shape_cast %16 : vector<1x128x64xf32> to vector<128x64xf32>
    %cst_26 = arith.constant dense<0.000000e+00> : vector<128x64xf32>
    %18 = tpu.matmul %15, %17, %cst_26 {dimension_numbers = #tpu.dot_dimension_numbers<[1], [0], [0], [1], [0, 0, 1, 1], [], []>} : vector<128x128xf32>, vector<128x64xf32>, vector<128x64xf32> -> vector<128x64xf32>
    %c0_27 = arith.constant 0 : index
    %c0_28 = arith.constant 0 : index
    %c1_29 = arith.constant 1 : index
    %c0_30 = arith.constant 0 : index
    %19 = vector.load %arg13[%c0_27, %c0_28, %c1_29, %c0_30] : memref<2x9x9x128xf32, #tpu.memory_space<vmem>>, vector<2x8x8x128xf32>
    %20 = vector.shape_cast %19 : vector<2x8x8x128xf32> to vector<128x128xf32>
    %c1_31 = arith.constant 1 : index
    %c0_32 = arith.constant 0 : index
    %c0_33 = arith.constant 0 : index
    %21 = vector.load %arg3[%c1_31, %c0_32, %c0_33] : memref<4x128x64xf32, #tpu.memory_space<vmem>>, vector<1x128x64xf32>
    %22 = vector.shape_cast %21 : vector<1x128x64xf32> to vector<128x64xf32>
    %cst_34 = arith.constant dense<0.000000e+00> : vector<128x64xf32>
    %23 = tpu.matmul %20, %22, %cst_34 {dimension_numbers = #tpu.dot_dimension_numbers<[1], [0], [0], [1], [0, 0, 1, 1], [], []>} : vector<128x128xf32>, vector<128x64xf32>, vector<128x64xf32> -> vector<128x64xf32>
    %24 = arith.addf %18, %23 : vector<128x64xf32>
    %c0_35 = arith.constant 0 : index
    %c1_36 = arith.constant 1 : index
    %c0_37 = arith.constant 0 : index
    %c0_38 = arith.constant 0 : index
    %25 = vector.load %arg13[%c0_35, %c1_36, %c0_37, %c0_38] : memref<2x9x9x128xf32, #tpu.memory_space<vmem>>, vector<2x8x8x128xf32>
    %26 = vector.shape_cast %25 : vector<2x8x8x128xf32> to vector<128x128xf32>
    %c2 = arith.constant 2 : index
    %c0_39 = arith.constant 0 : index
    %c0_40 = arith.constant 0 : index
    %27 = vector.load %arg3[%c2, %c0_39, %c0_40] : memref<4x128x64xf32, #tpu.memory_space<vmem>>, vector<1x128x64xf32>
    %28 = vector.shape_cast %27 : vector<1x128x64xf32> to vector<128x64xf32>
    %cst_41 = arith.constant dense<0.000000e+00> : vector<128x64xf32>
    %29 = tpu.matmul %26, %28, %cst_41 {dimension_numbers = #tpu.dot_dimension_numbers<[1], [0], [0], [1], [0, 0, 1, 1], [], []>} : vector<128x128xf32>, vector<128x64xf32>, vector<128x64xf32> -> vector<128x64xf32>
    %30 = arith.addf %24, %29 : vector<128x64xf32>
    %c0_42 = arith.constant 0 : index
    %c1_43 = arith.constant 1 : index
    %c1_44 = arith.constant 1 : index
    %c0_45 = arith.constant 0 : index
    %31 = vector.load %arg13[%c0_42, %c1_43, %c1_44, %c0_45] : memref<2x9x9x128xf32, #tpu.memory_space<vmem>>, vector<2x8x8x128xf32>
    %32 = vector.shape_cast %31 : vector<2x8x8x128xf32> to vector<128x128xf32>
    %c3 = arith.constant 3 : index
    %c0_46 = arith.constant 0 : index
    %c0_47 = arith.constant 0 : index
    %33 = vector.load %arg3[%c3, %c0_46, %c0_47] : memref<4x128x64xf32, #tpu.memory_space<vmem>>, vector<1x128x64xf32>
    %34 = vector.shape_cast %33 : vector<1x128x64xf32> to vector<128x64xf32>
    %cst_48 = arith.constant dense<0.000000e+00> : vector<128x64xf32>
    %35 = tpu.matmul %32, %34, %cst_48 {dimension_numbers = #tpu.dot_dimension_numbers<[1], [0], [0], [1], [0, 0, 1, 1], [], []>} : vector<128x128xf32>, vector<128x64xf32>, vector<128x64xf32> -> vector<128x64xf32>
    %36 = arith.addf %30, %35 : vector<128x64xf32>
    %cst_49 = arith.constant dense<0.000000e+00> : vector<64xf32>
    %37 = vector.multi_reduction <add>, %36, %cst_49 [0] : vector<128x64xf32> to vector<64xf32>
    %38 = vector.shape_cast %37 : vector<64xf32> to vector<1x64xf32>
    %39 = vector.extract_strided_slice %38 {offsets = [0, 0], sizes = [1, 16], strides = [1, 1]} : vector<1x64xf32> to vector<1x16xf32>
    %40 = vector.extract_strided_slice %38 {offsets = [0, 16], sizes = [1, 16], strides = [1, 1]} : vector<1x64xf32> to vector<1x16xf32>
    %41 = arith.addf %39, %40 : vector<1x16xf32>
    %42 = vector.extract_strided_slice %38 {offsets = [0, 32], sizes = [1, 16], strides = [1, 1]} : vector<1x64xf32> to vector<1x16xf32>
    %43 = arith.addf %41, %42 : vector<1x16xf32>
    %44 = vector.extract_strided_slice %38 {offsets = [0, 48], sizes = [1, 16], strides = [1, 1]} : vector<1x64xf32> to vector<1x16xf32>
    %45 = arith.addf %43, %44 : vector<1x16xf32>
    %cst_50 = arith.constant 0.001953125 : f32
    %46 = vector.broadcast %cst_50 : f32 to vector<1x16xf32>
    %47 = arith.mulf %45, %46 : vector<1x16xf32>
    %48 = tpu.concatenate %47, %47, %47, %47 in 1 : vector<1x16xf32>, vector<1x16xf32>, vector<1x16xf32>, vector<1x16xf32> -> vector<1x64xf32>
    %49 = vector.broadcast %48 : vector<1x64xf32> to vector<128x64xf32>
    %50 = arith.subf %36, %49 : vector<128x64xf32>
    %51 = arith.mulf %50, %50 : vector<128x64xf32>
    %cst_51 = arith.constant dense<0.000000e+00> : vector<64xf32>
    %52 = vector.multi_reduction <add>, %51, %cst_51 [0] : vector<128x64xf32> to vector<64xf32>
    %53 = vector.shape_cast %52 : vector<64xf32> to vector<1x64xf32>
    %54 = vector.extract_strided_slice %53 {offsets = [0, 0], sizes = [1, 16], strides = [1, 1]} : vector<1x64xf32> to vector<1x16xf32>
    %55 = vector.extract_strided_slice %53 {offsets = [0, 16], sizes = [1, 16], strides = [1, 1]} : vector<1x64xf32> to vector<1x16xf32>
    %56 = arith.addf %54, %55 : vector<1x16xf32>
    %57 = vector.extract_strided_slice %53 {offsets = [0, 32], sizes = [1, 16], strides = [1, 1]} : vector<1x64xf32> to vector<1x16xf32>
    %58 = arith.addf %56, %57 : vector<1x16xf32>
    %59 = vector.extract_strided_slice %53 {offsets = [0, 48], sizes = [1, 16], strides = [1, 1]} : vector<1x64xf32> to vector<1x16xf32>
    %60 = arith.addf %58, %59 : vector<1x16xf32>
    %cst_52 = arith.constant 0.001953125 : f32
    %61 = vector.broadcast %cst_52 : f32 to vector<1x16xf32>
    %62 = arith.mulf %60, %61 : vector<1x16xf32>
    %c0_53 = arith.constant 0 : index
    %c0_54 = arith.constant 0 : index
    %63 = vector.load %arg4[%c0_53, %c0_54] : memref<1x16xf32, #tpu.memory_space<vmem>>, vector<1x16xf32>
    %cst_55 = arith.constant 9.99999974E-6 : f32
    %64 = vector.broadcast %cst_55 : f32 to vector<1x16xf32>
    %65 = arith.addf %62, %64 : vector<1x16xf32>
    %66 = math.rsqrt %65 : vector<1x16xf32>
    %67 = arith.mulf %63, %66 : vector<1x16xf32>
    %c0_56 = arith.constant 0 : index
    %c0_57 = arith.constant 0 : index
    %68 = vector.load %arg5[%c0_56, %c0_57] : memref<1x16xf32, #tpu.memory_space<vmem>>, vector<1x16xf32>
    %69 = arith.mulf %47, %67 : vector<1x16xf32>
    %70 = arith.subf %68, %69 : vector<1x16xf32>
    %71 = tpu.concatenate %67, %67, %67, %67 in 1 : vector<1x16xf32>, vector<1x16xf32>, vector<1x16xf32>, vector<1x16xf32> -> vector<1x64xf32>
    %72 = tpu.concatenate %70, %70, %70, %70 in 1 : vector<1x16xf32>, vector<1x16xf32>, vector<1x16xf32>, vector<1x16xf32> -> vector<1x64xf32>
    %73 = vector.broadcast %71 : vector<1x64xf32> to vector<128x64xf32>
    %74 = arith.mulf %36, %73 : vector<128x64xf32>
    %75 = vector.broadcast %72 : vector<1x64xf32> to vector<128x64xf32>
    %76 = arith.addf %74, %75 : vector<128x64xf32>
    %cst_58 = arith.constant 0.000000e+00 : f32
    %77 = vector.broadcast %cst_58 : f32 to vector<128x64xf32>
    %78 = arith.maximumf %76, %77 : vector<128x64xf32>
    %cst_59 = arith.constant 0.000000e+00 : f32
    %79 = vector.broadcast %cst_59 : f32 to vector<2x1x9x64xf32>
    %c0_60 = arith.constant 0 : index
    %c8 = arith.constant 8 : index
    %c0_61 = arith.constant 0 : index
    %c0_62 = arith.constant 0 : index
    %80 = vector.load %arg14[%c0_60, %c8, %c0_61, %c0_62] : memref<2x9x9x64xf32, #tpu.memory_space<vmem>>, vector<2x1x9x64xf32>
    tpu.vector_store %arg14[%c0_60, %c8, %c0_61, %c0_62], %79 {strides = array<i32>} : memref<2x9x9x64xf32, #tpu.memory_space<vmem>>, vector<2x1x9x64xf32>,
    %cst_63 = arith.constant 0.000000e+00 : f32
    %81 = vector.broadcast %cst_63 : f32 to vector<2x9x1x64xf32>
    %c0_64 = arith.constant 0 : index
    %c0_65 = arith.constant 0 : index
    %c8_66 = arith.constant 8 : index
    %c0_67 = arith.constant 0 : index
    %82 = vector.load %arg14[%c0_64, %c0_65, %c8_66, %c0_67] : memref<2x9x9x64xf32, #tpu.memory_space<vmem>>, vector<2x9x1x64xf32>
    tpu.vector_store %arg14[%c0_64, %c0_65, %c8_66, %c0_67], %81 {strides = array<i32>} : memref<2x9x9x64xf32, #tpu.memory_space<vmem>>, vector<2x9x1x64xf32>,
    %83 = vector.shape_cast %78 : vector<128x64xf32> to vector<2x8x8x64xf32>
    %c0_68 = arith.constant 0 : index
    %c0_69 = arith.constant 0 : index
    %c0_70 = arith.constant 0 : index
    %c0_71 = arith.constant 0 : index
    %84 = vector.load %arg14[%c0_68, %c0_69, %c0_70, %c0_71] : memref<2x9x9x64xf32, #tpu.memory_space<vmem>>, vector<2x8x8x64xf32>
    tpu.vector_store %arg14[%c0_68, %c0_69, %c0_70, %c0_71], %83 {strides = array<i32>} : memref<2x9x9x64xf32, #tpu.memory_space<vmem>>, vector<2x8x8x64xf32>,
    %c0_72 = arith.constant 0 : index
    %c0_73 = arith.constant 0 : index
    %c0_74 = arith.constant 0 : index
    %c0_75 = arith.constant 0 : index
    %85 = vector.load %arg14[%c0_72, %c0_73, %c0_74, %c0_75] : memref<2x9x9x64xf32, #tpu.memory_space<vmem>>, vector<2x8x8x64xf32>
    %86 = vector.shape_cast %85 : vector<2x8x8x64xf32> to vector<128x64xf32>
    %c0_76 = arith.constant 0 : index
    %c0_77 = arith.constant 0 : index
    %c0_78 = arith.constant 0 : index
    %87 = vector.load %arg6[%c0_76, %c0_77, %c0_78] : memref<4x64x32xf32, #tpu.memory_space<vmem>>, vector<1x64x32xf32>
    %88 = vector.shape_cast %87 : vector<1x64x32xf32> to vector<64x32xf32>
    %cst_79 = arith.constant dense<0.000000e+00> : vector<128x32xf32>
    %89 = tpu.matmul %86, %88, %cst_79 {dimension_numbers = #tpu.dot_dimension_numbers<[1], [0], [0], [1], [0, 0, 1, 1], [], []>} : vector<128x64xf32>, vector<64x32xf32>, vector<128x32xf32> -> vector<128x32xf32>
    %c0_80 = arith.constant 0 : index
    %c0_81 = arith.constant 0 : index
    %c1_82 = arith.constant 1 : index
    %c0_83 = arith.constant 0 : index
    %90 = vector.load %arg14[%c0_80, %c0_81, %c1_82, %c0_83] : memref<2x9x9x64xf32, #tpu.memory_space<vmem>>, vector<2x8x8x64xf32>
    %91 = vector.shape_cast %90 : vector<2x8x8x64xf32> to vector<128x64xf32>
    %c1_84 = arith.constant 1 : index
    %c0_85 = arith.constant 0 : index
    %c0_86 = arith.constant 0 : index
    %92 = vector.load %arg6[%c1_84, %c0_85, %c0_86] : memref<4x64x32xf32, #tpu.memory_space<vmem>>, vector<1x64x32xf32>
    %93 = vector.shape_cast %92 : vector<1x64x32xf32> to vector<64x32xf32>
    %cst_87 = arith.constant dense<0.000000e+00> : vector<128x32xf32>
    %94 = tpu.matmul %91, %93, %cst_87 {dimension_numbers = #tpu.dot_dimension_numbers<[1], [0], [0], [1], [0, 0, 1, 1], [], []>} : vector<128x64xf32>, vector<64x32xf32>, vector<128x32xf32> -> vector<128x32xf32>
    %95 = arith.addf %89, %94 : vector<128x32xf32>
    %c0_88 = arith.constant 0 : index
    %c1_89 = arith.constant 1 : index
    %c0_90 = arith.constant 0 : index
    %c0_91 = arith.constant 0 : index
    %96 = vector.load %arg14[%c0_88, %c1_89, %c0_90, %c0_91] : memref<2x9x9x64xf32, #tpu.memory_space<vmem>>, vector<2x8x8x64xf32>
    %97 = vector.shape_cast %96 : vector<2x8x8x64xf32> to vector<128x64xf32>
    %c2_92 = arith.constant 2 : index
    %c0_93 = arith.constant 0 : index
    %c0_94 = arith.constant 0 : index
    %98 = vector.load %arg6[%c2_92, %c0_93, %c0_94] : memref<4x64x32xf32, #tpu.memory_space<vmem>>, vector<1x64x32xf32>
    %99 = vector.shape_cast %98 : vector<1x64x32xf32> to vector<64x32xf32>
    %cst_95 = arith.constant dense<0.000000e+00> : vector<128x32xf32>
    %100 = tpu.matmul %97, %99, %cst_95 {dimension_numbers = #tpu.dot_dimension_numbers<[1], [0], [0], [1], [0, 0, 1, 1], [], []>} : vector<128x64xf32>, vector<64x32xf32>, vector<128x32xf32> -> vector<128x32xf32>
    %101 = arith.addf %95, %100 : vector<128x32xf32>
    %c0_96 = arith.constant 0 : index
    %c1_97 = arith.constant 1 : index
    %c1_98 = arith.constant 1 : index
    %c0_99 = arith.constant 0 : index
    %102 = vector.load %arg14[%c0_96, %c1_97, %c1_98, %c0_99] : memref<2x9x9x64xf32, #tpu.memory_space<vmem>>, vector<2x8x8x64xf32>
    %103 = vector.shape_cast %102 : vector<2x8x8x64xf32> to vector<128x64xf32>
    %c3_100 = arith.constant 3 : index
    %c0_101 = arith.constant 0 : index
    %c0_102 = arith.constant 0 : index
    %104 = vector.load %arg6[%c3_100, %c0_101, %c0_102] : memref<4x64x32xf32, #tpu.memory_space<vmem>>, vector<1x64x32xf32>
    %105 = vector.shape_cast %104 : vector<1x64x32xf32> to vector<64x32xf32>
    %cst_103 = arith.constant dense<0.000000e+00> : vector<128x32xf32>
    %106 = tpu.matmul %103, %105, %cst_103 {dimension_numbers = #tpu.dot_dimension_numbers<[1], [0], [0], [1], [0, 0, 1, 1], [], []>} : vector<128x64xf32>, vector<64x32xf32>, vector<128x32xf32> -> vector<128x32xf32>
    %107 = arith.addf %101, %106 : vector<128x32xf32>
    %c0_104 = arith.constant 0 : index
    %c0_105 = arith.constant 0 : index
    %108 = vector.load %arg7[%c0_104, %c0_105] : memref<1x32xf32, #tpu.memory_space<vmem>>, vector<1x32xf32>
    %109 = vector.broadcast %108 : vector<1x32xf32> to vector<128x32xf32>
    %110 = arith.addf %107, %109 : vector<128x32xf32>
    %cst_106 = arith.constant 0.000000e+00 : f32
    %111 = vector.broadcast %cst_106 : f32 to vector<128x32xf32>
    %112 = arith.maximumf %110, %111 : vector<128x32xf32>
    %113 = vector.shape_cast %112 : vector<128x32xf32> to vector<2x8x8x32xf32>
    %114 = vector.extract_strided_slice %113 {offsets = [0, 0, 0, 0], sizes = [2, 1, 1, 32], strides = [1, 1, 1, 1]} : vector<2x8x8x32xf32> to vector<2x1x1x32xf32>
    %115 = vector.shape_cast %114 : vector<2x1x1x32xf32> to vector<2x32xf32>
    %116 = vector.extract_strided_slice %113 {offsets = [0, 0, 1, 0], sizes = [2, 1, 1, 32], strides = [1, 1, 1, 1]} : vector<2x8x8x32xf32> to vector<2x1x1x32xf32>
    %117 = vector.shape_cast %116 : vector<2x1x1x32xf32> to vector<2x32xf32>
    %118 = vector.extract_strided_slice %113 {offsets = [0, 0, 2, 0], sizes = [2, 1, 1, 32], strides = [1, 1, 1, 1]} : vector<2x8x8x32xf32> to vector<2x1x1x32xf32>
    %119 = vector.shape_cast %118 : vector<2x1x1x32xf32> to vector<2x32xf32>
    %120 = vector.extract_strided_slice %113 {offsets = [0, 0, 3, 0], sizes = [2, 1, 1, 32], strides = [1, 1, 1, 1]} : vector<2x8x8x32xf32> to vector<2x1x1x32xf32>
    %121 = vector.shape_cast %120 : vector<2x1x1x32xf32> to vector<2x32xf32>
    %122 = vector.extract_strided_slice %113 {offsets = [0, 0, 4, 0], sizes = [2, 1, 1, 32], strides = [1, 1, 1, 1]} : vector<2x8x8x32xf32> to vector<2x1x1x32xf32>
    %123 = vector.shape_cast %122 : vector<2x1x1x32xf32> to vector<2x32xf32>
    %124 = vector.extract_strided_slice %113 {offsets = [0, 0, 5, 0], sizes = [2, 1, 1, 32], strides = [1, 1, 1, 1]} : vector<2x8x8x32xf32> to vector<2x1x1x32xf32>
    %125 = vector.shape_cast %124 : vector<2x1x1x32xf32> to vector<2x32xf32>
    %126 = vector.extract_strided_slice %113 {offsets = [0, 0, 6, 0], sizes = [2, 1, 1, 32], strides = [1, 1, 1, 1]} : vector<2x8x8x32xf32> to vector<2x1x1x32xf32>
    %127 = vector.shape_cast %126 : vector<2x1x1x32xf32> to vector<2x32xf32>
    %128 = vector.extract_strided_slice %113 {offsets = [0, 0, 7, 0], sizes = [2, 1, 1, 32], strides = [1, 1, 1, 1]} : vector<2x8x8x32xf32> to vector<2x1x1x32xf32>
    %129 = vector.shape_cast %128 : vector<2x1x1x32xf32> to vector<2x32xf32>
    %130 = vector.extract_strided_slice %113 {offsets = [0, 1, 0, 0], sizes = [2, 1, 1, 32], strides = [1, 1, 1, 1]} : vector<2x8x8x32xf32> to vector<2x1x1x32xf32>
    %131 = vector.shape_cast %130 : vector<2x1x1x32xf32> to vector<2x32xf32>
    %132 = vector.extract_strided_slice %113 {offsets = [0, 1, 1, 0], sizes = [2, 1, 1, 32], strides = [1, 1, 1, 1]} : vector<2x8x8x32xf32> to vector<2x1x1x32xf32>
    %133 = vector.shape_cast %132 : vector<2x1x1x32xf32> to vector<2x32xf32>
    %134 = vector.extract_strided_slice %113 {offsets = [0, 1, 2, 0], sizes = [2, 1, 1, 32], strides = [1, 1, 1, 1]} : vector<2x8x8x32xf32> to vector<2x1x1x32xf32>
    %135 = vector.shape_cast %134 : vector<2x1x1x32xf32> to vector<2x32xf32>
    %136 = vector.extract_strided_slice %113 {offsets = [0, 1, 3, 0], sizes = [2, 1, 1, 32], strides = [1, 1, 1, 1]} : vector<2x8x8x32xf32> to vector<2x1x1x32xf32>
    %137 = vector.shape_cast %136 : vector<2x1x1x32xf32> to vector<2x32xf32>
    %138 = vector.extract_strided_slice %113 {offsets = [0, 1, 4, 0], sizes = [2, 1, 1, 32], strides = [1, 1, 1, 1]} : vector<2x8x8x32xf32> to vector<2x1x1x32xf32>
    %139 = vector.shape_cast %138 : vector<2x1x1x32xf32> to vector<2x32xf32>
    %140 = vector.extract_strided_slice %113 {offsets = [0, 1, 5, 0], sizes = [2, 1, 1, 32], strides = [1, 1, 1, 1]} : vector<2x8x8x32xf32> to vector<2x1x1x32xf32>
    %141 = vector.shape_cast %140 : vector<2x1x1x32xf32> to vector<2x32xf32>
    %142 = vector.extract_strided_slice %113 {offsets = [0, 1, 6, 0], sizes = [2, 1, 1, 32], strides = [1, 1, 1, 1]} : vector<2x8x8x32xf32> to vector<2x1x1x32xf32>
    %143 = vector.shape_cast %142 : vector<2x1x1x32xf32> to vector<2x32xf32>
    %144 = vector.extract_strided_slice %113 {offsets = [0, 1, 7, 0], sizes = [2, 1, 1, 32], strides = [1, 1, 1, 1]} : vector<2x8x8x32xf32> to vector<2x1x1x32xf32>
    %145 = vector.shape_cast %144 : vector<2x1x1x32xf32> to vector<2x32xf32>
    %146 = vector.extract_strided_slice %113 {offsets = [0, 2, 0, 0], sizes = [2, 1, 1, 32], strides = [1, 1, 1, 1]} : vector<2x8x8x32xf32> to vector<2x1x1x32xf32>
    %147 = vector.shape_cast %146 : vector<2x1x1x32xf32> to vector<2x32xf32>
    %148 = vector.extract_strided_slice %113 {offsets = [0, 2, 1, 0], sizes = [2, 1, 1, 32], strides = [1, 1, 1, 1]} : vector<2x8x8x32xf32> to vector<2x1x1x32xf32>
    %149 = vector.shape_cast %148 : vector<2x1x1x32xf32> to vector<2x32xf32>
    %150 = vector.extract_strided_slice %113 {offsets = [0, 2, 2, 0], sizes = [2, 1, 1, 32], strides = [1, 1, 1, 1]} : vector<2x8x8x32xf32> to vector<2x1x1x32xf32>
    %151 = vector.shape_cast %150 : vector<2x1x1x32xf32> to vector<2x32xf32>
    %152 = vector.extract_strided_slice %113 {offsets = [0, 2, 3, 0], sizes = [2, 1, 1, 32], strides = [1, 1, 1, 1]} : vector<2x8x8x32xf32> to vector<2x1x1x32xf32>
    %153 = vector.shape_cast %152 : vector<2x1x1x32xf32> to vector<2x32xf32>
    %154 = vector.extract_strided_slice %113 {offsets = [0, 2, 4, 0], sizes = [2, 1, 1, 32], strides = [1, 1, 1, 1]} : vector<2x8x8x32xf32> to vector<2x1x1x32xf32>
    %155 = vector.shape_cast %154 : vector<2x1x1x32xf32> to vector<2x32xf32>
    %156 = vector.extract_strided_slice %113 {offsets = [0, 2, 5, 0], sizes = [2, 1, 1, 32], strides = [1, 1, 1, 1]} : vector<2x8x8x32xf32> to vector<2x1x1x32xf32>
    %157 = vector.shape_cast %156 : vector<2x1x1x32xf32> to vector<2x32xf32>
    %158 = vector.extract_strided_slice %113 {offsets = [0, 2, 6, 0], sizes = [2, 1, 1, 32], strides = [1, 1, 1, 1]} : vector<2x8x8x32xf32> to vector<2x1x1x32xf32>
    %159 = vector.shape_cast %158 : vector<2x1x1x32xf32> to vector<2x32xf32>
    %160 = vector.extract_strided_slice %113 {offsets = [0, 2, 7, 0], sizes = [2, 1, 1, 32], strides = [1, 1, 1, 1]} : vector<2x8x8x32xf32> to vector<2x1x1x32xf32>
    %161 = vector.shape_cast %160 : vector<2x1x1x32xf32> to vector<2x32xf32>
    %162 = vector.extract_strided_slice %113 {offsets = [0, 3, 0, 0], sizes = [2, 1, 1, 32], strides = [1, 1, 1, 1]} : vector<2x8x8x32xf32> to vector<2x1x1x32xf32>
    %163 = vector.shape_cast %162 : vector<2x1x1x32xf32> to vector<2x32xf32>
    %164 = vector.extract_strided_slice %113 {offsets = [0, 3, 1, 0], sizes = [2, 1, 1, 32], strides = [1, 1, 1, 1]} : vector<2x8x8x32xf32> to vector<2x1x1x32xf32>
    %165 = vector.shape_cast %164 : vector<2x1x1x32xf32> to vector<2x32xf32>
    %166 = vector.extract_strided_slice %113 {offsets = [0, 3, 2, 0], sizes = [2, 1, 1, 32], strides = [1, 1, 1, 1]} : vector<2x8x8x32xf32> to vector<2x1x1x32xf32>
    %167 = vector.shape_cast %166 : vector<2x1x1x32xf32> to vector<2x32xf32>
    %168 = vector.extract_strided_slice %113 {offsets = [0, 3, 3, 0], sizes = [2, 1, 1, 32], strides = [1, 1, 1, 1]} : vector<2x8x8x32xf32> to vector<2x1x1x32xf32>
    %169 = vector.shape_cast %168 : vector<2x1x1x32xf32> to vector<2x32xf32>
    %170 = vector.extract_strided_slice %113 {offsets = [0, 3, 4, 0], sizes = [2, 1, 1, 32], strides = [1, 1, 1, 1]} : vector<2x8x8x32xf32> to vector<2x1x1x32xf32>
    %171 = vector.shape_cast %170 : vector<2x1x1x32xf32> to vector<2x32xf32>
    %172 = vector.extract_strided_slice %113 {offsets = [0, 3, 5, 0], sizes = [2, 1, 1, 32], strides = [1, 1, 1, 1]} : vector<2x8x8x32xf32> to vector<2x1x1x32xf32>
    %173 = vector.shape_cast %172 : vector<2x1x1x32xf32> to vector<2x32xf32>
    %174 = vector.extract_strided_slice %113 {offsets = [0, 3, 6, 0], sizes = [2, 1, 1, 32], strides = [1, 1, 1, 1]} : vector<2x8x8x32xf32> to vector<2x1x1x32xf32>
    %175 = vector.shape_cast %174 : vector<2x1x1x32xf32> to vector<2x32xf32>
    %176 = vector.extract_strided_slice %113 {offsets = [0, 3, 7, 0], sizes = [2, 1, 1, 32], strides = [1, 1, 1, 1]} : vector<2x8x8x32xf32> to vector<2x1x1x32xf32>
    %177 = vector.shape_cast %176 : vector<2x1x1x32xf32> to vector<2x32xf32>
    %178 = vector.extract_strided_slice %113 {offsets = [0, 4, 0, 0], sizes = [2, 1, 1, 32], strides = [1, 1, 1, 1]} : vector<2x8x8x32xf32> to vector<2x1x1x32xf32>
    %179 = vector.shape_cast %178 : vector<2x1x1x32xf32> to vector<2x32xf32>
    %180 = vector.extract_strided_slice %113 {offsets = [0, 4, 1, 0], sizes = [2, 1, 1, 32], strides = [1, 1, 1, 1]} : vector<2x8x8x32xf32> to vector<2x1x1x32xf32>
    %181 = vector.shape_cast %180 : vector<2x1x1x32xf32> to vector<2x32xf32>
    %182 = vector.extract_strided_slice %113 {offsets = [0, 4, 2, 0], sizes = [2, 1, 1, 32], strides = [1, 1, 1, 1]} : vector<2x8x8x32xf32> to vector<2x1x1x32xf32>
    %183 = vector.shape_cast %182 : vector<2x1x1x32xf32> to vector<2x32xf32>
    %184 = vector.extract_strided_slice %113 {offsets = [0, 4, 3, 0], sizes = [2, 1, 1, 32], strides = [1, 1, 1, 1]} : vector<2x8x8x32xf32> to vector<2x1x1x32xf32>
    %185 = vector.shape_cast %184 : vector<2x1x1x32xf32> to vector<2x32xf32>
    %186 = vector.extract_strided_slice %113 {offsets = [0, 4, 4, 0], sizes = [2, 1, 1, 32], strides = [1, 1, 1, 1]} : vector<2x8x8x32xf32> to vector<2x1x1x32xf32>
    %187 = vector.shape_cast %186 : vector<2x1x1x32xf32> to vector<2x32xf32>
    %188 = vector.extract_strided_slice %113 {offsets = [0, 4, 5, 0], sizes = [2, 1, 1, 32], strides = [1, 1, 1, 1]} : vector<2x8x8x32xf32> to vector<2x1x1x32xf32>
    %189 = vector.shape_cast %188 : vector<2x1x1x32xf32> to vector<2x32xf32>
    %190 = vector.extract_strided_slice %113 {offsets = [0, 4, 6, 0], sizes = [2, 1, 1, 32], strides = [1, 1, 1, 1]} : vector<2x8x8x32xf32> to vector<2x1x1x32xf32>
    %191 = vector.shape_cast %190 : vector<2x1x1x32xf32> to vector<2x32xf32>
    %192 = vector.extract_strided_slice %113 {offsets = [0, 4, 7, 0], sizes = [2, 1, 1, 32], strides = [1, 1, 1, 1]} : vector<2x8x8x32xf32> to vector<2x1x1x32xf32>
    %193 = vector.shape_cast %192 : vector<2x1x1x32xf32> to vector<2x32xf32>
    %194 = vector.extract_strided_slice %113 {offsets = [0, 5, 0, 0], sizes = [2, 1, 1, 32], strides = [1, 1, 1, 1]} : vector<2x8x8x32xf32> to vector<2x1x1x32xf32>
    %195 = vector.shape_cast %194 : vector<2x1x1x32xf32> to vector<2x32xf32>
    %196 = vector.extract_strided_slice %113 {offsets = [0, 5, 1, 0], sizes = [2, 1, 1, 32], strides = [1, 1, 1, 1]} : vector<2x8x8x32xf32> to vector<2x1x1x32xf32>
    %197 = vector.shape_cast %196 : vector<2x1x1x32xf32> to vector<2x32xf32>
    %198 = vector.extract_strided_slice %113 {offsets = [0, 5, 2, 0], sizes = [2, 1, 1, 32], strides = [1, 1, 1, 1]} : vector<2x8x8x32xf32> to vector<2x1x1x32xf32>
    %199 = vector.shape_cast %198 : vector<2x1x1x32xf32> to vector<2x32xf32>
    %200 = vector.extract_strided_slice %113 {offsets = [0, 5, 3, 0], sizes = [2, 1, 1, 32], strides = [1, 1, 1, 1]} : vector<2x8x8x32xf32> to vector<2x1x1x32xf32>
    %201 = vector.shape_cast %200 : vector<2x1x1x32xf32> to vector<2x32xf32>
    %202 = vector.extract_strided_slice %113 {offsets = [0, 5, 4, 0], sizes = [2, 1, 1, 32], strides = [1, 1, 1, 1]} : vector<2x8x8x32xf32> to vector<2x1x1x32xf32>
    %203 = vector.shape_cast %202 : vector<2x1x1x32xf32> to vector<2x32xf32>
    %204 = vector.extract_strided_slice %113 {offsets = [0, 5, 5, 0], sizes = [2, 1, 1, 32], strides = [1, 1, 1, 1]} : vector<2x8x8x32xf32> to vector<2x1x1x32xf32>
    %205 = vector.shape_cast %204 : vector<2x1x1x32xf32> to vector<2x32xf32>
    %206 = vector.extract_strided_slice %113 {offsets = [0, 5, 6, 0], sizes = [2, 1, 1, 32], strides = [1, 1, 1, 1]} : vector<2x8x8x32xf32> to vector<2x1x1x32xf32>
    %207 = vector.shape_cast %206 : vector<2x1x1x32xf32> to vector<2x32xf32>
    %208 = vector.extract_strided_slice %113 {offsets = [0, 5, 7, 0], sizes = [2, 1, 1, 32], strides = [1, 1, 1, 1]} : vector<2x8x8x32xf32> to vector<2x1x1x32xf32>
    %209 = vector.shape_cast %208 : vector<2x1x1x32xf32> to vector<2x32xf32>
    %210 = vector.extract_strided_slice %113 {offsets = [0, 6, 0, 0], sizes = [2, 1, 1, 32], strides = [1, 1, 1, 1]} : vector<2x8x8x32xf32> to vector<2x1x1x32xf32>
    %211 = vector.shape_cast %210 : vector<2x1x1x32xf32> to vector<2x32xf32>
    %212 = vector.extract_strided_slice %113 {offsets = [0, 6, 1, 0], sizes = [2, 1, 1, 32], strides = [1, 1, 1, 1]} : vector<2x8x8x32xf32> to vector<2x1x1x32xf32>
    %213 = vector.shape_cast %212 : vector<2x1x1x32xf32> to vector<2x32xf32>
    %214 = vector.extract_strided_slice %113 {offsets = [0, 6, 2, 0], sizes = [2, 1, 1, 32], strides = [1, 1, 1, 1]} : vector<2x8x8x32xf32> to vector<2x1x1x32xf32>
    %215 = vector.shape_cast %214 : vector<2x1x1x32xf32> to vector<2x32xf32>
    %216 = vector.extract_strided_slice %113 {offsets = [0, 6, 3, 0], sizes = [2, 1, 1, 32], strides = [1, 1, 1, 1]} : vector<2x8x8x32xf32> to vector<2x1x1x32xf32>
    %217 = vector.shape_cast %216 : vector<2x1x1x32xf32> to vector<2x32xf32>
    %218 = vector.extract_strided_slice %113 {offsets = [0, 6, 4, 0], sizes = [2, 1, 1, 32], strides = [1, 1, 1, 1]} : vector<2x8x8x32xf32> to vector<2x1x1x32xf32>
    %219 = vector.shape_cast %218 : vector<2x1x1x32xf32> to vector<2x32xf32>
    %220 = vector.extract_strided_slice %113 {offsets = [0, 6, 5, 0], sizes = [2, 1, 1, 32], strides = [1, 1, 1, 1]} : vector<2x8x8x32xf32> to vector<2x1x1x32xf32>
    %221 = vector.shape_cast %220 : vector<2x1x1x32xf32> to vector<2x32xf32>
    %222 = vector.extract_strided_slice %113 {offsets = [0, 6, 6, 0], sizes = [2, 1, 1, 32], strides = [1, 1, 1, 1]} : vector<2x8x8x32xf32> to vector<2x1x1x32xf32>
    %223 = vector.shape_cast %222 : vector<2x1x1x32xf32> to vector<2x32xf32>
    %224 = vector.extract_strided_slice %113 {offsets = [0, 6, 7, 0], sizes = [2, 1, 1, 32], strides = [1, 1, 1, 1]} : vector<2x8x8x32xf32> to vector<2x1x1x32xf32>
    %225 = vector.shape_cast %224 : vector<2x1x1x32xf32> to vector<2x32xf32>
    %226 = vector.extract_strided_slice %113 {offsets = [0, 7, 0, 0], sizes = [2, 1, 1, 32], strides = [1, 1, 1, 1]} : vector<2x8x8x32xf32> to vector<2x1x1x32xf32>
    %227 = vector.shape_cast %226 : vector<2x1x1x32xf32> to vector<2x32xf32>
    %228 = vector.extract_strided_slice %113 {offsets = [0, 7, 1, 0], sizes = [2, 1, 1, 32], strides = [1, 1, 1, 1]} : vector<2x8x8x32xf32> to vector<2x1x1x32xf32>
    %229 = vector.shape_cast %228 : vector<2x1x1x32xf32> to vector<2x32xf32>
    %230 = vector.extract_strided_slice %113 {offsets = [0, 7, 2, 0], sizes = [2, 1, 1, 32], strides = [1, 1, 1, 1]} : vector<2x8x8x32xf32> to vector<2x1x1x32xf32>
    %231 = vector.shape_cast %230 : vector<2x1x1x32xf32> to vector<2x32xf32>
    %232 = vector.extract_strided_slice %113 {offsets = [0, 7, 3, 0], sizes = [2, 1, 1, 32], strides = [1, 1, 1, 1]} : vector<2x8x8x32xf32> to vector<2x1x1x32xf32>
    %233 = vector.shape_cast %232 : vector<2x1x1x32xf32> to vector<2x32xf32>
    %234 = vector.extract_strided_slice %113 {offsets = [0, 7, 4, 0], sizes = [2, 1, 1, 32], strides = [1, 1, 1, 1]} : vector<2x8x8x32xf32> to vector<2x1x1x32xf32>
    %235 = vector.shape_cast %234 : vector<2x1x1x32xf32> to vector<2x32xf32>
    %236 = vector.extract_strided_slice %113 {offsets = [0, 7, 5, 0], sizes = [2, 1, 1, 32], strides = [1, 1, 1, 1]} : vector<2x8x8x32xf32> to vector<2x1x1x32xf32>
    %237 = vector.shape_cast %236 : vector<2x1x1x32xf32> to vector<2x32xf32>
    %238 = vector.extract_strided_slice %113 {offsets = [0, 7, 6, 0], sizes = [2, 1, 1, 32], strides = [1, 1, 1, 1]} : vector<2x8x8x32xf32> to vector<2x1x1x32xf32>
    %239 = vector.shape_cast %238 : vector<2x1x1x32xf32> to vector<2x32xf32>
    %240 = vector.extract_strided_slice %113 {offsets = [0, 7, 7, 0], sizes = [2, 1, 1, 32], strides = [1, 1, 1, 1]} : vector<2x8x8x32xf32> to vector<2x1x1x32xf32>
    %241 = vector.shape_cast %240 : vector<2x1x1x32xf32> to vector<2x32xf32>
    %242 = tpu.concatenate %115, %117, %119, %121, %123, %125, %127, %129, %131, %133, %135, %137, %139, %141, %143, %145 in 1 : vector<2x32xf32>, vector<2x32xf32>, vector<2x32xf32>, vector<2x32xf32>, vector<2x32xf32>, vector<2x32xf32>, vector<2x32xf32>, vector<2x32xf32>, vector<2x32xf32>, vector<2x32xf32>, vector<2x32xf32>, vector<2x32xf32>, vector<2x32xf32>, vector<2x32xf32>, vector<2x32xf32>, vector<2x32xf32> -> vector<2x512xf32>
    %243 = tpu.concatenate %147, %149, %151, %153, %155, %157, %159, %161, %163, %165, %167, %169, %171, %173, %175, %177 in 1 : vector<2x32xf32>, vector<2x32xf32>, vector<2x32xf32>, vector<2x32xf32>, vector<2x32xf32>, vector<2x32xf32>, vector<2x32xf32>, vector<2x32xf32>, vector<2x32xf32>, vector<2x32xf32>, vector<2x32xf32>, vector<2x32xf32>, vector<2x32xf32>, vector<2x32xf32>, vector<2x32xf32>, vector<2x32xf32> -> vector<2x512xf32>
    %244 = tpu.concatenate %179, %181, %183, %185, %187, %189, %191, %193, %195, %197, %199, %201, %203, %205, %207, %209 in 1 : vector<2x32xf32>, vector<2x32xf32>, vector<2x32xf32>, vector<2x32xf32>, vector<2x32xf32>, vector<2x32xf32>, vector<2x32xf32>, vector<2x32xf32>, vector<2x32xf32>, vector<2x32xf32>, vector<2x32xf32>, vector<2x32xf32>, vector<2x32xf32>, vector<2x32xf32>, vector<2x32xf32>, vector<2x32xf32> -> vector<2x512xf32>
    %245 = tpu.concatenate %211, %213, %215, %217, %219, %221, %223, %225, %227, %229, %231, %233, %235, %237, %239, %241 in 1 : vector<2x32xf32>, vector<2x32xf32>, vector<2x32xf32>, vector<2x32xf32>, vector<2x32xf32>, vector<2x32xf32>, vector<2x32xf32>, vector<2x32xf32>, vector<2x32xf32>, vector<2x32xf32>, vector<2x32xf32>, vector<2x32xf32>, vector<2x32xf32>, vector<2x32xf32>, vector<2x32xf32>, vector<2x32xf32> -> vector<2x512xf32>
    %246 = tpu.concatenate %242, %243, %244, %245 in 1 : vector<2x512xf32>, vector<2x512xf32>, vector<2x512xf32>, vector<2x512xf32> -> vector<2x2048xf32>
    %c0_107 = arith.constant 0 : index
    %c0_108 = arith.constant 0 : index
    %247 = vector.load %arg8[%c0_107, %c0_108] : memref<2048x128xf32, #tpu.memory_space<vmem>>, vector<2048x128xf32>
    %cst_109 = arith.constant dense<0.000000e+00> : vector<2x128xf32>
    %248 = tpu.matmul %246, %247, %cst_109 {dimension_numbers = #tpu.dot_dimension_numbers<[1], [0], [0], [1], [0, 0, 1, 1], [], []>} : vector<2x2048xf32>, vector<2048x128xf32>, vector<2x128xf32> -> vector<2x128xf32>
    %c0_110 = arith.constant 0 : index
    %c0_111 = arith.constant 0 : index
    %249 = vector.load %arg9[%c0_110, %c0_111] : memref<1x128xf32, #tpu.memory_space<vmem>>, vector<1x128xf32>
    %250 = vector.broadcast %249 : vector<1x128xf32> to vector<2x128xf32>
    %251 = arith.addf %248, %250 : vector<2x128xf32>
    %cst_112 = arith.constant 0.000000e+00 : f32
    %252 = vector.broadcast %cst_112 : f32 to vector<2x128xf32>
    %253 = arith.maximumf %251, %252 : vector<2x128xf32>
    %c0_113 = arith.constant 0 : index
    %c0_114 = arith.constant 0 : index
    %254 = vector.load %arg10[%c0_113, %c0_114] : memref<128x16xf32, #tpu.memory_space<vmem>>, vector<128x16xf32>
    %cst_115 = arith.constant dense<0.000000e+00> : vector<2x16xf32>
    %255 = tpu.matmul %253, %254, %cst_115 {dimension_numbers = #tpu.dot_dimension_numbers<[1], [0], [0], [1], [0, 0, 1, 1], [], []>} : vector<2x128xf32>, vector<128x16xf32>, vector<2x16xf32> -> vector<2x16xf32>
    %c0_116 = arith.constant 0 : index
    %c0_117 = arith.constant 0 : index
    %256 = vector.load %arg11[%c0_116, %c0_117] : memref<1x16xf32, #tpu.memory_space<vmem>>, vector<1x16xf32>
    %257 = vector.broadcast %256 : vector<1x16xf32> to vector<2x16xf32>
    %258 = arith.addf %255, %257 : vector<2x16xf32>
    %c0_118 = arith.constant 0 : index
    %c0_119 = arith.constant 0 : index
    %259 = vector.load %arg12[%c0_118, %c0_119] : memref<2x16xf32, #tpu.memory_space<vmem>>, vector<2x16xf32>
    tpu.vector_store %arg12[%c0_118, %c0_119], %258 {strides = array<i32>} : memref<2x16xf32, #tpu.memory_space<vmem>>, vector<2x16xf32>,
    return
  }
}

</mosaic_0001>

<bundles_post_ra>
// kernel: encoder_forward.1
= control target key start
LH: loop header
LB: loop body
LE: loop exit
PB: predicated region body
PF: predicated region fallthrough
CT: control target
= control target key end

     0   :  { %v8646_v3 = vmov 0.0|0.0   ;;  %vm167_vm0 = vcmask 392192   ;;  %s8632_s0 = inlined_call_operand.vmem [shape: f32[128,432], index: 0, kind: input, shape index: {}]   ;;  %s8633_s1 = inlined_call_operand.vmem [shape: f32[432,128], index: 1, kind: input, shape index: {}]   ;;  %s8634_s2 = inlined_call_operand.vmem [shape: f32[1,128], index: 2, kind: input, shape index: {}]   ;;  %s8635_s3 = inlined_call_operand.vmem [shape: f32[4,128,64], index: 3, kind: input, shape index: {}]   ;;  %s8636_s4 = inlined_call_operand.vmem [shape: f32[1,16], index: 4, kind: input, shape index: {}]   ;;  %s8637_s5 = inlined_call_operand.vmem [shape: f32[1,16], index: 5, kind: input, shape index: {}]   ;;  %s8638_s6 = inlined_call_operand.vmem [shape: f32[4,64,32], index: 6, kind: input, shape index: {}]   ;;  %s8639_s7 = inlined_call_operand.vmem [shape: f32[1,32], index: 7, kind: input, shape index: {}]   ;;  %s8640_s8 = inlined_call_operand.vmem [shape: f32[2048,128], index: 8, kind: input, shape index: {}]   ;;  %s8641_s9 = inlined_call_operand.vmem [shape: f32[1,128], index: 9, kind: input, shape index: {}]   ;;  %s8642_s10 = inlined_call_operand.vmem [shape: f32[128,16], index: 10, kind: input, shape index: {}]   ;;  %s8643_s11 = inlined_call_operand.vmem [shape: f32[1,16], index: 11, kind: input, shape index: {}]   ;;  %s8644_s12 = inlined_call_operand.hbm [shape: f32[2,16], index: 12, kind: output, shape index: {}]  }
   0x1   :  { %v138_v0 = vld [vmem:[%s8633_s1 + $0x100] sm:$0xff]  ;;  %v139_v1 = vld [vmem:[%s8633_s1 + $0x108] sm:$0xff]  ;;  %v140_v2 = vld [vmem:[%s8633_s1 + $0x110] sm:$0xff]  ;;  %5081 = vmatprep.subr.bf16.mxu1 %v8646_v3 }
   0x2   :  { %v5082_v4 = vpack.c.bf16 %v139_v1, %v138_v0  ;;  %v141_v5 = vld [vmem:[%s8633_s1 + $0x118] sm:$0xff]  ;;  %v122_v6 = vld [vmem:[%s8633_s1 + $0x80] sm:$0xff]  ;;  %v123_v7 = vld [vmem:[%s8633_s1 + $0x88] sm:$0xff] }
   0x3   :  { %v5049_v8 = vpack.c.bf16 %v123_v7, %v122_v6  ;;  %v106_v9 = vld [vmem:[%s8633_s1] sm:$0xff]  ;;  %v107_v10 = vld [vmem:[%s8633_s1 + $0x8] sm:$0xff]  ;;  %v5085_v11 = vpack.c.bf16 %v141_v5, %v140_v2  ;;  %v124_v14 = vld [vmem:[%s8633_s1 + $0x90] sm:$0xff] }
   0x4   :  { %5083 = vmatpush1.bf16.msra.mxu1 %v5082_v4  ;;  %v5051_v12 = vpack.c.bf16 %v107_v10, %v106_v9  ;;  %v142_v13 = vld [vmem:[%s8633_s1 + $0x120] sm:$0xff]  ;;  %v125_v15 = vld [vmem:[%s8633_s1 + $0x98] sm:$0xff]  ;;  %v143_v16 = vld [vmem:[%s8633_s1 + $0x128] sm:$0xff] }
   0x5   :  { %5084 = vmatprep.subr.bf16.mxu1 %v8646_v3  ;;  %5050 = vmatprep.subr.bf16.mxu0 %v5049_v8  ;;  %v5053_v17 = vpack.c.bf16 %v125_v15, %v124_v14  ;;  %v108_v18 = vld [vmem:[%s8633_s1 + $0x10] sm:$0xff]  ;;  %v109_v19 = vld [vmem:[%s8633_s1 + $0x18] sm:$0xff]  ;;  %v126_v21 = vld [vmem:[%s8633_s1 + $0xa0] sm:$0xff]  ;;  %v5088_v26 = vpack.c.bf16 %v143_v16, %v142_v13 }
   0x6   :  { %5052 = vmatpush3.bf16.msra.mxu0 %v5051_v12  ;;  %v5055_v20 = vpack.c.bf16 %v109_v19, %v108_v18  ;;  %v127_v22 = vld [vmem:[%s8633_s1 + $0xa8] sm:$0xff]  ;;  %v110_v24 = vld [vmem:[%s8633_s1 + $0x20] sm:$0xff]  ;;  %v128_v27 = vld [vmem:[%s8633_s1 + $0xb0] sm:$0xff] }
   0x7   :  { %5054 = vmatprep.subr.bf16.mxu0 %v5053_v17  ;;  %v5057_v23 = vpack.c.bf16 %v127_v22, %v126_v21  ;;  %v111_v25 = vld [vmem:[%s8633_s1 + $0x28] sm:$0xff]  ;;  %v129_v28 = vld [vmem:[%s8633_s1 + $0xb8] sm:$0xff]  ;;  %v144_v29 = vld [vmem:[%s8633_s1 + $0x130] sm:$0xff] }
   0x8   :  { %5086 = vmatpush1.bf16.msra.mxu1 %v5085_v11  ;;  %v145_v30 = vld [vmem:[%s8633_s1 + $0x138] sm:$0xff]  ;;  %v5059_v31 = vpack.c.bf16 %v111_v25, %v110_v24  ;;  %v5061_v32 = vpack.c.bf16 %v129_v28, %v128_v27  ;;  %v112_v33 = vld [vmem:[%s8633_s1 + $0x30] sm:$0xff]  ;;  %v130_v36 = vld [vmem:[%s8633_s1 + $0xc0] sm:$0xff] }
   0x9   :  { %5087 = vmatprep.subr.bf16.mxu1 %v8646_v3  ;;  %v113_v34 = vld [vmem:[%s8633_s1 + $0x38] sm:$0xff]  ;;  %v5091_v35 = vpack.c.bf16 %v145_v30, %v144_v29  ;;  %v131_v37 = vld [vmem:[%s8633_s1 + $0xc8] sm:$0xff]  ;;  %v146_v38 = vld [vmem:[%s8633_s1 + $0x140] sm:$0xff] }
   0xa   :  { %5056 = vmatpush3.bf16.msra.mxu0 %v5055_v20  ;;  %v147_v39 = vld [vmem:[%s8633_s1 + $0x148] sm:$0xff]  ;;  %v5063_v40 = vpack.c.bf16 %v113_v34, %v112_v33  ;;  %v5065_v41 = vpack.c.bf16 %v131_v37, %v130_v36  ;;  %v114_v42 = vld [vmem:[%s8633_s1 + $0x40] sm:$0xff]  ;;  %v132_v45 = vld [vmem:[%s8633_s1 + $0xd0] sm:$0xff] }
   0xb   :  { %5058 = vmatprep.subr.bf16.mxu0 %v5057_v23  ;;  %v115_v43 = vld [vmem:[%s8633_s1 + $0x48] sm:$0xff]  ;;  %v5094_v44 = vpack.c.bf16 %v147_v39, %v146_v38  ;;  %v133_v46 = vld [vmem:[%s8633_s1 + $0xd8] sm:$0xff]  ;;  %v148_v47 = vld [vmem:[%s8633_s1 + $0x150] sm:$0xff] }
   0xc   :  { %5089 = vmatpush1.bf16.msra.mxu1 %v5088_v26  ;;  %v149_v48 = vld [vmem:[%s8633_s1 + $0x158] sm:$0xff]  ;;  %v43_v49 = vld [vmem:[%s8632_s0 + $0x8] sm:$0xff]  ;;  %v5067_v50 = vpack.c.bf16 %v115_v43, %v114_v42  ;;  %v5069_v51 = vpack.c.bf16 %v133_v46, %v132_v45  ;;  %v116_v52 = vld [vmem:[%s8633_s1 + $0x50] sm:$0xff] }
   0xd   :  { %5090 = vmatprep.subr.bf16.mxu1 %v8646_v3  ;;  %280 = vmatprep.mubr.f32.mxu0 %v43_v49  ;;  %v117_v53 = vld [vmem:[%s8633_s1 + $0x58] sm:$0xff]  ;;  %v5097_v54 = vpack.c.bf16 %v149_v48, %v148_v47  ;;  %v134_v55 = vld [vmem:[%s8633_s1 + $0xe0] sm:$0xff]  ;;  %v135_v56 = vld [vmem:[%s8633_s1 + $0xe8] sm:$0xff] }
   0xe   :  { %5060 = vmatpush3.bf16.msra.mxu0 %v5059_v31  ;;  %v45_v57 = vld [vmem:[%s8632_s0 + $0x18] sm:$0xff]  ;;  %v150_v58 = vld [vmem:[%s8633_s1 + $0x160] sm:$0xff]  ;;  %v151_v59 = vld [vmem:[%s8633_s1 + $0x168] sm:$0xff]  ;;  %v5071_v60 = vpack.c.bf16 %v117_v53, %v116_v52  ;;  %v5073_v61 = vpack.c.bf16 %v135_v56, %v134_v55 }
   0xf   :  { %5062 = vmatprep.subr.bf16.mxu0 %v5061_v32  ;;  %3874 = vmatprep.mubr.msk.f32.mxu1 %vm167_vm0, %v45_v57  ;;  %v118_v62 = vld [vmem:[%s8633_s1 + $0x60] sm:$0xff]  ;;  %v119_v63 = vld [vmem:[%s8633_s1 + $0x68] sm:$0xff]  ;;  %v5100_v0 = vpack.c.bf16 %v151_v59, %v150_v58  ;;  %v136_v1 = vld [vmem:[%s8633_s1 + $0xf0] sm:$0xff] }
  0x10   :  { %5092 = vmatpush1.bf16.msra.mxu1 %v5091_v35  ;;  %v137_v2 = vld [vmem:[%s8633_s1 + $0xf8] sm:$0xff]  ;;  %v152_v4 = vld [vmem:[%s8633_s1 + $0x170] sm:$0xff]  ;;  %v5075_v6 = vpack.c.bf16 %v119_v63, %v118_v62  ;;  %v154_v11 = vld [vmem:[%s8633_s1 + $0x180] sm:$0xff] }
  0x11   :  { %5093 = vmatprep.subr.bf16.mxu1 %v8646_v3  ;;  %v153_v5 = vld [vmem:[%s8633_s1 + $0x178] sm:$0xff]  ;;  %v5077_v7 = vpack.c.bf16 %v137_v2, %v136_v1  ;;  %v120_v8 = vld [vmem:[%s8633_s1 + $0x70] sm:$0xff]  ;;  %v155_v12 = vld [vmem:[%s8633_s1 + $0x188] sm:$0xff] }
  0x12   :  { %5064 = vmatpush3.bf16.msra.mxu0 %v5063_v40  ;;  %v121_v9 = vld [vmem:[%s8633_s1 + $0x78] sm:$0xff]  ;;  %v5103_v10 = vpack.c.bf16 %v153_v5, %v152_v4  ;;  %v5106_v14 = vpack.c.bf16 %v155_v12, %v154_v11  ;;  %v156_v15 = vld [vmem:[%s8633_s1 + $0x190] sm:$0xff]  ;;  %v42_v17 = vld [vmem:[%s8632_s0] sm:$0xff] }
  0x13   :  { %5066 = vmatprep.subr.bf16.mxu0 %v5065_v41  ;;  %v5079_v13 = vpack.c.bf16 %v121_v9, %v120_v8  ;;  %v157_v16 = vld [vmem:[%s8633_s1 + $0x198] sm:$0xff]  ;;  %v47_v18 = vld [vmem:[%s8632_s0 + $0x28] sm:$0xff]  ;;  %v158_v20 = vld [vmem:[%s8633_s1 + $0x1a0] sm:$0xff] }
  0x14   :  { %5095 = vmatpush1.bf16.msra.mxu1 %v5094_v44  ;;  %v5109_v19 = vpack.c.bf16 %v157_v16, %v156_v15  ;;  %v159_v21 = vld [vmem:[%s8633_s1 + $0x1a8] sm:$0xff]  ;;  %v46_v22 = vld [vmem:[%s8632_s0 + $0x20] sm:$0xff]  ;;  %v3892_v28 = vld [vmem:[%s8635_s3 + $0x90] sm:$0xff] }
  0x15   :  { %5096 = vmatprep.subr.bf16.mxu1 %v8646_v3  ;;  %v51_v23 = vld [vmem:[%s8632_s0 + $0x48] sm:$0xff]  ;;  %v5112_v24 = vpack.c.bf16 %v159_v21, %v158_v20  ;;  %v3890_v25 = vld [vmem:[%s8635_s3 + $0x80] sm:$0xff]  ;;  %v3893_v29 = vld [vmem:[%s8635_s3 + $0x98] sm:$0xff] }
  0x16   :  { %5068 = vmatpush3.bf16.msra.mxu0 %v5067_v50  ;;  %v3891_v26 = vld [vmem:[%s8635_s3 + $0x88] sm:$0xff]  ;;  %v50_v30 = vld [vmem:[%s8632_s0 + $0x40] sm:$0xff]  ;;  %v5118_v31 = vpack.c.bf16 %v3893_v29, %v3892_v28 }
  0x17   :  { %5070 = vmatprep.subr.bf16.mxu0 %v5069_v51  ;;  %v5114_v27 = vpack.c.bf16 %v3891_v26, %v3890_v25  ;;  %v3894_v32 = vld [vmem:[%s8635_s3 + $0xa0] sm:$0xff]  ;;  %v3895_v33 = vld [vmem:[%s8635_s3 + $0xa8] sm:$0xff] }
  0x18   :  { %5098 = vmatpush1.bf16.msra.mxu1 %v5097_v54  ;;  %v55_v34 = vld [vmem:[%s8632_s0 + $0x68] sm:$0xff] }
  0x19   :  { %5099 = vmatprep.subr.bf16.mxu1 %v8646_v3 }
  0x1a   :  { %5072 = vmatpush3.bf16.msra.mxu0 %v5071_v60 }
  0x1b   :  { %5074 = vmatprep.subr.bf16.mxu0 %v5073_v61 }
  0x1c   :  { %5101 = vmatpush1.bf16.msra.mxu1 %v5100_v0 }
  0x1d   :  { %5102 = vmatprep.subr.bf16.mxu1 %v8646_v3 }
  0x1e   :  { %5076 = vmatpush3.bf16.msra.mxu0 %v5075_v6 }
  0x1f   :  { %5078 = vmatprep.subr.bf16.mxu0 %v5077_v7 }
  0x20   :  { %5104 = vmatpush1.bf16.msra.mxu1 %v5103_v10 }
  0x21   :  { %5105 = vmatprep.subr.bf16.mxu1 %v8646_v3 }
  0x22   :  { %5080 = vmatpush3.bf16.msra.mxu0 %v5079_v13 }
  0x23   :  { %5115 = vmatprep.subr.bf16.mxu0 %v5114_v27 }
  0x24   :  { %5107 = vmatpush1.bf16.msra.mxu1 %v5106_v14 }
  0x25   :  { %5108 = vmatprep.subr.bf16.mxu1 %v8646_v3  ;;  %281 = vmatmul.mubr.f32.vlgmr.msra.gmra.mrb[0].mxu0 %v42_v17 }
  0x26   :  { %285 = vmatprep.mubr.f32.mxu0 %v47_v18 }
  0x28   :  { %5110 = vmatpush1.bf16.msra.mxu1 %v5109_v19 }
  0x29   :  { %5111 = vmatprep.subr.bf16.mxu1 %v8646_v3  ;;  %286 = vmatmul.mubr.f32.gmra.mrb[2].mxu0 %v46_v22 }
  0x2a   :  { %290 = vmatprep.mubr.f32.mxu0 %v51_v23 }
  0x2b   :  { %17 = vsyncpa [#allocation5], 0  ;;  %v44_v35 = vld [vmem:[%s8632_s0 + $0x10] sm:$0xff]  ;;  %5117 = vmatpush3.bf16.msra.mxu0 %v5114_v27  ;;  %v49_v36 = vld [vmem:[%s8632_s0 + $0x38] sm:$0xff]  ;;  %v5122_v37 = vpack.c.bf16 %v3895_v33, %v3894_v32  ;;  %vm1304_vm1 = vcmask 523264   ;;  %s5842_s21 = smov 112  }
  0x2c   :  { %5113 = vmatpush1.bf16.msra.mxu1 %v5112_v24  ;;  %5119 = vmatprep.subr.bf16.mxu0 %v5118_v31  ;;  %v54_v38 = vld [vmem:[%s8632_s0 + $0x60] sm:$0xff]  ;;  %v3896_v39 = vld [vmem:[%s8635_s3 + $0xb0] sm:$0xff]  ;;  %v3897_v40 = vld [vmem:[%s8635_s3 + $0xb8] sm:$0xff]  ;;  %s5843_s22 = smov 96   ;;  %s5844_s23 = smov 32   ;;  %vm1366_vm2 = vcmask 130048  }
  0x2d   :  { %291 = vmatmul.mubr.f32.gmra.mrb[4].mxu0 %v50_v30  ;;  %v59_v41 = vld [vmem:[%s8632_s0 + $0x88] sm:$0xff]  ;;  %v48_v42 = vld [vmem:[%s8632_s0 + $0x30] sm:$0xff]  ;;  %v53_v43 = vld [vmem:[%s8632_s0 + $0x58] sm:$0xff]  ;;  %v5126_v44 = vpack.c.bf16 %v3897_v40, %v3896_v39  ;;  %s5845_s24 = smov 16   ;;  %s5846_s25 = smov 48   ;;  %vm1368_vm3 = vcmask 261120  }
  0x2e   :  { %295 = vmatprep.mubr.f32.mxu0 %v55_v34  ;;  %v58_v45 = vld [vmem:[%s8632_s0 + $0x80] sm:$0xff]  ;;  %v63_v46 = vld [vmem:[%s8632_s0 + $0xa8] sm:$0xff]  ;;  %v52_v47 = vld [vmem:[%s8632_s0 + $0x50] sm:$0xff]  ;;  %vm1557_vm4 = vcmask 516096   ;;  %vm2541_vm5 = vcmask 1041409   ;;  %vm2629_vm6 = vcmask 785408  }
  0x2f   :  { %426 = vmatmul.mubr.f32.vlgmr.msra.gmra.mrb[0].mxu1 %v44_v35  ;;  %5121 = vmatpush3.bf16.msra.mxu0 %v5118_v31  ;;  %v57_v48 = vld [vmem:[%s8632_s0 + $0x78] sm:$0xff]  ;;  %v62_v49 = vld [vmem:[%s8632_s0 + $0xa0] sm:$0xff]  ;;  %v67_v50 = vld [vmem:[%s8632_s0 + $0xc8] sm:$0xff]  ;;  %vm5848_vm7 = vmmov 0   ;;  %vm3857_vm8 = vcmask 123904  }
  0x30   :  { %3875 = vmatprep.mubr.msk.f32.mxu1 %vm167_vm0, %v49_v36  ;;  %5123 = vmatprep.subr.bf16.mxu0 %v5122_v37  ;;  %v56_v51 = vld [vmem:[%s8632_s0 + $0x70] sm:$0xff]  ;;  %v61_v52 = vld [vmem:[%s8632_s0 + $0x98] sm:$0xff]  ;;  %v66_v53 = vld [vmem:[%s8632_s0 + $0xc0] sm:$0xff] }
  0x31   :  { %296 = vmatmul.mubr.f32.gmra.mrb[6].mxu0 %v54_v38  ;;  %v71_v54 = vld [vmem:[%s8632_s0 + $0xe8] sm:$0xff]  ;;  %v60_v55 = vld [vmem:[%s8632_s0 + $0x90] sm:$0xff]  ;;  %v65_v56 = vld [vmem:[%s8632_s0 + $0xb8] sm:$0xff] }
  0x32   :  { %300 = vmatprep.mubr.f32.mxu0 %v59_v41  ;;  %v70_v57 = vld [vmem:[%s8632_s0 + $0xe0] sm:$0xff]  ;;  %v75_v58 = vld [vmem:[%s8632_s0 + $0x108] sm:$0xff]  ;;  %v64_v59 = vld [vmem:[%s8632_s0 + $0xb0] sm:$0xff]  ;;  %v8645_v41 = vmov 0.0  }
  0x33   :  { %431 = vmatmul.mubr.f32.gmra.mrb[2].mxu1 %v48_v42  ;;  %5125 = vmatpush3.bf16.msra.mxu0 %v5122_v37  ;;  %v69_v60 = vld [vmem:[%s8632_s0 + $0xd8] sm:$0xff]  ;;  %v74_v61 = vld [vmem:[%s8632_s0 + $0x100] sm:$0xff]  ;;  %v79_v62 = vld [vmem:[%s8632_s0 + $0x128] sm:$0xff]  ;;  %522 = vst [vmem:[#allocation2] sm:$0xff] %v8645_v41 }
  0x34   :  { %3876 = vmatprep.mubr.msk.f32.mxu1 %vm167_vm0, %v53_v43  ;;  %5127 = vmatprep.subr.bf16.mxu0 %v5126_v44  ;;  %v68_v63 = vld [vmem:[%s8632_s0 + $0xd0] sm:$0xff]  ;;  %v73_v0 = vld [vmem:[%s8632_s0 + $0xf8] sm:$0xff]  ;;  %v78_v1 = vld [vmem:[%s8632_s0 + $0x120] sm:$0xff]  ;;  %523 = vst [vmem:[#allocation2 + $0x8] sm:$0x1] %v8645_v41 }
  0x35   :  { %301 = vmatmul.mubr.f32.gmra.mrb[8].mxu0 %v58_v45  ;;  %v83_v2 = vld [vmem:[%s8632_s0 + $0x148] sm:$0xff]  ;;  %v72_v4 = vld [vmem:[%s8632_s0 + $0xf0] sm:$0xff]  ;;  %v77_v5 = vld [vmem:[%s8632_s0 + $0x118] sm:$0xff]  ;;  %524 = vst [vmem:[#allocation2 + $0x90] sm:$0xff] %v8645_v41 }
  0x36   :  { %305 = vmatprep.mubr.f32.mxu0 %v63_v46  ;;  %v82_v6 = vld [vmem:[%s8632_s0 + $0x140] sm:$0xff]  ;;  %v87_v7 = vld [vmem:[%s8632_s0 + $0x168] sm:$0xff]  ;;  %v76_v8 = vld [vmem:[%s8632_s0 + $0x110] sm:$0xff]  ;;  %525 = vst [vmem:[#allocation2 + $0x98] sm:$0x1] %v8645_v41 }
  0x37   :  { %436 = vmatmul.mubr.f32.gmra.mrb[4].mxu1 %v52_v47  ;;  %5129 = vmatpush3.bf16.msra.mxu0 %v5126_v44  ;;  %v81_v9 = vld [vmem:[%s8632_s0 + $0x138] sm:$0xff]  ;;  %v86_v10 = vld [vmem:[%s8632_s0 + $0x160] sm:$0xff]  ;;  %v91_v11 = vld [vmem:[%s8632_s0 + $0x188] sm:$0xff]  ;;  %527 = vst [vmem:[#allocation2 + $0x10] sm:$0x1] %v8645_v41 }
  0x38   :  { %3877 = vmatprep.mubr.msk.f32.mxu1 %vm167_vm0, %v57_v48  ;;  %v80_v12 = vld [vmem:[%s8632_s0 + $0x130] sm:$0xff]  ;;  %v85_v13 = vld [vmem:[%s8632_s0 + $0x158] sm:$0xff]  ;;  %v90_v14 = vld [vmem:[%s8632_s0 + $0x180] sm:$0xff]  ;;  %528 = vst [vmem:[#allocation2 + $0x20] sm:$0x1] %v8645_v41 }
  0x39   :  { %306 = vmatmul.mubr.f32.gmra.mrb[10].mxu0 %v62_v49  ;;  %v95_v15 = vld [vmem:[%s8632_s0 + $0x1a8] sm:$0xff]  ;;  %v84_v16 = vld [vmem:[%s8632_s0 + $0x150] sm:$0xff]  ;;  %v89_v17 = vld [vmem:[%s8632_s0 + $0x178] sm:$0xff]  ;;  %529 = vst [vmem:[#allocation2 + $0x30] sm:$0x1] %v8645_v41 }
  0x3a   :  { %310 = vmatprep.mubr.f32.mxu0 %v67_v50  ;;  %v94_v18 = vld [vmem:[%s8632_s0 + $0x1a0] sm:$0xff]  ;;  %v99_v19 = vld [vmem:[%s8632_s0 + $0x1c8] sm:$0xff]  ;;  %v88_v20 = vld [vmem:[%s8632_s0 + $0x170] sm:$0xff]  ;;  %530 = vst [vmem:[#allocation2 + $0x40] sm:$0x1] %v8645_v41 }
  0x3b   :  { %441 = vmatmul.mubr.f32.gmra.mrb[6].mxu1 %v56_v51  ;;  %v93_v21 = vld [vmem:[%s8632_s0 + $0x198] sm:$0xff]  ;;  %v98_v22 = vld [vmem:[%s8632_s0 + $0x1c0] sm:$0xff]  ;;  %v103_v23 = vld [vmem:[%s8632_s0 + $0x1e8] sm:$0xff]  ;;  %531 = vst [vmem:[#allocation2 + $0x50] sm:$0x1] %v8645_v41 }
  0x3c   :  { %3878 = vmatprep.mubr.msk.f32.mxu1 %vm167_vm0, %v61_v52  ;;  %v92_v24 = vld [vmem:[%s8632_s0 + $0x190] sm:$0xff]  ;;  %v97_v25 = vld [vmem:[%s8632_s0 + $0x1b8] sm:$0xff]  ;;  %v102_v26 = vld [vmem:[%s8632_s0 + $0x1e0] sm:$0xff]  ;;  %532 = vst [vmem:[#allocation2 + $0x60] sm:$0x1] %v8645_v41 }
  0x3d   :  { %311 = vmatmul.mubr.f32.gmra.mrb[12].mxu0 %v66_v53  ;;  %v96_v27 = vld [vmem:[%s8632_s0 + $0x1b0] sm:$0xff]  ;;  %v101_v28 = vld [vmem:[%s8632_s0 + $0x1d8] sm:$0xff]  ;;  %v3898_v32 = vld [vmem:[%s8635_s3 + $0xc0] sm:$0xff]  ;;  %533 = vst [vmem:[#allocation2 + $0x70] sm:$0x1] %v8645_v41 }
  0x3e   :  { %315 = vmatprep.mubr.f32.mxu0 %v71_v54  ;;  %v100_v29 = vld [vmem:[%s8632_s0 + $0x1d0] sm:$0xff]  ;;  %v105_v30 = vld [vmem:[%s8632_s0 + $0x1f8] sm:$0xff]  ;;  %v3899_v33 = vld [vmem:[%s8635_s3 + $0xc8] sm:$0xff]  ;;  %534 = vst [vmem:[#allocation2 + $0x80] sm:$0x1] %v8645_v41 }
  0x3f   :  { %446 = vmatmul.mubr.f32.gmra.mrb[8].mxu1 %v60_v55  ;;  %v104_v31 = vld [vmem:[%s8632_s0 + $0x1f0] sm:$0xff]  ;;  %v5130_v34 = vpack.c.bf16 %v3899_v33, %v3898_v32  ;;  %v3901_v36 = vld [vmem:[%s8635_s3 + $0xd8] sm:$0xff]  ;;  %v3902_v38 = vld [vmem:[%s8635_s3 + $0xe0] sm:$0xff]  ;;  %536 = vst [vmem:[#allocation2 + $0xa0] sm:$0x1] %v8645_v41 }
  0x40   :  { %3879 = vmatprep.mubr.msk.f32.mxu1 %vm167_vm0, %v65_v56  ;;  %v3900_v35 = vld [vmem:[%s8635_s3 + $0xd0] sm:$0xff]  ;;  %v3903_v39 = vld [vmem:[%s8635_s3 + $0xe8] sm:$0xff]  ;;  %537 = vst [vmem:[#allocation2 + $0xb0] sm:$0x1] %v8645_v41  ;;  %538 = vst [vmem:[#allocation2 + $0xc0] sm:$0x1] %v8645_v41 }
  0x41   :  { %316 = vmatmul.mubr.f32.gmra.mrb[14].mxu0 %v70_v57  ;;  %5131 = vmatprep.subr.bf16.mxu0 %v5130_v34  ;;  %v5134_v37 = vpack.c.bf16 %v3901_v36, %v3900_v35  ;;  %v5138_v40 = vpack.c.bf16 %v3903_v39, %v3902_v38  ;;  %539 = vst [vmem:[#allocation2 + $0xd0] sm:$0x1] %v8645_v41  ;;  %540 = vst [vmem:[#allocation2 + $0xe0] sm:$0x1] %v8645_v41  ;;  %v3904_v42 = vld [vmem:[%s8635_s3 + $0xf0] sm:$0xff]  ;;  %v3905_v43 = vld [vmem:[%s8635_s3 + $0xf8] sm:$0xff] }
  0x42   :  { %320 = vmatprep.mubr.f32.mxu0 %v75_v58  ;;  %5133 = vmatpush3.bf16.msra.mxu0 %v5130_v34  ;;  %541 = vst [vmem:[#allocation2 + $0xf0] sm:$0x1] %v8645_v41  ;;  %542 = vst [vmem:[#allocation2 + $0x100] sm:$0x1] %v8645_v41  ;;  %v5142_v44 = vpack.c.bf16 %v3905_v43, %v3904_v42  ;;  %v593_v45 = vld [vmem:[#allocation2 + $0x1] sm:$0xff]  ;;  %v587_v43 = vld [vmem:[%s8635_s3 + $0x50] sm:$0xff] }
  0x43   :  { %451 = vmatmul.mubr.f32.gmra.mrb[10].mxu1 %v64_v59  ;;  %5135 = vmatprep.subr.bf16.mxu0 %v5134_v37  ;;  %543 = vst [vmem:[#allocation2 + $0x110] sm:$0x1] %v8645_v41  ;;  %526 = vst [vmem:[#allocation2] sm:$0x1] %v8645_v41  ;;  %v577_v46 = vld [vmem:[%s8635_s3] sm:$0xff]  ;;  %v578_v47 = vld [vmem:[%s8635_s3 + $0x8] sm:$0xff] }
  0x44   :  { %3880 = vmatprep.mubr.msk.f32.mxu1 %vm167_vm0, %v69_v60  ;;  %535 = vst [vmem:[#allocation2 + $0x90] sm:$0x1] %v8645_v41  ;;  %v5146_v48 = vpack.c.bf16 %v578_v47, %v577_v46  ;;  %v6375_v53 = vld [vmem:[%s8634_s2] ss:$0 sm:$0xff]  ;;  %v586_v32 = vld [vmem:[%s8635_s3 + $0x48] sm:$0xff]  ;;  %1556 = vst.msk [vmem:[#allocation3 + $0x80] sm:$0xff] %vm1304_vm1, %v8645_v41 }
  0x45   :  { %321 = vmatmul.mubr.f32.gmra.mrb[16].mxu0 %v74_v61  ;;  %v579_v61 = vld [vmem:[%s8635_s3 + $0x10] sm:$0xff]  ;;  %1559 = vst.msk [vmem:[#allocation3 + $0x110] sm:$0xff] %vm1304_vm1, %v8645_v41 }
  0x46   :  { %325 = vmatprep.mubr.f32.mxu0 %v79_v62  ;;  %5137 = vmatpush3.bf16.msra.mxu0 %v5134_v37  ;;  %v580_v62 = vld [vmem:[%s8635_s3 + $0x18] sm:$0xff]  ;;  %1561 = vst.msk [vmem:[#allocation3 + $0x8] sm:$0x1] %vm1557_vm4, %v8645_v41  ;;  %1558 = vst.msk [vmem:[#allocation3 + $0x88] sm:$0x1] %vm1557_vm4, %v8645_v41 }
  0x47   :  { %456 = vmatmul.mubr.f32.gmra.mrb[12].mxu1 %v68_v63  ;;  %5139 = vmatprep.subr.bf16.mxu0 %v5138_v40  ;;  %1560 = vst.msk [vmem:[#allocation3 + $0x118] sm:$0x1] %vm1557_vm4, %v8645_v41  ;;  %1562 = vst.msk [vmem:[#allocation3 + $0x18] sm:$0x1] %vm1557_vm4, %v8645_v41 }
  0x48   :  { %3881 = vmatprep.mubr.msk.f32.mxu1 %vm167_vm0, %v73_v0  ;;  %1563 = vst.msk [vmem:[#allocation3 + $0x28] sm:$0x1] %vm1557_vm4, %v8645_v41  ;;  %1564 = vst.msk [vmem:[#allocation3 + $0x38] sm:$0x1] %vm1557_vm4, %v8645_v41 }
  0x49   :  { %326 = vmatmul.mubr.f32.gmra.mrb[18].mxu0 %v78_v1  ;;  %1565 = vst.msk [vmem:[#allocation3 + $0x48] sm:$0x1] %vm1557_vm4, %v8645_v41  ;;  %1566 = vst.msk [vmem:[#allocation3 + $0x58] sm:$0x1] %vm1557_vm4, %v8645_v41 }
  0x4a   :  { %330 = vmatprep.mubr.f32.mxu0 %v83_v2  ;;  %5141 = vmatpush3.bf16.msra.mxu0 %v5138_v40  ;;  %1567 = vst.msk [vmem:[#allocation3 + $0x68] sm:$0x1] %vm1557_vm4, %v8645_v41  ;;  %1568 = vst.msk [vmem:[#allocation3 + $0x78] sm:$0x1] %vm1557_vm4, %v8645_v41 }
  0x4b   :  { %461 = vmatmul.mubr.f32.gmra.mrb[14].mxu1 %v72_v4  ;;  %5143 = vmatprep.subr.bf16.mxu0 %v5142_v44  ;;  %1570 = vst.msk [vmem:[#allocation3 + $0x98] sm:$0x1] %vm1557_vm4, %v8645_v41  ;;  %1571 = vst.msk [vmem:[#allocation3 + $0xa8] sm:$0x1] %vm1557_vm4, %v8645_v41 }
  0x4c   :  { %3882 = vmatprep.mubr.msk.f32.mxu1 %vm167_vm0, %v77_v5  ;;  %1572 = vst.msk [vmem:[#allocation3 + $0xb8] sm:$0x1] %vm1557_vm4, %v8645_v41  ;;  %1573 = vst.msk [vmem:[#allocation3 + $0xc8] sm:$0x1] %vm1557_vm4, %v8645_v41 }
  0x4d   :  { %331 = vmatmul.mubr.f32.gmra.mrb[20].mxu0 %v82_v6  ;;  %v5150_v6 = vpack.c.bf16 %v580_v62, %v579_v61  ;;  %1574 = vst.msk [vmem:[#allocation3 + $0xd8] sm:$0x1] %vm1557_vm4, %v8645_v41  ;;  %1575 = vst.msk [vmem:[#allocation3 + $0xe8] sm:$0x1] %vm1557_vm4, %v8645_v41 }
  0x4e   :  { %335 = vmatprep.mubr.f32.mxu0 %v87_v7  ;;  %5145 = vmatpush3.bf16.msra.mxu0 %v5142_v44  ;;  %v588_v44 = vld [vmem:[%s8635_s3 + $0x58] sm:$0xff]  ;;  %1576 = vst.msk [vmem:[#allocation3 + $0xf8] sm:$0x1] %vm1557_vm4, %v8645_v41  ;;  %1577 = vst.msk [vmem:[#allocation3 + $0x108] sm:$0x1] %vm1557_vm4, %v8645_v41 }
  0x4f   :  { %466 = vmatmul.mubr.f32.gmra.mrb[16].mxu1 %v76_v8  ;;  %5147 = vmatprep.subr.bf16.mxu0 %v5146_v48  ;;  %1569 = vst.msk [vmem:[#allocation3 + $0x88] sm:$0x1] %vm1557_vm4, %v8645_v41  ;;  %1578 = vst.msk [vmem:[#allocation3 + $0x118] sm:$0x1] %vm1557_vm4, %v8645_v41 }
  0x50   :  { %3883 = vmatprep.mubr.msk.f32.mxu1 %vm167_vm0, %v81_v9  ;;  %v581_v9 = vld [vmem:[%s8635_s3 + $0x20] sm:$0xff] }
  0x51   :  { %336 = vmatmul.mubr.f32.gmra.mrb[22].mxu0 %v86_v10  ;;  %v582_v10 = vld [vmem:[%s8635_s3 + $0x28] sm:$0xff] }
  0x52   :  { %340 = vmatprep.mubr.f32.mxu0 %v91_v11 }
  0x53   :  { %471 = vmatmul.mubr.f32.gmra.mrb[18].mxu1 %v80_v12 }
  0x54   :  { %3884 = vmatprep.mubr.msk.f32.mxu1 %vm167_vm0, %v85_v13 }
  0x55   :  { %341 = vmatmul.mubr.f32.gmra.mrb[24].mxu0 %v90_v14 }
  0x56   :  { %345 = vmatprep.mubr.f32.mxu0 %v95_v15 }
  0x57   :  { %476 = vmatmul.mubr.f32.gmra.mrb[20].mxu1 %v84_v16 }
  0x58   :  { %3885 = vmatprep.mubr.msk.f32.mxu1 %vm167_vm0, %v89_v17  ;;  %v5154_v17 = vpack.c.bf16 %v582_v10, %v581_v9 }
  0x59   :  { %346 = vmatmul.mubr.f32.gmra.mrb[26].mxu0 %v94_v18 }
  0x5a   :  { %350 = vmatprep.mubr.f32.mxu0 %v99_v19 }
  0x5b   :  { %481 = vmatmul.mubr.f32.gmra.mrb[22].mxu1 %v88_v20  ;;  %v583_v20 = vld [vmem:[%s8635_s3 + $0x30] sm:$0xff] }
  0x5c   :  { %3886 = vmatprep.mubr.msk.f32.mxu1 %vm167_vm0, %v93_v21  ;;  %v584_v21 = vld [vmem:[%s8635_s3 + $0x38] sm:$0xff] }
  0x5d   :  { %351 = vmatmul.mubr.f32.gmra.mrb[28].mxu0 %v98_v22 }
  0x5e   :  { %355 = vmatprep.mubr.f32.mxu0 %v103_v23 }
  0x5f   :  { %486 = vmatmul.mubr.f32.gmra.mrb[24].mxu1 %v92_v24 }
  0x60   :  { %3887 = vmatprep.mubr.msk.f32.mxu1 %vm167_vm0, %v97_v25 }
  0x61   :  { %356 = vmatmul.mubr.f32.gmra.mrb[30].mxu0 %v102_v26 }
  0x62   :  { %4662 = vmatprep.mubr.f32.mxu0 %v593_v45 }
  0x63   :  { %491 = vmatmul.mubr.f32.gmra.mrb[26].mxu1 %v96_v27 }
  0x64   :  { %3888 = vmatprep.mubr.msk.f32.mxu1 %vm167_vm0, %v101_v28  ;;  %v5158_v28 = vpack.c.bf16 %v584_v21, %v583_v20 }
  0x67   :  { %496 = vmatmul.mubr.f32.gmra.mrb[28].mxu1 %v100_v29 }
  0x68   :  { %3889 = vmatprep.mubr.msk.f32.mxu1 %vm167_vm0, %v105_v30 }
  0x6b   :  { %501 = vmatmul.mubr.f32.gmra.mrb[30].mxu1 %v104_v31  ;;  %v585_v31 = vld [vmem:[%s8635_s3 + $0x40] sm:$0xff] }
  0x6c   :  { %v5162_v39 = vpack.c.bf16 %v586_v32, %v585_v31 }
  0xf8   :  { %v4061_v49 = vpop.f32.mrb[0].mxu0 }
  0xf9   :  { %v4062_v50 = vpop.f32.mrb[1].mxu0 }
  0xfa   :  { %v4063_v51 = vadd.f32 %v4062_v50, %v4061_v49 }
  0xfc   :  { %v4064_v52 = vpop.f32.mrb[2].mxu0  ;;  %v283_v56 = vadd.f32 %v4063_v51, %v6375_v53  ;;  %v5166_v51 = vpack.c.bf16 %v588_v44, %v587_v43 }
  0xfd   :  { %v4065_v54 = vpop.f32.mrb[3].mxu0 }
  0xfe   :  { %v4066_v55 = vadd.f32 %v4065_v54, %v4064_v52 }
 0x100   :  { %v4067_v57 = vpop.f32.mrb[4].mxu0  ;;  %v288_v1 = vadd.f32 %v4066_v55, %v6375_v53  ;;  %v589_v55 = vld [vmem:[%s8635_s3 + $0x60] sm:$0xff] }
 0x101   :  { %v4068_v58 = vpop.f32.mrb[5].mxu0 }
 0x102   :  { %v427_v59 = vpop.f32.mrb[0].mxu1  ;;  %v4069_v60 = vadd.f32 %v4068_v58, %v4067_v57 }
 0x103   :  { %v428_v63 = vadd.f32 %v427_v59, %v283_v56  ;;  %v429_v0 = vpop.f32.mrb[1].mxu1  ;;  %v590_v56 = vld [vmem:[%s8635_s3 + $0x68] sm:$0xff] }
 0x104   :  { %v4070_v2 = vpop.f32.mrb[6].mxu0  ;;  %v293_v13 = vadd.f32 %v4069_v60, %v6375_v53 }
 0x105   :  { %v6385_v4 = vmax.f32 %v428_v63, 0.0  ;;  %v4071_v5 = vpop.f32.mrb[7].mxu0  ;;  %v5170_v63 = vpack.c.bf16 %v590_v56, %v589_v55 }
 0x106   :  { %v432_v7 = vpop.f32.mrb[2].mxu1  ;;  %v4072_v8 = vadd.f32 %v4071_v5, %v4070_v2  ;;  %v591_v2 = vld [vmem:[%s8635_s3 + $0x70] sm:$0xff]  ;;  %v592_v5 = vld [vmem:[%s8635_s3 + $0x78] sm:$0xff] }
 0x107   :  { %545 = vst [vmem:[#allocation2 + $0x11] sm:$0xff] %v6385_v4  ;;  %v433_v11 = vadd.f32 %v432_v7, %v288_v1  ;;  %v434_v12 = vpop.f32.mrb[3].mxu1  ;;  %4663 = vmatmul.mubr.f32.vlgmr.msra.gmra.mrb[32].mxu0 %v6385_v4 }
 0x108   :  { %v4073_v14 = vpop.f32.mrb[8].mxu0  ;;  %5149 = vmatpush3.bf16.msra.mxu0 %v5146_v48  ;;  %v298_v24 = vadd.f32 %v4072_v8, %v6375_v53  ;;  %v601_v12 = vld [vmem:[#allocation2 + $0x91] sm:$0xff] }
 0x109   :  { %v6396_v15 = vmax.f32 %v433_v11, 0.0  ;;  %v4074_v16 = vpop.f32.mrb[9].mxu0  ;;  %5151 = vmatprep.subr.bf16.mxu0 %v5150_v6 }
 0x10a   :  { %v437_v18 = vpop.f32.mrb[4].mxu1  ;;  %v4075_v19 = vadd.f32 %v4074_v16, %v4073_v14 }
 0x10b   :  { %546 = vst [vmem:[#allocation2 + $0x21] sm:$0xff] %v6396_v15  ;;  %v438_v22 = vadd.f32 %v437_v18, %v293_v13  ;;  %v439_v23 = vpop.f32.mrb[5].mxu1  ;;  %4665 = vmatprep.mubr.f32.mxu0 %v6396_v15  ;;  %v5174_v13 = vpack.c.bf16 %v592_v5, %v591_v2  ;;  %v3907_v18 = vld [vmem:[%s8635_s3 + $0x108] sm:$0xff] }
 0x10c   :  { %v4076_v25 = vpop.f32.mrb[10].mxu0  ;;  %5153 = vmatpush3.bf16.msra.mxu0 %v5150_v6  ;;  %v303_v35 = vadd.f32 %v4075_v19, %v6375_v53 }
 0x10d   :  { %v6407_v26 = vmax.f32 %v438_v22, 0.0  ;;  %v4077_v27 = vpop.f32.mrb[11].mxu0  ;;  %5155 = vmatprep.subr.bf16.mxu0 %v5154_v17 }
 0x10e   :  { %v442_v29 = vpop.f32.mrb[6].mxu1  ;;  %v4078_v30 = vadd.f32 %v4077_v27, %v4076_v25 }
 0x10f   :  { %547 = vst [vmem:[#allocation2 + $0x31] sm:$0xff] %v6407_v26  ;;  %v443_v33 = vadd.f32 %v442_v29, %v298_v24  ;;  %v444_v34 = vpop.f32.mrb[7].mxu1  ;;  %4666 = vmatmul.mubr.f32.gmra.mrb[34].mxu0 %v6407_v26 }
 0x110   :  { %v4079_v36 = vpop.f32.mrb[12].mxu0  ;;  %5157 = vmatpush3.bf16.msra.mxu0 %v5154_v17  ;;  %v308_v47 = vadd.f32 %v4078_v30, %v6375_v53  ;;  %v3906_v17 = vld [vmem:[%s8635_s3 + $0x100] sm:$0xff] }
 0x111   :  { %v6418_v37 = vmax.f32 %v443_v33, 0.0  ;;  %v4080_v38 = vpop.f32.mrb[13].mxu0  ;;  %5159 = vmatprep.subr.bf16.mxu0 %v5158_v28  ;;  %v6465_v25 = vpack.c.bf16 %v3907_v18, %v3906_v17 }
 0x112   :  { %v447_v40 = vpop.f32.mrb[8].mxu1  ;;  %v4081_v42 = vadd.f32 %v4080_v38, %v4079_v36 }
 0x113   :  { %548 = vst [vmem:[#allocation2 + $0x41] sm:$0xff] %v6418_v37  ;;  %v448_v45 = vadd.f32 %v447_v40, %v303_v35  ;;  %v449_v46 = vpop.f32.mrb[9].mxu1  ;;  %4668 = vmatprep.mubr.f32.mxu0 %v6418_v37 }
 0x114   :  { %v4082_v48 = vpop.f32.mrb[14].mxu0  ;;  %5161 = vmatpush3.bf16.msra.mxu0 %v5158_v28  ;;  %v313_v59 = vadd.f32 %v4081_v42, %v6375_v53 }
 0x115   :  { %v6429_v49 = vmax.f32 %v448_v45, 0.0  ;;  %v4083_v50 = vpop.f32.mrb[15].mxu0  ;;  %5163 = vmatprep.subr.bf16.mxu0 %v5162_v39 }
 0x116   :  { %v452_v52 = vpop.f32.mrb[10].mxu1  ;;  %v4084_v54 = vadd.f32 %v4083_v50, %v4082_v48 }
 0x117   :  { %549 = vst [vmem:[#allocation2 + $0x51] sm:$0xff] %v6429_v49  ;;  %v453_v57 = vadd.f32 %v452_v52, %v308_v47  ;;  %v454_v58 = vpop.f32.mrb[11].mxu1  ;;  %4669 = vmatmul.mubr.f32.gmra.mrb[36].mxu0 %v6429_v49 }
 0x118   :  { %v4085_v60 = vpop.f32.mrb[16].mxu0  ;;  %5165 = vmatpush3.bf16.msra.mxu0 %v5162_v39  ;;  %v318_v8 = vadd.f32 %v4084_v54, %v6375_v53 }
 0x119   :  { %v6440_v61 = vmax.f32 %v453_v57, 0.0  ;;  %v4086_v62 = vpop.f32.mrb[17].mxu0  ;;  %5167 = vmatprep.subr.bf16.mxu0 %v5166_v51 }
 0x11a   :  { %v457_v0 = vpop.f32.mrb[12].mxu1  ;;  %v4087_v1 = vadd.f32 %v4086_v62, %v4085_v60 }
 0x11b   :  { %550 = vst [vmem:[#allocation2 + $0x61] sm:$0xff] %v6440_v61  ;;  %v458_v6 = vadd.f32 %v457_v0, %v313_v59  ;;  %v459_v7 = vpop.f32.mrb[13].mxu1  ;;  %4671 = vmatprep.mubr.f32.mxu0 %v6440_v61 }
 0x11c   :  { %v4088_v9 = vpop.f32.mrb[18].mxu0  ;;  %5169 = vmatpush3.bf16.msra.mxu0 %v5166_v51  ;;  %v323_v21 = vadd.f32 %v4087_v1, %v6375_v53 }
 0x11d   :  { %v6451_v10 = vmax.f32 %v458_v6, 0.0  ;;  %v4089_v11 = vpop.f32.mrb[19].mxu0  ;;  %5171 = vmatprep.subr.bf16.mxu0 %v5170_v63 }
 0x11e   :  { %v462_v14 = vpop.f32.mrb[14].mxu1  ;;  %v4090_v16 = vadd.f32 %v4089_v11, %v4088_v9 }
 0x11f   :  { %551 = vst [vmem:[#allocation2 + $0x71] sm:$0xff] %v6451_v10  ;;  %v6460_v19 = vadd.f32 %v462_v14, %v318_v8  ;;  %v464_v20 = vpop.f32.mrb[15].mxu1  ;;  %4672 = vmatmul.mubr.f32.gmra.mrb[38].mxu0 %v6451_v10 }
 0x120   :  { %v4091_v22 = vpop.f32.mrb[20].mxu0  ;;  %4674 = vmatprep.mubr.f32.mxu0 %v601_v12  ;;  %5173 = vmatpush3.bf16.msra.mxu0 %v5170_v63  ;;  %v328_v31 = vadd.f32 %v4090_v16, %v6375_v53 }
 0x121   :  { %v513_v23 = vmax.f32 %v6460_v19, 0.0  ;;  %v4092_v24 = vpop.f32.mrb[21].mxu0  ;;  %5175 = vmatprep.subr.bf16.mxu0 %v5174_v13 }
 0x122   :  { %v467_v27 = vpop.f32.mrb[16].mxu1  ;;  %v4093_v28 = vadd.f32 %v4092_v24, %v4091_v22 }
 0x123   :  { %552 = vst [vmem:[#allocation2 + $0x81] sm:$0xff] %v513_v23  ;;  %v468_v29 = vadd.f32 %v467_v27, %v323_v21  ;;  %v469_v30 = vpop.f32.mrb[17].mxu1  ;;  %v561_v27 = vld [vmem:[#allocation2] sm:$0xff] }
 0x124   :  { %v4094_v32 = vpop.f32.mrb[22].mxu0  ;;  %5177 = vmatpush3.bf16.msra.mxu0 %v5174_v13  ;;  %v333_v40 = vadd.f32 %v4093_v28, %v6375_v53  ;;  %v3908_v28 = vld [vmem:[%s8635_s3 + $0x110] sm:$0xff] }
 0x125   :  { %v6470_v33 = vmax.f32 %v468_v29, 0.0  ;;  %v4095_v34 = vpop.f32.mrb[23].mxu0  ;;  %5179 = vmatprep.subr.bf16.mxu0 %v6465_v25  ;;  %v3909_v29 = vld [vmem:[%s8635_s3 + $0x118] sm:$0xff] }
 0x126   :  { %v472_v35 = vpop.f32.mrb[18].mxu1  ;;  %v4096_v36 = vadd.f32 %v4095_v34, %v4094_v32 }
 0x127   :  { %553 = vst [vmem:[#allocation2 + $0xa1] sm:$0xff] %v6470_v33  ;;  %v473_v38 = vadd.f32 %v472_v35, %v328_v31  ;;  %v474_v39 = vpop.f32.mrb[19].mxu1  ;;  %4675 = vmatmul.mubr.f32.gmra.mrb[40].mxu0 %v6470_v33  ;;  %v6514_v35 = vld [vmem:[#allocation2 + $0x10] sm:$0xff] }
 0x128   :  { %v4097_v42 = vpop.f32.mrb[24].mxu0  ;;  %v338_v50 = vadd.f32 %v4096_v36, %v6375_v53  ;;  %v3910_v36 = vld [vmem:[%s8635_s3 + $0x120] sm:$0xff] }
 0x129   :  { %v6476_v43 = vmax.f32 %v473_v38, 0.0  ;;  %v4098_v44 = vpop.f32.mrb[25].mxu0  ;;  %v3911_v38 = vld [vmem:[%s8635_s3 + $0x128] sm:$0xff]  ;;  %v6523_v39 = vld [vmem:[#allocation2 + $0x20] sm:$0xff] }
 0x12a   :  { %v477_v45 = vpop.f32.mrb[20].mxu1  ;;  %v4099_v46 = vadd.f32 %v4098_v44, %v4097_v42  ;;  %v6529_v42 = vld [vmem:[#allocation2 + $0x30] sm:$0xff] }
 0x12b   :  { %554 = vst [vmem:[#allocation2 + $0xb1] sm:$0xff] %v6476_v43  ;;  %v478_v47 = vadd.f32 %v477_v45, %v333_v40  ;;  %v479_v48 = vpop.f32.mrb[21].mxu1  ;;  %4677 = vmatprep.mubr.f32.mxu0 %v6476_v43  ;;  %v5186_v40 = vpack.c.bf16 %v3911_v38, %v3910_v36  ;;  %v3912_v44 = vld [vmem:[%s8635_s3 + $0x130] sm:$0xff]  ;;  %v3913_v45 = vld [vmem:[%s8635_s3 + $0x138] sm:$0xff]  ;;  %v3930_v36 = vld [vmem:[%s8635_s3 + $0x1c0] sm:$0xff] }
 0x12c   :  { %v4100_v51 = vpop.f32.mrb[26].mxu0  ;;  %v343_v59 = vadd.f32 %v4099_v46, %v6375_v53  ;;  %v6538_v46 = vld [vmem:[#allocation2 + $0x40] sm:$0xff]  ;;  %v3931_v38 = vld [vmem:[%s8635_s3 + $0x1c8] sm:$0xff] }
 0x12d   :  { %v6481_v52 = vmax.f32 %v478_v47, 0.0  ;;  %v4101_v54 = vpop.f32.mrb[27].mxu0  ;;  %v6541_v47 = vld [vmem:[#allocation2 + $0x50] sm:$0xff]  ;;  %v3914_v48 = vld [vmem:[%s8635_s3 + $0x140] sm:$0xff] }
 0x12e   :  { %v482_v55 = vpop.f32.mrb[22].mxu1  ;;  %v4102_v56 = vadd.f32 %v4101_v54, %v4100_v51  ;;  %v6550_v51 = vld [vmem:[#allocation2 + $0x60] sm:$0xff]  ;;  %v569_v54 = vld [vmem:[#allocation2 + $0x90] sm:$0xff] }
 0x12f   :  { %555 = vst [vmem:[#allocation2 + $0xc1] sm:$0xff] %v6481_v52  ;;  %v483_v57 = vadd.f32 %v482_v55, %v338_v50  ;;  %v484_v58 = vpop.f32.mrb[23].mxu1  ;;  %4678 = vmatmul.mubr.f32.gmra.mrb[42].mxu0 %v6481_v52  ;;  %v3915_v50 = vld [vmem:[%s8635_s3 + $0x148] sm:$0xff] }
 0x130   :  { %v4103_v60 = vpop.f32.mrb[28].mxu0  ;;  %v348_v6 = vadd.f32 %v4102_v56, %v6375_v53  ;;  %v5194_v55 = vpack.c.bf16 %v3915_v50, %v3914_v48  ;;  %v568_v56 = vld [vmem:[#allocation2 + $0x70] sm:$0xff]  ;;  %v3917_v58 = vld [vmem:[%s8635_s3 + $0x158] sm:$0xff] }
 0x131   :  { %v6486_v62 = vmax.f32 %v483_v57, 0.0  ;;  %v4104_v63 = vpop.f32.mrb[29].mxu0  ;;  %v3916_v57 = vld [vmem:[%s8635_s3 + $0x150] sm:$0xff]  ;;  %v3937_v50 = vld [vmem:[%s8635_s3 + $0x1f8] sm:$0xff] }
 0x132   :  { %v487_v0 = vpop.f32.mrb[24].mxu1  ;;  %v4105_v1 = vadd.f32 %v4104_v63, %v4103_v60  ;;  %v570_v60 = vld [vmem:[#allocation2 + $0xa0] sm:$0xff]  ;;  %v3936_v48 = vld [vmem:[%s8635_s3 + $0x1f0] sm:$0xff] }
 0x133   :  { %556 = vst [vmem:[#allocation2 + $0xd1] sm:$0xff] %v6486_v62  ;;  %v488_v2 = vadd.f32 %v487_v0, %v343_v59  ;;  %v489_v5 = vpop.f32.mrb[25].mxu1  ;;  %4680 = vmatprep.mubr.f32.mxu0 %v6486_v62  ;;  %v5198_v59 = vpack.c.bf16 %v3917_v58, %v3916_v57  ;;  %v3918_v63 = vld [vmem:[%s8635_s3 + $0x160] sm:$0xff]  ;;  %v3919_v0 = vld [vmem:[%s8635_s3 + $0x168] sm:$0xff] }
 0x134   :  { %v4106_v7 = vpop.f32.mrb[30].mxu0  ;;  %v353_v16 = vadd.f32 %v4105_v1, %v6375_v53  ;;  %v571_v1 = vld [vmem:[#allocation2 + $0xb0] sm:$0xff] }
 0x135   :  { %v6491_v8 = vmax.f32 %v488_v2, 0.0  ;;  %v4107_v9 = vpop.f32.mrb[31].mxu0  ;;  %v5202_v2 = vpack.c.bf16 %v3919_v0, %v3918_v63 }
 0x136   :  { %v492_v11 = vpop.f32.mrb[26].mxu1  ;;  %v4108_v12 = vadd.f32 %v4107_v9, %v4106_v7  ;;  %v572_v5 = vld [vmem:[#allocation2 + $0xc0] sm:$0xff]  ;;  %v3921_v7 = vld [vmem:[%s8635_s3 + $0x178] sm:$0xff] }
 0x137   :  { %557 = vst [vmem:[#allocation2 + $0xe1] sm:$0xff] %v6491_v8  ;;  %v493_v13 = vadd.f32 %v492_v11, %v348_v6  ;;  %v494_v14 = vpop.f32.mrb[27].mxu1  ;;  %4681 = vmatmul.mubr.f32.gmra.mrb[44].mxu0 %v6491_v8  ;;  %v3920_v6 = vld [vmem:[%s8635_s3 + $0x170] sm:$0xff] }
 0x138   :  { %v358_v22 = vadd.f32 %v4108_v12, %v6375_v53  ;;  %v5182_v53 = vpack.c.bf16 %v3909_v29, %v3908_v28  ;;  %v5206_v11 = vpack.c.bf16 %v3921_v7, %v3920_v6  ;;  %v3923_v14 = vld [vmem:[%s8635_s3 + $0x188] sm:$0xff]  ;;  %v3926_v28 = vld [vmem:[%s8635_s3 + $0x1a0] sm:$0xff] }
 0x139   :  { %v6496_v17 = vmax.f32 %v493_v13, 0.0  ;;  %v3922_v13 = vld [vmem:[%s8635_s3 + $0x180] sm:$0xff]  ;;  %v3927_v29 = vld [vmem:[%s8635_s3 + $0x1a8] sm:$0xff] }
 0x13a   :  { %v497_v18 = vpop.f32.mrb[28].mxu1  ;;  %v573_v9 = vld [vmem:[#allocation2 + $0xd0] sm:$0xff] }
 0x13b   :  { %558 = vst [vmem:[#allocation2 + $0xf1] sm:$0xff] %v6496_v17  ;;  %v498_v20 = vadd.f32 %v497_v18, %v353_v16  ;;  %v499_v21 = vpop.f32.mrb[29].mxu1  ;;  %4683 = vmatprep.mubr.f32.mxu0 %v6496_v17  ;;  %v5210_v18 = vpack.c.bf16 %v3923_v14, %v3922_v13 }
 0x13c   :  { %v3924_v21 = vld [vmem:[%s8635_s3 + $0x190] sm:$0xff] }
 0x13d   :  { %v6501_v24 = vmax.f32 %v498_v20, 0.0 }
 0x13e   :  { %v502_v30 = vpop.f32.mrb[30].mxu1  ;;  %v574_v12 = vld [vmem:[#allocation2 + $0xe0] sm:$0xff] }
 0x13f   :  { %559 = vst [vmem:[#allocation2 + $0x101] sm:$0xff] %v6501_v24  ;;  %4684 = vmatmul.mubr.f32.gmra.mrb[46].mxu0 %v6501_v24  ;;  %v6511_v31 = vadd.f32 %v502_v30, %v358_v22  ;;  %v504_v32 = vpop.f32.mrb[31].mxu1  ;;  %v3925_v22 = vld [vmem:[%s8635_s3 + $0x198] sm:$0xff]  ;;  %v5218_v30 = vpack.c.bf16 %v3927_v29, %v3926_v28 }
 0x140   :  { %4718 = vmatprep.mubr.f32.mxu0 %v561_v27  ;;  %v5214_v27 = vpack.c.bf16 %v3925_v22, %v3924_v21  ;;  %v3928_v32 = vld [vmem:[%s8635_s3 + $0x1b0] sm:$0xff] }
 0x141   :  { %v521_v34 = vmax.f32 %v6511_v31, 0.0 }
 0x142   :  { %v575_v16 = vld [vmem:[#allocation2 + $0xf0] sm:$0xff] }
 0x143   :  { %4719 = vmatmul.mubr.f32.vlgmr.msra.gmra.mrb[32].mxu0 %v6514_v35  ;;  %560 = vst [vmem:[#allocation2 + $0x111] sm:$0xff] %v521_v34 }
 0x144   :  { %5181 = vmatpush3.bf16.msra.mxu0 %v6465_v25  ;;  %4721 = vmatprep.mubr.f32.mxu0 %v6523_v39  ;;  %v5190_v25 = vpack.c.bf16 %v3913_v45, %v3912_v44  ;;  %v3933_v44 = vld [vmem:[%s8635_s3 + $0x1d8] sm:$0xff] }
 0x145   :  { %5183 = vmatprep.subr.bf16.mxu0 %v5182_v53 }
 0x146   :  { %v576_v20 = vld [vmem:[#allocation2 + $0x100] sm:$0xff] }
 0x147   :  { %4722 = vmatmul.mubr.f32.gmra.mrb[34].mxu0 %v6529_v42 }
 0x148   :  { %5185 = vmatpush3.bf16.msra.mxu0 %v5182_v53  ;;  %4724 = vmatprep.mubr.f32.mxu0 %v6538_v46  ;;  %v3929_v53 = vld [vmem:[%s8635_s3 + $0x1b8] sm:$0xff] }
 0x149   :  { %5187 = vmatprep.subr.bf16.mxu0 %v5186_v40 }
 0x14b   :  { %4725 = vmatmul.mubr.f32.gmra.mrb[36].mxu0 %v6541_v47 }
 0x14c   :  { %5189 = vmatpush3.bf16.msra.mxu0 %v5186_v40  ;;  %4727 = vmatprep.mubr.f32.mxu0 %v6550_v51  ;;  %v923_v40 = vld [vmem:[#allocation2 + $0x80] sm:$0xff] }
 0x14d   :  { %5191 = vmatprep.subr.bf16.mxu0 %v5190_v25 }
 0x14f   :  { %4728 = vmatmul.mubr.f32.gmra.mrb[38].mxu0 %v568_v56 }
 0x150   :  { %5193 = vmatpush3.bf16.msra.mxu0 %v5190_v25  ;;  %4730 = vmatprep.mubr.f32.mxu0 %v569_v54  ;;  %v3935_v25 = vld [vmem:[%s8635_s3 + $0x1e8] sm:$0xff]  ;;  %v931_v54 = vld [vmem:[#allocation2 + $0x110] sm:$0xff] }
 0x151   :  { %5195 = vmatprep.subr.bf16.mxu0 %v5194_v55 }
 0x153   :  { %4731 = vmatmul.mubr.f32.gmra.mrb[40].mxu0 %v570_v60 }
 0x154   :  { %5197 = vmatpush3.bf16.msra.mxu0 %v5194_v55  ;;  %4733 = vmatprep.mubr.f32.mxu0 %v571_v1 }
 0x155   :  { %5199 = vmatprep.subr.bf16.mxu0 %v5198_v59 }
 0x157   :  { %4734 = vmatmul.mubr.f32.gmra.mrb[42].mxu0 %v572_v5 }
 0x158   :  { %5201 = vmatpush3.bf16.msra.mxu0 %v5198_v59  ;;  %4736 = vmatprep.mubr.f32.mxu0 %v573_v9 }
 0x159   :  { %5203 = vmatprep.subr.bf16.mxu0 %v5202_v2 }
 0x15b   :  { %4737 = vmatmul.mubr.f32.gmra.mrb[44].mxu0 %v574_v12 }
 0x15c   :  { %5205 = vmatpush3.bf16.msra.mxu0 %v5202_v2  ;;  %4739 = vmatprep.mubr.f32.mxu0 %v575_v16 }
 0x15d   :  { %5207 = vmatprep.subr.bf16.mxu0 %v5206_v11 }
 0x15f   :  { %4740 = vmatmul.mubr.f32.gmra.mrb[46].mxu0 %v576_v20 }
 0x160   :  { %5209 = vmatpush3.bf16.msra.mxu0 %v5206_v11  ;;  %4774 = vmatprep.mubr.f32.mxu0 %v6514_v35  ;;  %v5222_v35 = vpack.c.bf16 %v3929_v53, %v3928_v32 }
 0x161   :  { %5211 = vmatprep.subr.bf16.mxu0 %v5210_v18 }
 0x163   :  { %4775 = vmatmul.mubr.f32.vlgmr.msra.gmra.mrb[32].mxu0 %v6523_v39  ;;  %v5226_v39 = vpack.c.bf16 %v3931_v38, %v3930_v36 }
 0x164   :  { %5213 = vmatpush3.bf16.msra.mxu0 %v5210_v18  ;;  %4777 = vmatprep.mubr.f32.mxu0 %v6529_v42  ;;  %v3932_v42 = vld [vmem:[%s8635_s3 + $0x1d0] sm:$0xff] }
 0x165   :  { %5215 = vmatprep.subr.bf16.mxu0 %v5214_v27  ;;  %v5230_v45 = vpack.c.bf16 %v3933_v44, %v3932_v42 }
 0x167   :  { %4778 = vmatmul.mubr.f32.gmra.mrb[34].mxu0 %v6538_v46  ;;  %v3934_v46 = vld [vmem:[%s8635_s3 + $0x1e0] sm:$0xff]  ;;  %s5841_s3 = smov 80  }
 0x168   :  { %5217 = vmatpush3.bf16.msra.mxu0 %v5214_v27  ;;  %4780 = vmatprep.mubr.f32.mxu0 %v6541_v47  ;;  %v5234_v47 = vpack.c.bf16 %v3935_v25, %v3934_v46 }
 0x169   :  { %5219 = vmatprep.subr.bf16.mxu0 %v5218_v30 }
 0x16b   :  { %4781 = vmatmul.mubr.f32.gmra.mrb[36].mxu0 %v6550_v51  ;;  %v5238_v51 = vpack.c.bf16 %v3937_v50, %v3936_v48 }
 0x16c   :  { %5221 = vmatpush3.bf16.msra.mxu0 %v5218_v30  ;;  %4783 = vmatprep.mubr.f32.mxu0 %v568_v56 }
 0x16d   :  { %5223 = vmatprep.subr.bf16.mxu0 %v5222_v35 }
 0x16f   :  { %4784 = vmatmul.mubr.f32.gmra.mrb[38].mxu0 %v923_v40 }
 0x170   :  { %5225 = vmatpush3.bf16.msra.mxu0 %v5222_v35  ;;  %4786 = vmatprep.mubr.f32.mxu0 %v570_v60 }
 0x171   :  { %5227 = vmatprep.subr.bf16.mxu0 %v5226_v39 }
 0x173   :  { %4787 = vmatmul.mubr.f32.gmra.mrb[40].mxu0 %v571_v1 }
 0x174   :  { %5229 = vmatpush3.bf16.msra.mxu0 %v5226_v39  ;;  %4789 = vmatprep.mubr.f32.mxu0 %v572_v5 }
 0x175   :  { %5231 = vmatprep.subr.bf16.mxu0 %v5230_v45 }
 0x177   :  { %4790 = vmatmul.mubr.f32.gmra.mrb[42].mxu0 %v573_v9 }
 0x178   :  { %5233 = vmatpush3.bf16.msra.mxu0 %v5230_v45  ;;  %4792 = vmatprep.mubr.f32.mxu0 %v574_v12 }
 0x179   :  { %5235 = vmatprep.subr.bf16.mxu0 %v5234_v47 }
 0x17b   :  { %4793 = vmatmul.mubr.f32.gmra.mrb[44].mxu0 %v575_v16 }
 0x17c   :  { %5237 = vmatpush3.bf16.msra.mxu0 %v5234_v47  ;;  %4795 = vmatprep.mubr.f32.mxu0 %v576_v20 }
 0x17d   :  { %5239 = vmatprep.subr.bf16.mxu0 %v5238_v51 }
 0x17f   :  { %4796 = vmatmul.mubr.f32.gmra.mrb[46].mxu0 %v931_v54 }
 0x180   :  { %5241 = vmatpush3.bf16.msra.mxu0 %v5238_v51  ;;  %4830 = vmatprep.mubr.f32.mxu0 %v6385_v4  ;;  %v1371_v51 = vlaneseq }
 0x182   :  { %v1372_v54 = vshrl.u32 %v1371_v51, 7 }
 0x183   :  { %4831 = vmatmul.mubr.f32.vlgmr.msra.gmra.mrb[32].mxu0 %v6396_v15 }
 0x184   :  { %4833 = vmatprep.mubr.f32.mxu0 %v6407_v26 }
 0x187   :  { %4834 = vmatmul.mubr.f32.gmra.mrb[34].mxu0 %v6418_v37 }
 0x188   :  { %4836 = vmatprep.mubr.f32.mxu0 %v6429_v49 }
 0x18b   :  { %4837 = vmatmul.mubr.f32.gmra.mrb[36].mxu0 %v6440_v61 }
 0x18c   :  { %4839 = vmatprep.mubr.f32.mxu0 %v6451_v10 }
 0x18f   :  { %4840 = vmatmul.mubr.f32.gmra.mrb[38].mxu0 %v513_v23 }
 0x190   :  { %4842 = vmatprep.mubr.f32.mxu0 %v6470_v33 }
 0x193   :  { %4843 = vmatmul.mubr.f32.gmra.mrb[40].mxu0 %v6476_v43 }
 0x194   :  { %4845 = vmatprep.mubr.f32.mxu0 %v6481_v52 }
 0x197   :  { %4846 = vmatmul.mubr.f32.gmra.mrb[42].mxu0 %v6486_v62 }
 0x198   :  { %4848 = vmatprep.mubr.f32.mxu0 %v6491_v8 }
 0x19b   :  { %4849 = vmatmul.mubr.f32.gmra.mrb[44].mxu0 %v6496_v17 }
 0x19c   :  { %4851 = vmatprep.mubr.f32.mxu0 %v6501_v24 }
 0x19f   :  { %4852 = vmatmul.mubr.f32.gmra.mrb[46].mxu0 %v521_v34 }
 0x256   :  { %v6647_v4 = vpop.f32.mrb[32].mxu0 }
 0x257   :  { %v1306_v15 = vsel %vm1304_vm1, %v6647_v4, 0.0  ;;  %v6651_v26 = vpop.f32.mrb[33].mxu0 }
 0x258   :  { %v1305_v37 = vsel %vm1304_vm1, %v6651_v26, 0.0 }
 0x259   :  { %v1307_v49 = vadd.f32 %v1306_v15, %v1305_v37 }
 0x25a   :  { %v6655_v61 = vpop.f32.mrb[34].mxu0 }
 0x25b   :  { %v6657_v10 = vpop.f32.mrb[35].mxu0  ;;  %v1310_v33 = vsel %vm1304_vm1, %v6655_v61, 0.0 }
 0x25c   :  { %v1308_v19 = vsel %vm1304_vm1, %v6657_v10, 0.0 }
 0x25d   :  { %v1309_v23 = vadd.f32 %v1308_v19, %v1307_v49  ;;  %v6724_v19 = vsub.s32 0, %v1372_v54 }
 0x25e   :  { %v6663_v43 = vpop.f32.mrb[36].mxu0 }
 0x25f   :  { %v6665_v52 = vpop.f32.mrb[37].mxu0  ;;  %v1311_v62 = vadd.f32 %v1310_v33, %v1309_v23  ;;  %v1314_v24 = vsel %vm1304_vm1, %v6663_v43, 0.0 }
 0x260   :  { %v1312_v8 = vsel %vm1304_vm1, %v6665_v52, 0.0 }
 0x261   :  { %v1313_v17 = vadd.f32 %v1312_v8, %v1311_v62 }
 0x262   :  { %v6671_v31 = vpop.f32.mrb[38].mxu0 }
 0x263   :  { %v6673_v34 = vpop.f32.mrb[39].mxu0  ;;  %v1315_v55 = vadd.f32 %v1314_v24, %v1313_v17  ;;  %v1318_v58 = vsel %vm1304_vm1, %v6671_v31, 0.0 }
 0x264   :  { %v1316_v56 = vsel %vm1304_vm1, %v6673_v34, 0.0 }
 0x265   :  { %v1317_v57 = vadd.f32 %v1316_v56, %v1315_v55 }
 0x266   :  { %v6679_v59 = vpop.f32.mrb[40].mxu0 }
 0x267   :  { %v6681_v60 = vpop.f32.mrb[41].mxu0  ;;  %v1319_v63 = vadd.f32 %v1318_v58, %v1317_v57  ;;  %v1322_v2 = vsel %vm1304_vm1, %v6679_v59, 0.0 }
 0x268   :  { %v1320_v0 = vsel %vm1304_vm1, %v6681_v60, 0.0 }
 0x269   :  { %v1321_v1 = vadd.f32 %v1320_v0, %v1319_v63 }
 0x26a   :  { %v6687_v5 = vpop.f32.mrb[42].mxu0 }
 0x26b   :  { %v6689_v6 = vpop.f32.mrb[43].mxu0  ;;  %v1323_v7 = vadd.f32 %v1322_v2, %v1321_v1  ;;  %v1326_v12 = vsel %vm1304_vm1, %v6687_v5, 0.0 }
 0x26c   :  { %v1324_v9 = vsel %vm1304_vm1, %v6689_v6, 0.0 }
 0x26d   :  { %v1325_v11 = vadd.f32 %v1324_v9, %v1323_v7 }
 0x26e   :  { %v6695_v13 = vpop.f32.mrb[44].mxu0 }
 0x26f   :  { %v6697_v14 = vpop.f32.mrb[45].mxu0  ;;  %v1327_v16 = vadd.f32 %v1326_v12, %v1325_v11  ;;  %v1330_v21 = vsel %vm1304_vm1, %v6695_v13, 0.0 }
 0x270   :  { %v1328_v18 = vsel %vm1304_vm1, %v6697_v14, 0.0 }
 0x271   :  { %v1329_v20 = vadd.f32 %v1328_v18, %v1327_v16 }
 0x272   :  { %v6703_v22 = vpop.f32.mrb[46].mxu0 }
 0x273   :  { %v6705_v27 = vpop.f32.mrb[47].mxu0  ;;  %v1331_v28 = vadd.f32 %v1330_v21, %v1329_v20  ;;  %v1334_v32 = vsel %vm1304_vm1, %v6703_v22, 0.0 }
 0x274   :  { %v1332_v29 = vsel %vm1304_vm1, %v6705_v27, 0.0 }
 0x275   :  { %v1333_v30 = vadd.f32 %v1332_v29, %v1331_v28 }
 0x277   :  { %v1335_v53 = vadd.f32 %v1334_v32, %v1333_v30 }
 0x279   :  { %v1336_v35 = vrot.slane %v1335_v53, 4 }
 0x27b   :  { %v1337_v36 = vadd.f32 %v1336_v35, %v1335_v53 }
 0x27d   :  { %v1338_v38 = vrot.slane %v1337_v36, 2 }
 0x27f   :  { %v1339_v39 = vadd.f32 %v1338_v38, %v1337_v36 }
 0x281   :  { %v1340_v40 = vrot.slane %v1339_v39, 1 }
 0x283   :  { %v1341_v42 = vadd.f32 %v1340_v40, %v1339_v39 }
 0x285   :  { %1351 = vrot.lane.b32.xlu1 %v1341_v42, %s5841_s3  ;;  %1343 = vrot.lane.b32.xlu0 %v1341_v42, %s5842_s21 }
 0x289   :  { %1347 = vrot.lane.b32.xlu0 %v1341_v42, %s5843_s22 }
 0x2f7   :  { %v1344_v44 = vpop.permute.xlu0 %1343  ;;  %v1352_v47 = vpop.permute.xlu1 %1351 }
 0x2f8   :  { %v1346_v45 = vadd.f32 %v1344_v44, %v1341_v42 }
 0x2fb   :  { %v1348_v46 = vpop.permute.xlu0 %1347 }
 0x2fc   :  { %v1350_v25 = vadd.f32 %v1348_v46, %v1346_v45 }
 0x2fe   :  { %v1354_v48 = vadd.f32 %v1352_v47, %v1350_v25 }
 0x300   :  { %v6714_v50 = vmul.f32 0.001953125, %v1354_v48 }
 0x302   :  { %1360 = vrot.lane.b32.xlu0 %v6714_v50, %s5844_s23  ;;  %1357 = vrot.lane.b32.xlu1 %v6714_v50, %s5845_s24 }
 0x306   :  { %1363 = vrot.lane.b32.xlu1 %v6714_v50, %s5846_s25 }
 0x374   :  { %v1358_v15 = vpop.permute.xlu1 %1357  ;;  %v1361_v37 = vpop.permute.xlu0 %1360 }
 0x375   :  { %v1367_v49 = vsel %vm1366_vm2, %v6714_v50, %v1358_v15 }
 0x376   :  { %v1369_v23 = vsel %vm1368_vm3, %v1367_v49, %v1361_v37 }
 0x378   :  { %v1364_v33 = vpop.permute.xlu1 %1363 }
 0x379   :  { %v1370_v62 = vsel %vm167_vm0, %v1369_v23, %v1364_v33 }
 0x37a   :  { %v1374_v8 = vrot.slane %v1370_v62, %v6724_v19 }
 0x37c   :  { %v1375_v17 = vsub.f32 %v6651_v26, %v1374_v8  ;;  %v1376_v24 = vsub.f32 %v6647_v4, %v1374_v8  ;;  %v1377_v55 = vsub.f32 %v6657_v10, %v1374_v8  ;;  %v1378_v56 = vsub.f32 %v6655_v61, %v1374_v8 }
 0x37d   :  { %v1379_v63 = vsub.f32 %v6665_v52, %v1374_v8  ;;  %v1380_v1 = vsub.f32 %v6663_v43, %v1374_v8  ;;  %v1381_v12 = vsub.f32 %v6673_v34, %v1374_v8  ;;  %v1382_v21 = vsub.f32 %v6671_v31, %v1374_v8 }
 0x37e   :  { %v1391_v57 = vmul.f32 %v1375_v17, %v1375_v17  ;;  %v1392_v58 = vmul.f32 %v1376_v24, %v1376_v24  ;;  %v1393_v0 = vmul.f32 %v1377_v55, %v1377_v55  ;;  %v1394_v2 = vmul.f32 %v1378_v56, %v1378_v56 }
 0x37f   :  { %v1395_v16 = vmul.f32 %v1379_v63, %v1379_v63  ;;  %v1396_v28 = vmul.f32 %v1380_v1, %v1380_v1  ;;  %v1383_v32 = vsub.f32 %v6681_v60, %v1374_v8  ;;  %v1397_v53 = vmul.f32 %v1381_v12, %v1381_v12 }
 0x380   :  { %v1407_v7 = vsel %vm1304_vm1, %v1391_v57, 0.0  ;;  %v1408_v9 = vsel %vm1304_vm1, %v1392_v58, 0.0  ;;  %v1410_v18 = vsel %vm1304_vm1, %v1393_v0, 0.0  ;;  %v1412_v29 = vsel %vm1304_vm1, %v1394_v2, 0.0 }
 0x381   :  { %v1409_v11 = vadd.f32 %v1408_v9, %v1407_v7  ;;  %v1414_v35 = vsel %vm1304_vm1, %v1395_v16, 0.0  ;;  %v1384_v38 = vsub.f32 %v6679_v59, %v1374_v8  ;;  %v1398_v39 = vmul.f32 %v1382_v21, %v1382_v21 }
 0x382   :  { %v1416_v40 = vsel %vm1304_vm1, %v1396_v28, 0.0  ;;  %v1385_v44 = vsub.f32 %v6689_v6, %v1374_v8  ;;  %v1399_v45 = vmul.f32 %v1383_v32, %v1383_v32  ;;  %v1418_v46 = vsel %vm1304_vm1, %v1397_v53, 0.0 }
 0x383   :  { %v1411_v20 = vadd.f32 %v1410_v18, %v1409_v11  ;;  %v1386_v47 = vsub.f32 %v6687_v5, %v1374_v8  ;;  %v1400_v48 = vmul.f32 %v1384_v38, %v1384_v38  ;;  %v1420_v51 = vsel %vm1304_vm1, %v1398_v39, 0.0  ;;  %v3938_v38 = vld [vmem:[%s8638_s6 + $0x40] sm:$0xff]  ;;  %v3939_v39 = vld [vmem:[%s8638_s6 + $0x48] sm:$0xff] }
 0x384   :  { %v1387_v15 = vsub.f32 %v6697_v14, %v1374_v8  ;;  %v1401_v37 = vmul.f32 %v1385_v44, %v1385_v44  ;;  %v1422_v49 = vsel %vm1304_vm1, %v1399_v45, 0.0  ;;  %v1388_v33 = vsub.f32 %v6695_v13, %v1374_v8  ;;  %v3941_v44 = vld [vmem:[%s8638_s6 + $0x58] sm:$0xff] }
 0x385   :  { %v1413_v30 = vadd.f32 %v1412_v29, %v1411_v20  ;;  %v1402_v62 = vmul.f32 %v1386_v47, %v1386_v47  ;;  %v1424_v17 = vsel %vm1304_vm1, %v1400_v48, 0.0  ;;  %v1389_v55 = vsub.f32 %v6705_v27, %v1374_v8 }
 0x386   :  { %v1403_v56 = vmul.f32 %v1387_v15, %v1387_v15  ;;  %v1426_v57 = vsel %vm1304_vm1, %v1401_v37, 0.0  ;;  %v1390_v63 = vsub.f32 %v6703_v22, %v1374_v8  ;;  %v1404_v0 = vmul.f32 %v1388_v33, %v1388_v33 }
 0x387   :  { %v1415_v36 = vadd.f32 %v1414_v35, %v1413_v30  ;;  %v1428_v1 = vsel %vm1304_vm1, %v1402_v62, 0.0  ;;  %v1405_v7 = vmul.f32 %v1389_v55, %v1389_v55  ;;  %v1458_v62 = vld [vmem:[%s8636_s4] sm:$0x1] }
 0x388   :  { %v1430_v9 = vsel %vm1304_vm1, %v1403_v56, 0.0  ;;  %v1406_v12 = vmul.f32 %v1390_v63, %v1390_v63  ;;  %v1432_v16 = vsel %vm1304_vm1, %v1404_v0, 0.0  ;;  %v1462_v55 = vld [vmem:[%s8637_s5] sm:$0x1]  ;;  %v3944_v56 = vld [vmem:[%s8638_s6 + $0x70] sm:$0xff] }
 0x389   :  { %v1417_v42 = vadd.f32 %v1416_v40, %v1415_v36  ;;  %v1434_v20 = vsel %vm1304_vm1, %v1405_v7, 0.0  ;;  %v3940_v40 = vld [vmem:[%s8638_s6 + $0x50] sm:$0xff]  ;;  %v1612_v7 = vld [vmem:[%s8638_s6 + $0x8] sm:$0xff] }
 0x38a   :  { %v1436_v28 = vsel %vm1304_vm1, %v1406_v12, 0.0  ;;  %v5246_v45 = vpack.c.bf16 %v3941_v44, %v3940_v40 }
 0x38b   :  { %v1419_v25 = vadd.f32 %v1418_v46, %v1417_v42  ;;  %v5242_v42 = vpack.c.bf16 %v3939_v39, %v3938_v38  ;;  %v3942_v46 = vld [vmem:[%s8638_s6 + $0x60] sm:$0xff] }
 0x38d   :  { %v1421_v54 = vadd.f32 %v1420_v51, %v1419_v25  ;;  %v3943_v25 = vld [vmem:[%s8638_s6 + $0x68] sm:$0xff]  ;;  %5243 = vmatprep.subr.bf16.mxu1 %v5242_v42 }
 0x38e   :  { %5245 = vmatpush3.bf16.msra.mxu1 %v5242_v42  ;;  %v5250_v47 = vpack.c.bf16 %v3943_v25, %v3942_v46 }
 0x38f   :  { %v1423_v23 = vadd.f32 %v1422_v49, %v1421_v54  ;;  %5247 = vmatprep.subr.bf16.mxu1 %v5246_v45 }
 0x391   :  { %v1425_v24 = vadd.f32 %v1424_v17, %v1423_v23 }
 0x392   :  { %5249 = vmatpush3.bf16.msra.mxu1 %v5246_v45 }
 0x393   :  { %v1427_v58 = vadd.f32 %v1426_v57, %v1425_v24  ;;  %5251 = vmatprep.subr.bf16.mxu1 %v5250_v47  ;;  %v3945_v57 = vld [vmem:[%s8638_s6 + $0x78] sm:$0xff] }
 0x394   :  { %v5254_v0 = vpack.c.bf16 %v3945_v57, %v3944_v56 }
 0x395   :  { %v1429_v2 = vadd.f32 %v1428_v1, %v1427_v58 }
 0x396   :  { %5253 = vmatpush3.bf16.msra.mxu1 %v5250_v47 }
 0x397   :  { %v1431_v11 = vadd.f32 %v1430_v9, %v1429_v2  ;;  %5255 = vmatprep.subr.bf16.mxu1 %v5254_v0 }
 0x399   :  { %v1433_v18 = vadd.f32 %v1432_v16, %v1431_v11 }
 0x39a   :  { %5257 = vmatpush3.bf16.msra.mxu1 %v5254_v0 }
 0x39b   :  { %v1435_v21 = vadd.f32 %v1434_v20, %v1433_v18 }
 0x39d   :  { %v1437_v29 = vadd.f32 %v1436_v28, %v1435_v21 }
 0x39f   :  { %v1438_v30 = vrot.slane %v1437_v29, 4 }
 0x3a1   :  { %v1439_v8 = vadd.f32 %v1438_v30, %v1437_v29 }
 0x3a3   :  { %v1440_v32 = vrot.slane %v1439_v8, 2 }
 0x3a5   :  { %v1441_v53 = vadd.f32 %v1440_v32, %v1439_v8 }
 0x3a7   :  { %v1442_v35 = vrot.slane %v1441_v53, 1 }
 0x3a9   :  { %v1443_v36 = vadd.f32 %v1442_v35, %v1441_v53 }
 0x3ab   :  { %1449 = vrot.lane.b32.xlu1 %v1443_v36, %s5843_s22  ;;  %1445 = vrot.lane.b32.xlu0 %v1443_v36, %s5842_s21 }
 0x3af   :  { %1453 = vrot.lane.b32.xlu0 %v1443_v36, %s5841_s3  ;;  %s5849_s3 = smov [#allocation4]  }
 0x3b0   :  { %s3865_s21 = sshll.u32 %s5849_s3, 4  ;;  %s3866_s21 = int_to_ptr.vmem [resolvable:$true] %s3865_s21 }
 0x3b1   :  { %s5815_s26 = scalar_lea.vmem %s3866_s21, 32  ;;  %p5820_p1 = scmp.lt.s32.totalorder %s3866_s21, %s3866_s21 }
 0x3b2   :  { %p5816_p0 = scmp.ne.s32.totalorder %s3866_s21, %s5815_s26  ;;  %p5821_p2 = scmp.lt.s32.totalorder %s5815_s26, %s5815_s26 }
 0x3b4   :  { %p5822_p3 = por %p5821_p2, %p5820_p1 }
 0x3b6   :  { %p5823_p4 = pnand %p5822_p3, %p5816_p0 }
 0x41d   :  { %v1446_v48 = vpop.permute.xlu0 %1445  ;;  %v1450_v54 = vpop.permute.xlu1 %1449 }
 0x41e   :  { %v1448_v51 = vadd.f32 %v1446_v48, %v1443_v36 }
 0x420   :  { %v1452_v15 = vadd.f32 %v1450_v54, %v1448_v51 }
 0x421   :  { %v1454_v37 = vpop.permute.xlu0 %1453 }
 0x422   :  { %v1456_v49 = vadd.f32 %v1454_v37, %v1452_v15 }
 0x424   :  { %v1457_v23 = vmul.f32 0.001953125, %v1456_v49 }
 0x426   :  { %v1459_v33 = vadd.f32 1e-05, %v1457_v23 }
 0x428   :  { %5813 = vrsqrt.f32 %v1459_v33 }
 0x432   :  { %v5814_v17 = vpop.eup %5813 }
 0x433   :  { %v1461_v24 = vmul.f32 %v5814_v17, %v1458_v62 }
 0x435   :  { %v1469_v58 = vrot.slane %v1461_v24, %v6724_v19  ;;  %v1463_v63 = vmul.f32 %v1461_v24, %v6714_v50  ;;  %v1611_v50 = vld [vmem:[%s8638_s6] sm:$0xff] }
 0x436   :  { %v6849_v9 = vpack.c.bf16 %v1612_v7, %v1611_v50 }
 0x437   :  { %1473 = vrot.lane.b32.xlu0 %v1469_v58, %s5844_s23  ;;  %1470 = vrot.lane.b32.xlu1 %v1469_v58, %s5845_s24  ;;  %v1464_v1 = vsub.f32 %v1462_v55, %v1463_v63 }
 0x438   :  { %5259 = vmatprep.subr.bf16.mxu1 %v6849_v9 }
 0x439   :  { %v1486_v2 = vrot.slane %v1464_v1, %v6724_v19 }
 0x43b   :  { %1476 = vrot.lane.b32.xlu1 %v1469_v58, %s5846_s25  ;;  %1487 = vrot.lane.b32.xlu0 %v1486_v2, %s5845_s24 }
 0x43f   :  { %1490 = vrot.lane.b32.xlu1 %v1486_v2, %s5844_s23  ;;  %1493 = vrot.lane.b32.xlu0 %v1486_v2, %s5846_s25 }
 0x4a9   :  { %v1474_v11 = vpop.permute.xlu0 %1473  ;;  %v1471_v12 = vpop.permute.xlu1 %1470 }
 0x4aa   :  { %v1479_v16 = vsel %vm1366_vm2, %v1461_v24, %v1471_v12  ;;  %v1613_v12 = vld [vmem:[%s8638_s6 + $0x10] sm:$0xff] }
 0x4ab   :  { %v1480_v18 = vsel %vm1368_vm3, %v1479_v16, %v1474_v11  ;;  %v1614_v16 = vld [vmem:[%s8638_s6 + $0x18] sm:$0xff] }
 0x4ad   :  { %v1477_v20 = vpop.permute.xlu1 %1476  ;;  %v1488_v21 = vpop.permute.xlu0 %1487 }
 0x4ae   :  { %v1481_v28 = vsel %vm167_vm0, %v1480_v18, %v1477_v20  ;;  %v1496_v30 = vsel %vm1366_vm2, %v1464_v1, %v1488_v21  ;;  %v5262_v21 = vpack.c.bf16 %v1614_v16, %v1613_v12  ;;  %v4008_v12 = vld [vmem:[%s8638_s6 + $0xf0] sm:$0xff]  ;;  %v4009_v16 = vld [vmem:[%s8638_s6 + $0xf8] sm:$0xff] }
 0x4af   :  { %v1502_v29 = vrot.slane %v1481_v28, %v6724_v19  ;;  %v1615_v28 = vld [vmem:[%s8638_s6 + $0x20] sm:$0xff] }
 0x4b1   :  { %v1491_v8 = vpop.permute.xlu1 %1490  ;;  %v1494_v32 = vpop.permute.xlu0 %1493  ;;  %v1503_v53 = vmul.f32 %v1502_v29, %v6651_v26  ;;  %v1504_v35 = vmul.f32 %v6647_v4, %v1502_v29  ;;  %v1505_v36 = vmul.f32 %v1502_v29, %v6657_v10  ;;  %v1506_v39 = vmul.f32 %v6655_v61, %v1502_v29 }
 0x4b2   :  { %v1497_v38 = vsel %vm1368_vm3, %v1496_v30, %v1491_v8  ;;  %v1507_v40 = vmul.f32 %v1502_v29, %v6665_v52  ;;  %v1508_v42 = vmul.f32 %v6663_v43, %v1502_v29  ;;  %v1509_v45 = vmul.f32 %v1502_v29, %v6673_v34 }
 0x4b3   :  { %v1498_v44 = vsel %vm167_vm0, %v1497_v38, %v1494_v32  ;;  %v1510_v46 = vmul.f32 %v6671_v31, %v1502_v29  ;;  %v1511_v26 = vmul.f32 %v1502_v29, %v6681_v60  ;;  %v1512_v10 = vmul.f32 %v6679_v59, %v1502_v29 }
 0x4b4   :  { %v1522_v4 = vrot.slane %v1498_v44, %v6724_v19  ;;  %v1513_v25 = vmul.f32 %v1502_v29, %v6689_v6  ;;  %v1514_v61 = vmul.f32 %v6687_v5, %v1502_v29  ;;  %v1515_v52 = vmul.f32 %v1502_v29, %v6697_v14 }
 0x4b5   :  { %v1516_v43 = vmul.f32 %v6695_v13, %v1502_v29  ;;  %v1517_v47 = vmul.f32 %v1502_v29, %v6705_v27  ;;  %v1518_v34 = vmul.f32 %v6703_v22, %v1502_v29  ;;  %v1616_v29 = vld [vmem:[%s8638_s6 + $0x28] sm:$0xff] }
 0x4b6   :  { %v1523_v48 = vadd.f32 %v1522_v4, %v1503_v53  ;;  %v1524_v31 = vadd.f32 %v1522_v4, %v1504_v35  ;;  %v1525_v51 = vadd.f32 %v1522_v4, %v1505_v36  ;;  %v1526_v60 = vadd.f32 %v1522_v4, %v1506_v39  ;;  %v1617_v53 = vld [vmem:[%s8638_s6 + $0x30] sm:$0xff]  ;;  %v1618_v35 = vld [vmem:[%s8638_s6 + $0x38] sm:$0xff]  ;;  %v3978_v39 = vld [vmem:[%s8638_s6 + $0x80] sm:$0xff] }
 0x4b7   :  { %v1527_v54 = vadd.f32 %v1522_v4, %v1507_v40  ;;  %v1528_v19 = vadd.f32 %v1522_v4, %v1508_v42  ;;  %v1529_v15 = vadd.f32 %v1522_v4, %v1509_v45  ;;  %v1530_v59 = vadd.f32 %v1522_v4, %v1510_v46  ;;  %v3979_v40 = vld [vmem:[%s8638_s6 + $0x88] sm:$0xff] }
 0x4b8   :  { %v1539_v37 = vmax.f32 %v1523_v48, 0.0  ;;  %v1540_v6 = vmax.f32 %v1524_v31, 0.0  ;;  %v1541_v49 = vmax.f32 %v1525_v51, 0.0  ;;  %v1542_v5 = vmax.f32 %v1526_v60, 0.0  ;;  %v3982_v60 = vld [vmem:[%s8638_s6 + $0xa0] sm:$0xff] }
 0x4b9   :  { %v1543_v23 = vmax.f32 %v1527_v54, 0.0  ;;  %v1544_v14 = vmax.f32 %v1528_v19, 0.0  ;;  %v1545_v33 = vmax.f32 %v1529_v15, 0.0  ;;  %v1546_v13 = vmax.f32 %v1530_v59, 0.0  ;;  %v3983_v54 = vld [vmem:[%s8638_s6 + $0xa8] sm:$0xff] }
 0x4ba   :  { %1579 = vst.msk [vmem:[#allocation3] sm:$0xff] %vm1304_vm1, %v1539_v37  ;;  %1580 = vst.msk [vmem:[#allocation3 + $0x10] sm:$0xff] %vm1304_vm1, %v1540_v6  ;;  %v1531_v22 = vadd.f32 %v1522_v4, %v1511_v26  ;;  %v1532_v27 = vadd.f32 %v1522_v4, %v1512_v10  ;;  %v1533_v62 = vadd.f32 %v1522_v4, %v1513_v25  ;;  %v3984_v37 = vld [vmem:[%s8638_s6 + $0xb0] sm:$0xff]  ;;  %v3985_v6 = vld [vmem:[%s8638_s6 + $0xb8] sm:$0xff] }
 0x4bb   :  { %1581 = vst.msk [vmem:[#allocation3 + $0x20] sm:$0xff] %vm1304_vm1, %v1541_v49  ;;  %1582 = vst.msk [vmem:[#allocation3 + $0x30] sm:$0xff] %vm1304_vm1, %v1542_v5  ;;  %v1534_v17 = vadd.f32 %v1522_v4, %v1514_v61  ;;  %v1535_v24 = vadd.f32 %v1522_v4, %v1515_v52  ;;  %v1536_v55 = vadd.f32 %v1522_v4, %v1516_v43 }
 0x4bc   :  { %1583 = vst.msk [vmem:[#allocation3 + $0x40] sm:$0xff] %vm1304_vm1, %v1543_v23  ;;  %1584 = vst.msk [vmem:[#allocation3 + $0x50] sm:$0xff] %vm1304_vm1, %v1544_v14  ;;  %v1537_v56 = vadd.f32 %v1522_v4, %v1517_v47  ;;  %v1538_v57 = vadd.f32 %v1522_v4, %v1518_v34  ;;  %v1547_v58 = vmax.f32 %v1531_v22, 0.0  ;;  %v1548_v63 = vmax.f32 %v1532_v27, 0.0  ;;  %v3980_v47 = vld [vmem:[%s8638_s6 + $0x90] sm:$0xff]  ;;  %v3981_v34 = vld [vmem:[%s8638_s6 + $0x98] sm:$0xff] }
 0x4bd   :  { %1585 = vst.msk [vmem:[#allocation3 + $0x60] sm:$0xff] %vm1304_vm1, %v1545_v33  ;;  %1586 = vst.msk [vmem:[#allocation3 + $0x70] sm:$0xff] %vm1304_vm1, %v1546_v13  ;;  %v1549_v0 = vmax.f32 %v1533_v62, 0.0  ;;  %v1550_v1 = vmax.f32 %v1534_v17, 0.0  ;;  %v1551_v2 = vmax.f32 %v1535_v24, 0.0  ;;  %v1552_v50 = vmax.f32 %v1536_v55, 0.0 }
 0x4be   :  { %v1553_v7 = vmax.f32 %v1537_v56, 0.0  ;;  %v1554_v11 = vmax.f32 %v1538_v57, 0.0  ;;  %1587 = vst.msk [vmem:[#allocation3 + $0x90] sm:$0xff] %vm1304_vm1, %v1547_v58  ;;  %1588 = vst.msk [vmem:[#allocation3 + $0xa0] sm:$0xff] %vm1304_vm1, %v1548_v63  ;;  %v5266_v8 = vpack.c.bf16 %v1616_v29, %v1615_v28  ;;  %v5274_v44 = vpack.c.bf16 %v3979_v40, %v3978_v39  ;;  %v4002_v14 = vld [vmem:[%s8638_s6 + $0xc0] sm:$0xff]  ;;  %v4003_v33 = vld [vmem:[%s8638_s6 + $0xc8] sm:$0xff] }
 0x4bf   :  { %1589 = vst.msk [vmem:[#allocation3 + $0xb0] sm:$0xff] %vm1304_vm1, %v1549_v0  ;;  %1590 = vst.msk [vmem:[#allocation3 + $0xc0] sm:$0xff] %vm1304_vm1, %v1550_v1  ;;  %v5278_v31 = vpack.c.bf16 %v3981_v34, %v3980_v47  ;;  %v5282_v15 = vpack.c.bf16 %v3983_v54, %v3982_v60  ;;  %v5286_v5 = vpack.c.bf16 %v3985_v6, %v3984_v37  ;;  %v4004_v0 = vld [vmem:[%s8638_s6 + $0xd0] sm:$0xff]  ;;  %v4005_v1 = vld [vmem:[%s8638_s6 + $0xd8] sm:$0xff] }
 0x4c0   :  { %1591 = vst.msk [vmem:[#allocation3 + $0xd0] sm:$0xff] %vm1304_vm1, %v1551_v2  ;;  %1592 = vst.msk [vmem:[#allocation3 + $0xe0] sm:$0xff] %vm1304_vm1, %v1552_v50  ;;  %v5290_v22 = vpack.c.bf16 %v4003_v33, %v4002_v14  ;;  %v5294_v2 = vpack.c.bf16 %v4005_v1, %v4004_v0  ;;  %v4006_v50 = vld [vmem:[%s8638_s6 + $0xe0] sm:$0xff]  ;;  %v2046_v28 = vld [vmem:[#allocation3 + $0x110] sm:$0xff] }
 0x4c1   :  { %1593 = vst.msk [vmem:[#allocation3 + $0xf0] sm:$0xff] %vm1304_vm1, %v1553_v7  ;;  %1594 = vst.msk [vmem:[#allocation3 + $0x100] sm:$0xff] %vm1304_vm1, %v1554_v11  ;;  %v1619_v18 = vld [vmem:[#allocation3 + $0x1] sm:$0xff]  ;;  %v6898_v20 = vld [vmem:[#allocation3 + $0x11] sm:$0xff] }
 0x4c2   :  { %4870 = vmatprep.mubr.msk.f32.mxu1 %vm1304_vm1, %v1619_v18  ;;  %v6909_v30 = vld [vmem:[#allocation3 + $0x21] sm:$0xff]  ;;  %v6914_v32 = vld [vmem:[#allocation3 + $0x31] sm:$0xff]  ;;  %v5302_v18 = vpack.c.bf16 %v4009_v16, %v4008_v12 }
 0x4c3   :  { %4871 = vmatmul.mubr.msk.f32.vlgmr.msra.gmra.mrb[32].mxu1 %vm1304_vm1, %v6898_v20  ;;  %v6924_v36 = vld [vmem:[#allocation3 + $0x41] sm:$0xff]  ;;  %v6928_v38 = vld [vmem:[#allocation3 + $0x51] sm:$0xff] }
 0x4c4   :  { %5261 = vmatpush3.bf16.msra.mxu1 %v6849_v9  ;;  %4873 = vmatprep.mubr.msk.f32.mxu1 %vm1304_vm1, %v6909_v30  ;;  %v5270_v9 = vpack.c.bf16 %v1618_v35, %v1617_v53  ;;  %v6938_v42 = vld [vmem:[#allocation3 + $0x61] sm:$0xff]  ;;  %v6942_v45 = vld [vmem:[#allocation3 + $0x71] sm:$0xff] }
 0x4c5   :  { %5263 = vmatprep.subr.bf16.mxu1 %v5262_v21  ;;  %v1627_v46 = vld [vmem:[#allocation3 + $0x91] sm:$0xff]  ;;  %v6947_v26 = vld [vmem:[#allocation3 + $0xa1] sm:$0xff] }
 0x4c6   :  { %v6951_v4 = vld [vmem:[#allocation3 + $0xb1] sm:$0xff]  ;;  %v6955_v10 = vld [vmem:[#allocation3 + $0xc1] sm:$0xff] }
 0x4c7   :  { %4874 = vmatmul.mubr.msk.f32.gmra.mrb[34].mxu1 %vm1304_vm1, %v6914_v32  ;;  %v6959_v25 = vld [vmem:[#allocation3 + $0xd1] sm:$0xff]  ;;  %v6963_v61 = vld [vmem:[#allocation3 + $0xe1] sm:$0xff] }
 0x4c8   :  { %4876 = vmatprep.mubr.msk.f32.mxu1 %vm1304_vm1, %v6924_v36  ;;  %5265 = vmatpush3.bf16.msra.mxu1 %v5262_v21  ;;  %v6967_v52 = vld [vmem:[#allocation3 + $0xf1] sm:$0xff]  ;;  %v6971_v43 = vld [vmem:[#allocation3 + $0x101] sm:$0xff] }
 0x4c9   :  { %5267 = vmatprep.subr.bf16.mxu1 %v5266_v8  ;;  %v1595_v48 = vld [vmem:[#allocation3] sm:$0xff]  ;;  %v1596_v51 = vld [vmem:[#allocation3 + $0x10] sm:$0xff]  ;;  %v4007_v7 = vld [vmem:[%s8638_s6 + $0xe8] sm:$0xff] }
 0x4ca   :  { %v1597_v19 = vld [vmem:[#allocation3 + $0x20] sm:$0xff]  ;;  %v1598_v59 = vld [vmem:[#allocation3 + $0x30] sm:$0xff]  ;;  %v5298_v11 = vpack.c.bf16 %v4007_v7, %v4006_v50  ;;  %v2941_v35 = vld [vmem:[%s8640_s8 + $0x8] sm:$0xff] }
 0x4cb   :  { %4877 = vmatmul.mubr.msk.f32.gmra.mrb[36].mxu1 %vm1304_vm1, %v6928_v38  ;;  %v1599_v49 = vld [vmem:[#allocation3 + $0x40] sm:$0xff]  ;;  %v1600_v23 = vld [vmem:[#allocation3 + $0x50] sm:$0xff]  ;;  %v2945_v34 = vld [vmem:[%s8640_s8 + $0x28] sm:$0xff] }
 0x4cc   :  { %4879 = vmatprep.mubr.msk.f32.mxu1 %vm1304_vm1, %v6938_v42  ;;  %5269 = vmatpush3.bf16.msra.mxu1 %v5266_v8  ;;  %v1601_v13 = vld [vmem:[#allocation3 + $0x60] sm:$0xff]  ;;  %v1602_v27 = vld [vmem:[#allocation3 + $0x70] sm:$0xff]  ;;  %v2957_v8 = vld [vmem:[%s8640_s8 + $0x88] sm:$0xff] }
 0x4cd   :  { %5271 = vmatprep.subr.bf16.mxu1 %v5270_v9  ;;  %v1603_v62 = vld [vmem:[#allocation3 + $0x90] sm:$0xff]  ;;  %v1604_v17 = vld [vmem:[#allocation3 + $0xa0] sm:$0xff]  ;;  %v2975_v54 = vld [vmem:[%s8640_s8 + $0x118] sm:$0xff] }
 0x4ce   :  { %v1605_v24 = vld [vmem:[#allocation3 + $0xb0] sm:$0xff]  ;;  %v1606_v55 = vld [vmem:[#allocation3 + $0xc0] sm:$0xff]  ;;  %v2947_v33 = vld [vmem:[%s8640_s8 + $0x38] sm:$0xff] }
 0x4cf   :  { %4880 = vmatmul.mubr.msk.f32.gmra.mrb[38].mxu1 %vm1304_vm1, %v6942_v45  ;;  %v1607_v56 = vld [vmem:[#allocation3 + $0xd0] sm:$0xff]  ;;  %v1608_v57 = vld [vmem:[#allocation3 + $0xe0] sm:$0xff]  ;;  %v2979_v0 = vld [vmem:[%s8640_s8 + $0x138] sm:$0xff] }
 0x4d0   :  { %4882 = vmatprep.mubr.msk.f32.mxu1 %vm1304_vm1, %v1627_v46  ;;  %5273 = vmatpush3.bf16.msra.mxu1 %v5270_v9  ;;  %v1609_v58 = vld [vmem:[#allocation3 + $0xf0] sm:$0xff]  ;;  %v1610_v63 = vld [vmem:[#allocation3 + $0x100] sm:$0xff]  ;;  %v2959_v9 = vld [vmem:[%s8640_s8 + $0x98] sm:$0xff] }
 0x4d1   :  { %5275 = vmatprep.subr.bf16.mxu1 %v5274_v44  ;;  %v2038_v21 = vld [vmem:[#allocation3 + $0x80] sm:$0xff]  ;;  %v2942_v40 = vld [vmem:[%s8640_s8 + $0x10] sm:$0xff]  ;;  %v2997_v7 = vld [vmem:[%s8640_s8 + $0x1c8] sm:$0xff] }
 0x4d2   :  { %v2272_v29 = vld [vmem:[#allocation3 + $0x81] sm:$0xff]  ;;  %v2974_v60 = vld [vmem:[%s8640_s8 + $0x110] sm:$0xff]  ;;  %v2967_v12 = vld [vmem:[%s8640_s8 + $0xd8] sm:$0xff] }
 0x4d3   :  { %4883 = vmatmul.mubr.msk.f32.gmra.mrb[40].mxu1 %vm1304_vm1, %v6947_v26  ;;  %v2972_v46 = vld [vmem:[%s8640_s8 + $0x100] sm:$0xff]  ;;  %v2946_v14 = vld [vmem:[%s8640_s8 + $0x30] sm:$0xff] }
 0x4d4   :  { %4885 = vmatprep.mubr.msk.f32.mxu1 %vm1304_vm1, %v6951_v4  ;;  %v2992_v6 = vld [vmem:[%s8640_s8 + $0x1a0] sm:$0xff] }
 0x4d5   :  { %v2996_v50 = vld [vmem:[%s8640_s8 + $0x1c0] sm:$0xff] }
 0x4d7   :  { %4886 = vmatmul.mubr.msk.f32.gmra.mrb[42].mxu1 %vm1304_vm1, %v6955_v10 }
 0x4d8   :  { %4888 = vmatprep.mubr.msk.f32.mxu1 %vm1304_vm1, %v6959_v25 }
 0x4db   :  { %4889 = vmatmul.mubr.msk.f32.gmra.mrb[44].mxu1 %vm1304_vm1, %v6963_v61 }
 0x4dc   :  { %4891 = vmatprep.mubr.msk.f32.mxu1 %vm1304_vm1, %v6967_v52 }
 0x4df   :  { %4892 = vmatmul.mubr.msk.f32.gmra.mrb[46].mxu1 %vm1304_vm1, %v6971_v43 }
 0x4e0   :  { %4910 = vmatprep.mubr.msk.f32.mxu1 %vm1304_vm1, %v1595_v48  ;;  %v2990_v48 = vld [vmem:[%s8640_s8 + $0x190] sm:$0xff] }
 0x4e3   :  { %4911 = vmatmul.mubr.msk.f32.vlgmr.msra.gmra.mrb[32].mxu1 %vm1304_vm1, %v1596_v51 }
 0x4e4   :  { %5277 = vmatpush3.bf16.msra.mxu1 %v5274_v44  ;;  %4913 = vmatprep.mubr.msk.f32.mxu1 %vm1304_vm1, %v1597_v19  ;;  %v2988_v44 = vld [vmem:[%s8640_s8 + $0x180] sm:$0xff] }
 0x4e5   :  { %5279 = vmatprep.subr.bf16.mxu1 %v5278_v31 }
 0x4e7   :  { %4914 = vmatmul.mubr.msk.f32.gmra.mrb[34].mxu1 %vm1304_vm1, %v1598_v59 }
 0x4e8   :  { %4916 = vmatprep.mubr.msk.f32.mxu1 %vm1304_vm1, %v1599_v49  ;;  %5281 = vmatpush3.bf16.msra.mxu1 %v5278_v31  ;;  %v2991_v31 = vld [vmem:[%s8640_s8 + $0x198] sm:$0xff] }
 0x4e9   :  { %5283 = vmatprep.subr.bf16.mxu1 %v5282_v15 }
 0x4eb   :  { %4917 = vmatmul.mubr.msk.f32.gmra.mrb[36].mxu1 %vm1304_vm1, %v1600_v23 }
 0x4ec   :  { %4919 = vmatprep.mubr.msk.f32.mxu1 %vm1304_vm1, %v1601_v13  ;;  %5285 = vmatpush3.bf16.msra.mxu1 %v5282_v15  ;;  %v5344_v15 = vpack.c.bf16 %v2975_v54, %v2974_v60 }
 0x4ed   :  { %5287 = vmatprep.subr.bf16.mxu1 %v5286_v5 }
 0x4ef   :  { %4920 = vmatmul.mubr.msk.f32.gmra.mrb[38].mxu1 %vm1304_vm1, %v1602_v27 }
 0x4f0   :  { %4922 = vmatprep.mubr.msk.f32.mxu1 %vm1304_vm1, %v1603_v62  ;;  %5289 = vmatpush3.bf16.msra.mxu1 %v5286_v5  ;;  %v2976_v5 = vld [vmem:[%s8640_s8 + $0x120] sm:$0xff]  ;;  %v2965_v62 = vld [vmem:[%s8640_s8 + $0xc8] sm:$0xff] }
 0x4f1   :  { %5291 = vmatprep.subr.bf16.mxu1 %v5290_v22 }
 0x4f3   :  { %4923 = vmatmul.mubr.msk.f32.gmra.mrb[40].mxu1 %vm1304_vm1, %v1604_v17 }
 0x4f4   :  { %4925 = vmatprep.mubr.msk.f32.mxu1 %vm1304_vm1, %v1605_v24 }
 0x4f7   :  { %4926 = vmatmul.mubr.msk.f32.gmra.mrb[42].mxu1 %vm1304_vm1, %v1606_v55 }
 0x4f8   :  { %4928 = vmatprep.mubr.msk.f32.mxu1 %vm1304_vm1, %v1607_v56 }
 0x4fb   :  { %4929 = vmatmul.mubr.msk.f32.gmra.mrb[44].mxu1 %vm1304_vm1, %v1608_v57 }
 0x4fc   :  { %4931 = vmatprep.mubr.msk.f32.mxu1 %vm1304_vm1, %v1609_v58 }
 0x4ff   :  { %4932 = vmatmul.mubr.msk.f32.gmra.mrb[46].mxu1 %vm1304_vm1, %v1610_v63 }
 0x500   :  { %4950 = vmatprep.mubr.msk.f32.mxu1 %vm1304_vm1, %v1596_v51  ;;  %v5342_v51 = vpack.c.bf16 %v2991_v31, %v2990_v48 }
 0x503   :  { %4951 = vmatmul.mubr.msk.f32.vlgmr.msra.gmra.mrb[32].mxu1 %vm1304_vm1, %v1597_v19  ;;  %v2962_v19 = vld [vmem:[%s8640_s8 + $0xb0] sm:$0xff] }
 0x504   :  { %5293 = vmatpush3.bf16.msra.mxu1 %v5290_v22  ;;  %4953 = vmatprep.mubr.msk.f32.mxu1 %vm1304_vm1, %v1598_v59  ;;  %v2963_v59 = vld [vmem:[%s8640_s8 + $0xb8] sm:$0xff]  ;;  %v2977_v22 = vld [vmem:[%s8640_s8 + $0x128] sm:$0xff] }
 0x505   :  { %5295 = vmatprep.subr.bf16.mxu1 %v5294_v2 }
 0x507   :  { %4954 = vmatmul.mubr.msk.f32.gmra.mrb[34].mxu1 %vm1304_vm1, %v1599_v49  ;;  %v2993_v49 = vld [vmem:[%s8640_s8 + $0x1a8] sm:$0xff] }
 0x508   :  { %4956 = vmatprep.mubr.msk.f32.mxu1 %vm1304_vm1, %v1600_v23  ;;  %5297 = vmatpush3.bf16.msra.mxu1 %v5294_v2  ;;  %v5318_v23 = vpack.c.bf16 %v2963_v59, %v2962_v19  ;;  %v2949_v2 = vld [vmem:[%s8640_s8 + $0x48] sm:$0xff] }
 0x509   :  { %5299 = vmatprep.subr.bf16.mxu1 %v5298_v11 }
 0x50b   :  { %4957 = vmatmul.mubr.msk.f32.gmra.mrb[36].mxu1 %vm1304_vm1, %v1601_v13  ;;  %v5346_v13 = vpack.c.bf16 %v2993_v49, %v2992_v6 }
 0x50c   :  { %4959 = vmatprep.mubr.msk.f32.mxu1 %vm1304_vm1, %v1602_v27  ;;  %5301 = vmatpush3.bf16.msra.mxu1 %v5298_v11  ;;  %v2964_v27 = vld [vmem:[%s8640_s8 + $0xc0] sm:$0xff]  ;;  %v2966_v11 = vld [vmem:[%s8640_s8 + $0xd0] sm:$0xff] }
 0x50d   :  { %5303 = vmatprep.subr.bf16.mxu1 %v5302_v18  ;;  %v5322_v1 = vpack.c.bf16 %v2965_v62, %v2964_v27 }
 0x50f   :  { %4960 = vmatmul.mubr.msk.f32.gmra.mrb[38].mxu1 %vm1304_vm1, %v2038_v21  ;;  %v5354_v21 = vpack.c.bf16 %v2997_v7, %v2996_v50 }
 0x510   :  { %4962 = vmatprep.mubr.msk.f32.mxu1 %vm1304_vm1, %v1604_v17  ;;  %5305 = vmatpush3.bf16.msra.mxu1 %v5302_v18  ;;  %v2994_v17 = vld [vmem:[%s8640_s8 + $0x1b0] sm:$0xff] }
 0x513   :  { %4963 = vmatmul.mubr.msk.f32.gmra.mrb[40].mxu1 %vm1304_vm1, %v1605_v24  ;;  %v5348_v24 = vpack.c.bf16 %v2977_v22, %v2976_v5 }
 0x514   :  { %4965 = vmatprep.mubr.msk.f32.mxu1 %vm1304_vm1, %v1606_v55  ;;  %v2995_v55 = vld [vmem:[%s8640_s8 + $0x1b8] sm:$0xff] }
 0x517   :  { %4966 = vmatmul.mubr.msk.f32.gmra.mrb[42].mxu1 %vm1304_vm1, %v1607_v56  ;;  %v5320_v56 = vpack.c.bf16 %v2947_v33, %v2946_v14 }
 0x518   :  { %4968 = vmatprep.mubr.msk.f32.mxu1 %vm1304_vm1, %v1608_v57  ;;  %v2948_v57 = vld [vmem:[%s8640_s8 + $0x40] sm:$0xff] }
 0x519   :  { %v5324_v18 = vpack.c.bf16 %v2949_v2, %v2948_v57 }
 0x51b   :  { %4969 = vmatmul.mubr.msk.f32.gmra.mrb[44].mxu1 %vm1304_vm1, %v1609_v58  ;;  %v5350_v58 = vpack.c.bf16 %v2995_v55, %v2994_v17 }
 0x51c   :  { %4971 = vmatprep.mubr.msk.f32.mxu1 %vm1304_vm1, %v1610_v63  ;;  %v2978_v63 = vld [vmem:[%s8640_s8 + $0x130] sm:$0xff] }
 0x51d   :  { %v5352_v16 = vpack.c.bf16 %v2979_v0, %v2978_v63 }
 0x51f   :  { %4972 = vmatmul.mubr.msk.f32.gmra.mrb[46].mxu1 %vm1304_vm1, %v2046_v28  ;;  %v2980_v28 = vld [vmem:[%s8640_s8 + $0x140] sm:$0xff] }
 0x520   :  { %4990 = vmatprep.mubr.msk.f32.mxu1 %vm1304_vm1, %v6898_v20  ;;  %v2280_v20 = vld [vmem:[#allocation3 + $0x111] sm:$0xff] }
 0x523   :  { %4991 = vmatmul.mubr.msk.f32.vlgmr.msra.gmra.mrb[32].mxu1 %vm1304_vm1, %v6909_v30  ;;  %v2956_v30 = vld [vmem:[%s8640_s8 + $0x80] sm:$0xff] }
 0x524   :  { %4993 = vmatprep.mubr.msk.f32.mxu1 %vm1304_vm1, %v6914_v32  ;;  %v2940_v32 = vld [vmem:[%s8640_s8] sm:$0xff]  ;;  %v5306_v53 = vpack.c.bf16 %v2957_v8, %v2956_v30  ;;  %v2950_v30 = vld [vmem:[%s8640_s8 + $0x50] sm:$0xff]  ;;  %v2951_v8 = vld [vmem:[%s8640_s8 + $0x58] sm:$0xff] }
 0x526   :  { %5307 = vmatprep.subr.bf16.mxu0 %v5306_v53  ;;  %v5328_v53 = vpack.c.bf16 %v2951_v8, %v2950_v30 }
 0x527   :  { %4994 = vmatmul.mubr.msk.f32.gmra.mrb[34].mxu1 %vm1304_vm1, %v6924_v36  ;;  %v2958_v36 = vld [vmem:[%s8640_s8 + $0x90] sm:$0xff] }
 0x528   :  { %4996 = vmatprep.mubr.msk.f32.mxu1 %vm1304_vm1, %v6928_v38  ;;  %v5308_v38 = vpack.c.bf16 %v2941_v35, %v2940_v32  ;;  %v5310_v39 = vpack.c.bf16 %v2959_v9, %v2958_v36  ;;  %v7214_v35 = vld [vmem:[%s8639_s7] ss:$0 sm:$0xff]  ;;  %s5847_s7 = smov 64  }
 0x52a   :  { %5309 = vmatpush3.bf16.msra.mxu0 %v5308_v38 }
 0x52b   :  { %4997 = vmatmul.mubr.msk.f32.gmra.mrb[36].mxu1 %vm1304_vm1, %v6938_v42  ;;  %v2943_v42 = vld [vmem:[%s8640_s8 + $0x18] sm:$0xff]  ;;  %5311 = vmatprep.subr.bf16.mxu0 %v5310_v39 }
 0x52c   :  { %4999 = vmatprep.mubr.msk.f32.mxu1 %vm1304_vm1, %v6942_v45  ;;  %v2989_v45 = vld [vmem:[%s8640_s8 + $0x188] sm:$0xff] }
 0x52f   :  { %5000 = vmatmul.mubr.msk.f32.gmra.mrb[38].mxu1 %vm1304_vm1, %v2272_v29  ;;  %v2981_v29 = vld [vmem:[%s8640_s8 + $0x148] sm:$0xff] }
 0x530   :  { %5002 = vmatprep.mubr.msk.f32.mxu1 %vm1304_vm1, %v6947_v26  ;;  %v2973_v26 = vld [vmem:[%s8640_s8 + $0x108] sm:$0xff]  ;;  %v5356_v32 = vpack.c.bf16 %v2981_v29, %v2980_v28 }
 0x533   :  { %5003 = vmatmul.mubr.msk.f32.gmra.mrb[40].mxu1 %vm1304_vm1, %v6951_v4  ;;  %v5312_v4 = vpack.c.bf16 %v2943_v42, %v2942_v40 }
 0x534   :  { %5005 = vmatprep.mubr.msk.f32.mxu1 %vm1304_vm1, %v6955_v10  ;;  %v5338_v10 = vpack.c.bf16 %v2989_v45, %v2988_v44 }
 0x535   :  { %5313 = vmatpush3.bf16.msra.mxu0 %v5312_v4 }
 0x536   :  { %5339 = vmatprep.subr.bf16.mxu1 %v5338_v10 }
 0x537   :  { %5006 = vmatmul.mubr.msk.f32.gmra.mrb[42].mxu1 %vm1304_vm1, %v6959_v25  ;;  %v5340_v25 = vpack.c.bf16 %v2973_v26, %v2972_v46 }
 0x538   :  { %5008 = vmatprep.mubr.msk.f32.mxu1 %vm1304_vm1, %v6963_v61  ;;  %v2960_v61 = vld [vmem:[%s8640_s8 + $0xa0] sm:$0xff] }
 0x539   :  { %5341 = vmatpush3.bf16.msra.mxu1 %v5340_v25 }
 0x53a   :  { %5343 = vmatprep.subr.bf16.mxu1 %v5342_v51 }
 0x53b   :  { %5009 = vmatmul.mubr.msk.f32.gmra.mrb[44].mxu1 %vm1304_vm1, %v6967_v52  ;;  %v2961_v52 = vld [vmem:[%s8640_s8 + $0xa8] sm:$0xff] }
 0x53c   :  { %5011 = vmatprep.mubr.msk.f32.mxu1 %vm1304_vm1, %v6971_v43  ;;  %v2944_v43 = vld [vmem:[%s8640_s8 + $0x20] sm:$0xff]  ;;  %v5314_v47 = vpack.c.bf16 %v2961_v52, %v2960_v61 }
 0x53d   :  { %v5316_v37 = vpack.c.bf16 %v2945_v34, %v2944_v43  ;;  %5345 = vmatpush3.bf16.msra.mxu1 %v5344_v15 }
 0x53e   :  { %5315 = vmatprep.subr.bf16.mxu0 %v5314_v47  ;;  %5347 = vmatprep.subr.bf16.mxu1 %v5346_v13 }
 0x53f   :  { %5012 = vmatmul.mubr.msk.f32.gmra.mrb[46].mxu1 %vm1304_vm1, %v2280_v20  ;;  %5317 = vmatpush3.bf16.msra.mxu0 %v5316_v37  ;;  %v5326_v20 = vpack.c.bf16 %v2967_v12, %v2966_v11 }
 0x540   :  { %5319 = vmatprep.subr.bf16.mxu0 %v5318_v23 }
 0x541   :  { %5349 = vmatpush3.bf16.msra.mxu1 %v5348_v24 }
 0x542   :  { %5351 = vmatprep.subr.bf16.mxu1 %v5350_v58 }
 0x543   :  { %5321 = vmatpush3.bf16.msra.mxu0 %v5320_v56 }
 0x544   :  { %5323 = vmatprep.subr.bf16.mxu0 %v5322_v1 }
 0x545   :  { %5353 = vmatpush3.bf16.msra.mxu1 %v5352_v16 }
 0x546   :  { %5355 = vmatprep.subr.bf16.mxu1 %v5354_v21 }
 0x547   :  { %5325 = vmatpush3.bf16.msra.mxu0 %v5324_v18 }
 0x548   :  { %5327 = vmatprep.subr.bf16.mxu0 %v5326_v20 }
 0x549   :  { %5357 = vmatpush3.bf16.msra.mxu1 %v5356_v32 }
 0x54b   :  { %5329 = vmatpush3.bf16.msra.mxu0 %v5328_v53 }
 0x5f6   :  { %v4992_v36 = vpop.f32.mrb[32].mxu1 }
 0x5f7   :  { %v2507_v9 = vadd.f32 %v4992_v36, %v7214_v35  ;;  %v2404_v38 = vpop.f32.mrb[33].mxu1 }
 0x5f8   :  { %v2506_v39 = vadd.f32 %v7214_v35, %v2404_v38 }
 0x5f9   :  { %v7218_v40 = vmax.f32 %v2507_v9, 0.0 }
 0x5fa   :  { %v7220_v42 = vmax.f32 %v2506_v39, 0.0  ;;  %v4995_v44 = vpop.f32.mrb[34].mxu1 }
 0x5fb   :  { %v2509_v45 = vadd.f32 %v4995_v44, %v7214_v35  ;;  %v2414_v46 = vpop.f32.mrb[35].mxu1  ;;  %v2588_v26 = vrot.slane %v7218_v40, 1  ;;  %v2609_v4 = vrot.slane %v7218_v40, 5  ;;  %v2599_v10 = vrot.slane %v7218_v40, 3 }
 0x5fc   :  { %v2508_v25 = vadd.f32 %v7214_v35, %v2414_v46  ;;  %v2544_v61 = vrot.slane %v7220_v42, 1  ;;  %v2565_v52 = vrot.slane %v7220_v42, 5  ;;  %v2549_v43 = vrot.slane %v7220_v42, 2 }
 0x5fd   :  { %v7230_v47 = vmax.f32 %v2509_v45, 0.0  ;;  %v2571_v34 = vrot.slane %v7220_v42, 6  ;;  %v2555_v48 = vrot.slane %v7220_v42, 3  ;;  %v2577_v31 = vrot.slane %v7220_v42, 7 }
 0x5fe   :  { %v7235_v51 = vmax.f32 %v2508_v25, 0.0  ;;  %v4998_v60 = vpop.f32.mrb[36].mxu1  ;;  %v2621_v54 = vrot.slane %v7218_v40, 7  ;;  %v2593_v19 = vrot.slane %v7218_v40, 2  ;;  %v2615_v15 = vrot.slane %v7218_v40, 6 }
 0x5ff   :  { %v2511_v59 = vadd.f32 %v4998_v60, %v7214_v35  ;;  %v2424_v37 = vpop.f32.mrb[37].mxu1  ;;  %v2689_v6 = vrot.slane %v7230_v47, 1  ;;  %v2710_v49 = vrot.slane %v7230_v47, 5  ;;  %v2700_v5 = vrot.slane %v7230_v47, 3 }
 0x600   :  { %v2510_v23 = vadd.f32 %v7214_v35, %v2424_v37  ;;  %v2645_v14 = vrot.slane %v7235_v51, 1  ;;  %v2666_v33 = vrot.slane %v7235_v51, 5  ;;  %v2650_v13 = vrot.slane %v7235_v51, 2 }
 0x601   :  { %v7248_v22 = vmax.f32 %v2511_v59, 0.0  ;;  %v2672_v27 = vrot.slane %v7235_v51, 6  ;;  %v2656_v62 = vrot.slane %v7235_v51, 3  ;;  %v2678_v17 = vrot.slane %v7235_v51, 7 }
 0x602   :  { %v7253_v24 = vmax.f32 %v2510_v23, 0.0  ;;  %v5001_v55 = vpop.f32.mrb[38].mxu1  ;;  %v2722_v56 = vrot.slane %v7230_v47, 7  ;;  %v2694_v57 = vrot.slane %v7230_v47, 2  ;;  %v2716_v58 = vrot.slane %v7230_v47, 6 }
 0x603   :  { %v2513_v63 = vadd.f32 %v5001_v55, %v7214_v35  ;;  %v2434_v0 = vpop.f32.mrb[39].mxu1  ;;  %v2789_v1 = vrot.slane %v7248_v22, 1  ;;  %v2810_v2 = vrot.slane %v7248_v22, 5  ;;  %v2800_v50 = vrot.slane %v7248_v22, 3 }
 0x604   :  { %v2512_v7 = vadd.f32 %v7214_v35, %v2434_v0  ;;  %v2745_v11 = vrot.slane %v7253_v24, 1  ;;  %v2766_v12 = vrot.slane %v7253_v24, 5  ;;  %v2750_v16 = vrot.slane %v7253_v24, 2 }
 0x605   :  { %v7266_v18 = vmax.f32 %v2513_v63, 0.0  ;;  %v2772_v21 = vrot.slane %v7253_v24, 6  ;;  %v2756_v28 = vrot.slane %v7253_v24, 3  ;;  %v2778_v29 = vrot.slane %v7253_v24, 7 }
 0x606   :  { %v7271_v20 = vmax.f32 %v2512_v7, 0.0  ;;  %v5004_v30 = vpop.f32.mrb[40].mxu1  ;;  %v2822_v8 = vrot.slane %v7248_v22, 7  ;;  %v2794_v32 = vrot.slane %v7248_v22, 2 }
 0x607   :  { %v2515_v36 = vadd.f32 %v5004_v30, %v7214_v35  ;;  %v2444_v9 = vpop.f32.mrb[41].mxu1  ;;  %v2889_v38 = vrot.slane %v7266_v18, 1 }
 0x608   :  { %v2514_v45 = vadd.f32 %v7214_v35, %v2444_v9  ;;  %v2845_v46 = vrot.slane %v7271_v20, 1 }
 0x609   :  { %v7284_v59 = vmax.f32 %v2515_v36, 0.0 }
 0x60a   :  { %v7289_v63 = vmax.f32 %v2514_v45, 0.0  ;;  %v5007_v0 = vpop.f32.mrb[42].mxu1 }
 0x60b   :  { %v2517_v41 = vadd.f32 %v5007_v0, %v7214_v35  ;;  %v2454_v3 = vpop.f32.mrb[43].mxu1  ;;  %v2589_v36 = vsel %vm2541_vm5, %v7284_v59, %v2588_v26  ;;  %v2610_v44 = vrot.slane %v7284_v59, 4  ;;  %v2600_v45 = vrot.slane %v7284_v59, 2 }
 0x60c   :  { %v2516_v55 = vadd.f32 %v7214_v35, %v2454_v3  ;;  %v2545_v30 = vsel %vm2541_vm5, %v7289_v63, %v2544_v61  ;;  %v2566_v9 = vrot.slane %v7289_v63, 4  ;;  %v2550_v0 = vrot.slane %v7289_v63, 1 }
 0x60d   :  { %v7308_v7 = vmax.f32 %v2517_v41, 0.0  ;;  %v2611_v26 = vsel %vm2541_vm5, %v2610_v44, %v2609_v4  ;;  %v2572_v23 = vrot.slane %v7289_v63, 5  ;;  %v2556_v37 = vrot.slane %v7289_v63, 2 }
 0x60e   :  { %v7315_v3 = vmax.f32 %v2516_v55, 0.0  ;;  %v5010_v60 = vpop.f32.mrb[44].mxu1  ;;  %v5693_v25 = vpack.i.bf16 %v2589_v36, %v2611_v26  ;;  %v2567_v61 = vsel %vm2541_vm5, %v2566_v9, %v2565_v52  ;;  %v2551_v41 = vsel %vm2541_vm5, %v2550_v0, %v2549_v43 }
 0x60f   :  { %v2519_v39 = vadd.f32 %v5010_v60, %v7214_v35  ;;  %v2464_v53 = vpop.f32.mrb[45].mxu1  ;;  %v5698_v4 = vpack.i.bf16 %v2545_v30, %v2567_v61  ;;  %v2573_v44 = vsel %vm2541_vm5, %v2572_v23, %v2571_v34  ;;  %v2557_v55 = vsel %vm2541_vm5, %v2556_v37, %v2555_v48 }
 0x610   :  { %v2518_v36 = vadd.f32 %v7214_v35, %v2464_v53  ;;  %5694 = vrot.lane.b32.xlu0 %v5693_v25, %s5844_s23  ;;  %v5703_v52 = vpack.i.bf16 %v2551_v41, %v2573_v44  ;;  %v2578_v9 = vrot.slane %v7289_v63, 6  ;;  %v2601_v43 = vsel %vm2541_vm5, %v2600_v45, %v2599_v10 }
 0x611   :  { %v7336_v60 = vmax.f32 %v2519_v39, 0.0  ;;  %5699 = vrot.lane.b32.xlu1 %v5698_v4, %s5844_s23  ;;  %v2622_v34 = vrot.slane %v7284_v59, 6  ;;  %v2594_v23 = vrot.slane %v7284_v59, 1  ;;  %v2616_v48 = vrot.slane %v7284_v59, 5 }
 0x612   :  { %v7342_v53 = vmax.f32 %v2518_v36, 0.0  ;;  %v5013_v25 = vpop.f32.mrb[46].mxu1  ;;  %v2579_v37 = vsel %vm2541_vm5, %v2578_v9, %v2577_v31  ;;  %v2690_v10 = vsel %vm2541_vm5, %v7308_v7, %v2689_v6  ;;  %v2711_v39 = vrot.slane %v7308_v7, 4 }
 0x613   :  { %v2521_v30 = vadd.f32 %v5013_v25, %v7214_v35  ;;  %v2474_v45 = vpop.f32.mrb[47].mxu1  ;;  %v5708_v0 = vpack.i.bf16 %v2557_v55, %v2579_v37  ;;  %v2623_v26 = vsel %vm2541_vm5, %v2622_v34, %v2621_v54  ;;  %v2595_v61 = vsel %vm2541_vm5, %v2594_v23, %v2593_v19 }
 0x614   :  { %v2520_v31 = vadd.f32 %v7214_v35, %v2474_v45  ;;  %5704 = vrot.lane.b32.xlu0 %v5703_v52, %s5847_s7  ;;  %v5718_v6 = vpack.i.bf16 %v2601_v43, %v2623_v26  ;;  %v2617_v41 = vsel %vm2541_vm5, %v2616_v48, %v2615_v15  ;;  %v2712_v4 = vsel %vm2541_vm5, %v2711_v39, %v2710_v49 }
 0x615   :  { %v7367_v44 = vmax.f32 %v2521_v30, 0.0  ;;  %5709 = vrot.lane.b32.xlu1 %v5708_v0, %s5843_s22  ;;  %v5713_v54 = vpack.i.bf16 %v2595_v61, %v2617_v41  ;;  %v5723_v19 = vpack.i.bf16 %v2690_v10, %v2712_v4  ;;  %v2646_v35 = vsel %vm2541_vm5, %v7315_v3, %v2645_v14 }
 0x616   :  { %v7374_v55 = vmax.f32 %v2520_v31, 0.0  ;;  %v2667_v36 = vrot.slane %v7315_v3, 4  ;;  %v2651_v15 = vrot.slane %v7315_v3, 1  ;;  %v2673_v52 = vrot.slane %v7315_v3, 5 }
 0x617   :  { %v2657_v49 = vrot.slane %v7315_v3, 2  ;;  %v2679_v9 = vrot.slane %v7315_v3, 6  ;;  %v2701_v43 = vrot.slane %v7308_v7, 2  ;;  %v2723_v34 = vrot.slane %v7308_v7, 6 }
 0x618   :  { %5719 = vrot.lane.b32.xlu0 %v5718_v6, %s5843_s22  ;;  %v2668_v14 = vsel %vm2541_vm5, %v2667_v36, %v2666_v33  ;;  %v2652_v23 = vsel %vm2541_vm5, %v2651_v15, %v2650_v13  ;;  %v2674_v48 = vsel %vm2541_vm5, %v2673_v52, %v2672_v27  ;;  %v2695_v25 = vrot.slane %v7308_v7, 1 }
 0x619   :  { %5714 = vrot.lane.b32.xlu1 %v5713_v54, %s5847_s7  ;;  %v5728_v37 = vpack.i.bf16 %v2646_v35, %v2668_v14  ;;  %v5733_v10 = vpack.i.bf16 %v2652_v23, %v2674_v48  ;;  %v2658_v39 = vsel %vm2541_vm5, %v2657_v49, %v2656_v62  ;;  %v2680_v33 = vsel %vm2541_vm5, %v2679_v9, %v2678_v17 }
 0x61a   :  { %v5738_v30 = vpack.i.bf16 %v2658_v39, %v2680_v33  ;;  %v2702_v13 = vsel %vm2541_vm5, %v2701_v43, %v2700_v5  ;;  %v2724_v27 = vsel %vm2541_vm5, %v2723_v34, %v2722_v56  ;;  %v2696_v45 = vsel %vm2541_vm5, %v2695_v25, %v2694_v57 }
 0x61b   :  { %v5748_v0 = vpack.i.bf16 %v2702_v13, %v2724_v27  ;;  %v2717_v62 = vrot.slane %v7308_v7, 5  ;;  %v7415_v17 = vsel %vm2541_vm5, %v7336_v60, %v2789_v1  ;;  %v2811_v26 = vrot.slane %v7336_v60, 4 }
 0x61c   :  { %5724 = vrot.lane.b32.xlu0 %v5723_v19, %s5844_s23  ;;  %v7423_v5 = vsel %vm2541_vm5, %v7342_v53, %v2745_v11  ;;  %v2767_v56 = vrot.slane %v7342_v53, 4  ;;  %v2751_v57 = vrot.slane %v7342_v53, 1  ;;  %v2773_v61 = vrot.slane %v7342_v53, 5 }
 0x61d   :  { %5729 = vrot.lane.b32.xlu1 %v5728_v37, %s5844_s23  ;;  %v2718_v1 = vsel %vm2541_vm5, %v2717_v62, %v2716_v58  ;;  %v2812_v31 = vsel %vm2541_vm5, %v2811_v26, %v2810_v2  ;;  %v2757_v6 = vrot.slane %v7342_v53, 2  ;;  %v2779_v11 = vrot.slane %v7342_v53, 6 }
 0x61e   :  { %v5743_v41 = vpack.i.bf16 %v2696_v45, %v2718_v1  ;;  %v5753_v4 = vpack.i.bf16 %v7415_v17, %v2812_v31  ;;  %v2768_v54 = vsel %vm2541_vm5, %v2767_v56, %v2766_v12  ;;  %v7444_v19 = vsel %vm2541_vm5, %v2751_v57, %v2750_v16  ;;  %v2968_v45 = vld [vmem:[%s8640_s8 + $0xe0] sm:$0xff]  ;;  %v2969_v56 = vld [vmem:[%s8640_s8 + $0xe8] sm:$0xff] }
 0x61f   :  { %v5758_v58 = vpack.i.bf16 %v7423_v5, %v2768_v54  ;;  %v7450_v2 = vsel %vm2541_vm5, %v2773_v61, %v2772_v21  ;;  %v7455_v35 = vsel %vm2541_vm5, %v2757_v6, %v2756_v28  ;;  %v7460_v12 = vsel %vm2541_vm5, %v2779_v11, %v2778_v29  ;;  %v2952_v57 = vld [vmem:[%s8640_s8 + $0x60] sm:$0xff]  ;;  %v2953_v61 = vld [vmem:[%s8640_s8 + $0x68] sm:$0xff] }
 0x620   :  { %5734 = vrot.lane.b32.xlu0 %v5733_v10, %s5847_s7  ;;  %v5763_v16 = vpack.i.bf16 %v7444_v19, %v7450_v2  ;;  %v5768_v36 = vpack.i.bf16 %v7455_v35, %v7460_v12  ;;  %v2801_v21 = vrot.slane %v7336_v60, 2  ;;  %v2823_v15 = vrot.slane %v7336_v60, 6 }
 0x621   :  { %5739 = vrot.lane.b32.xlu1 %v5738_v30, %s5843_s22  ;;  %v2795_v28 = vrot.slane %v7336_v60, 1  ;;  %v2817_v52 = vrot.slane %v7336_v60, 5  ;;  %v7476_v29 = vsel %vm2541_vm5, %v7367_v44, %v2889_v38  ;;  %v2911_v49 = vrot.slane %v7367_v44, 4 }
 0x622   :  { %v7482_v9 = vsel %vm2541_vm5, %v2801_v21, %v2800_v50  ;;  %v7487_v43 = vsel %vm2541_vm5, %v2823_v15, %v2822_v8  ;;  %v7493_v34 = vsel %vm2541_vm5, %v7374_v55, %v2845_v46  ;;  %v2867_v38 = vrot.slane %v7374_v55, 4  ;;  %v2998_v15 = vld [vmem:[%s8640_s8 + $0x1d0] sm:$0xff] }
 0x623   :  { %v5778_v14 = vpack.i.bf16 %v7482_v9, %v7487_v43  ;;  %v7501_v50 = vsel %vm2541_vm5, %v2795_v28, %v2794_v32  ;;  %v8648_v23 = vrot.slane %v7248_v22, 6  ;;  %v8649_v48 = vrot.slane %v7266_v18, 5  ;;  %v2999_v28 = vld [vmem:[%s8640_s8 + $0x1d8] sm:$0xff]  ;;  %v3052_v43 = vld [vmem:[%s8640_s8 + $0x380] sm:$0xff] }
 0x624   :  { %5749 = vrot.lane.b32.xlu0 %v5748_v0, %s5843_s22  ;;  %v8650_v32 = vrot.slane %v7271_v20, 5  ;;  %v2851_v39 = vrot.slane %v7374_v55, 1  ;;  %v2873_v30 = vrot.slane %v7374_v55, 5  ;;  %v2857_v13 = vrot.slane %v7374_v55, 2 }
 0x625   :  { %v7506_v8 = vsel %vm2541_vm5, %v2817_v52, %v8648_v23  ;;  %v7511_v46 = vsel %vm2541_vm5, %v2911_v49, %v8649_v48  ;;  %5744 = vrot.lane.b32.xlu1 %v5743_v41, %s5847_s7  ;;  %v2879_v27 = vrot.slane %v7374_v55, 6  ;;  %v8651_v0 = vrot.slane %v7271_v20, 2  ;;  %v2982_v52 = vld [vmem:[%s8640_s8 + $0x150] sm:$0xff] }
 0x626   :  { %v5773_v25 = vpack.i.bf16 %v7501_v50, %v7506_v8  ;;  %v5783_v37 = vpack.i.bf16 %v7476_v29, %v7511_v46  ;;  %v7521_v10 = vsel %vm2541_vm5, %v2867_v38, %v8650_v32  ;;  %v2901_v17 = vrot.slane %v7367_v44, 2 }
 0x627   :  { %v7536_v62 = vsel %vm2541_vm5, %v2851_v39, %v8651_v0  ;;  %v2923_v26 = vrot.slane %v7367_v44, 6  ;;  %v2895_v5 = vrot.slane %v7367_v44, 1  ;;  %v8652_v1 = vrot.slane %v7271_v20, 6 }
 0x628   :  { %v8653_v6 = vrot.slane %v7271_v20, 3  ;;  %v8654_v41 = vrot.slane %v7271_v20, 7  ;;  %v2917_v21 = vrot.slane %v7367_v44, 5  ;;  %5754 = vrot.lane.b32.xlu0 %v5753_v4, %s5844_s23  ;;  %v8655_v23 = vrot.slane %v7266_v18, 3  ;;  %v2983_v4 = vld [vmem:[%s8640_s8 + $0x158] sm:$0xff] }
 0x629   :  { %v7553_v31 = vsel %vm2541_vm5, %v2873_v30, %v8652_v1  ;;  %v8656_v32 = vrot.slane %v7266_v18, 7  ;;  %v2970_v30 = vld [vmem:[%s8640_s8 + $0xf0] sm:$0xff]  ;;  %5759 = vrot.lane.b32.xlu1 %v5758_v58, %s5844_s23  ;;  %v8657_v0 = vrot.slane %v7266_v18, 2  ;;  %v3001_v58 = vld [vmem:[%s8640_s8 + $0x1e8] sm:$0xff]  ;;  %v5358_v38 = vpack.c.bf16 %v2999_v28, %v2998_v15  ;;  %v2984_v15 = vld [vmem:[%s8640_s8 + $0x160] sm:$0xff] }
 0x62a   :  { %v7558_v11 = vsel %vm2541_vm5, %v2857_v13, %v8653_v6  ;;  %v7563_v54 = vsel %vm2541_vm5, %v2879_v27, %v8654_v41  ;;  %v7583_v48 = vsel %vm2541_vm5, %v2901_v17, %v8655_v23  ;;  %v2971_v13 = vld [vmem:[%s8640_s8 + $0xf8] sm:$0xff]  ;;  %v2585_v6 = vrot.slane %v7284_v59, 7  ;;  %v3000_v41 = vld [vmem:[%s8640_s8 + $0x1e0] sm:$0xff]  ;;  %v2985_v28 = vld [vmem:[%s8640_s8 + $0x168] sm:$0xff] }
 0x62b   :  { %v7588_v39 = vsel %vm2541_vm5, %v2923_v26, %v8656_v32  ;;  %v7605_v17 = vsel %vm2541_vm5, %v2895_v5, %v8657_v0  ;;  %v8658_v26 = vrot.slane %v7266_v18, 6  ;;  %v5330_v5 = vpack.c.bf16 %v2969_v56, %v2968_v45  ;;  %v3020_v45 = vld [vmem:[%s8640_s8 + $0x280] sm:$0xff]  ;;  %v3021_v56 = vld [vmem:[%s8640_s8 + $0x288] sm:$0xff]  ;;  %5359 = vmatprep.subr.bf16.mxu1 %v5358_v38 }
 0x62c   :  { %v2540_v32 = vrot.slane %v7289_v63, 7  ;;  %v5332_v0 = vpack.c.bf16 %v2953_v61, %v2952_v57  ;;  %v7630_v27 = vsel %vm2541_vm5, %v2585_v6, %v7218_v40  ;;  %v5360_v49 = vpack.c.bf16 %v2983_v4, %v2982_v52  ;;  %5764 = vrot.lane.b32.xlu0 %v5763_v16, %s5847_s7  ;;  %v3002_v52 = vld [vmem:[%s8640_s8 + $0x1f0] sm:$0xff]  ;;  %v3003_v4 = vld [vmem:[%s8640_s8 + $0x1f8] sm:$0xff] }
 0x62d   :  { %v7610_v1 = vsel %vm2541_vm5, %v2917_v21, %v8658_v26  ;;  %v2954_v21 = vld [vmem:[%s8640_s8 + $0x70] sm:$0xff]  ;;  %v2955_v26 = vld [vmem:[%s8640_s8 + $0x78] sm:$0xff]  ;;  %v5334_v33 = vpack.c.bf16 %v2971_v13, %v2970_v30  ;;  %5331 = vmatprep.subr.bf16.mxu0 %v5330_v5  ;;  %v5362_v61 = vpack.c.bf16 %v3001_v58, %v3000_v41  ;;  %5769 = vrot.lane.b32.xlu1 %v5768_v36, %s5843_s22  ;;  %v2561_v2 = vrot.slane %v7220_v42, 4 }
 0x62e   :  { %v5803_v23 = vpack.i.bf16 %v7605_v17, %v7610_v1  ;;  %v7644_v57 = vsel %vm2541_vm5, %v2540_v32, %v7220_v42  ;;  %5333 = vmatpush3.bf16.msra.mxu0 %v5332_v0  ;;  %v5336_v19 = vpack.c.bf16 %v2955_v26, %v2954_v21  ;;  %v2562_v16 = vrot.slane %v7289_v63, 3  ;;  %5361 = vmatpush3.bf16.msra.mxu1 %v5360_v49  ;;  %v2987_v49 = vld [vmem:[%s8640_s8 + $0x178] sm:$0xff] }
 0x62f   :  { %5335 = vmatprep.subr.bf16.mxu0 %v5334_v33  ;;  %v5370_v30 = vpack.c.bf16 %v3021_v56, %v3020_v45  ;;  %v2686_v35 = vrot.slane %v7308_v7, 7  ;;  %v5364_v12 = vpack.c.bf16 %v2985_v28, %v2984_v15  ;;  %v2642_v42 = vrot.slane %v7315_v3, 7  ;;  %5363 = vmatprep.subr.bf16.mxu1 %v5362_v61  ;;  %v2986_v33 = vld [vmem:[%s8640_s8 + $0x170] sm:$0xff] }
 0x630   :  { %v7666_v36 = vsel %vm2541_vm5, %v2562_v16, %v2561_v2  ;;  %5779 = vrot.lane.b32.xlu0 %v5778_v14, %s5843_s22  ;;  %v5366_v63 = vpack.c.bf16 %v3003_v4, %v3002_v52  ;;  %v2605_v13 = vrot.slane %v7218_v40, 4  ;;  %v2606_v6 = vrot.slane %v7284_v59, 3  ;;  %v3053_v40 = vld [vmem:[%s8640_s8 + $0x388] sm:$0xff]  ;;  %v3022_v2 = vld [vmem:[%s8640_s8 + $0x290] sm:$0xff]  ;;  %v3023_v16 = vld [vmem:[%s8640_s8 + $0x298] sm:$0xff] }
 0x631   :  { %v7681_v38 = vsel %vm2541_vm5, %v2686_v35, %v7230_v47  ;;  %5774 = vrot.lane.b32.xlu1 %v5773_v25, %s5847_s7  ;;  %v7691_v9 = vsel %vm2541_vm5, %v2642_v42, %v7235_v51  ;;  %v5368_v14 = vpack.c.bf16 %v2987_v49, %v2986_v33  ;;  %v2662_v50 = vrot.slane %v7235_v51, 4  ;;  %v3006_v49 = vld [vmem:[%s8640_s8 + $0x210] sm:$0xff] }
 0x632   :  { %5337 = vmatpush3.bf16.msra.mxu0 %v5336_v19  ;;  %v7700_v59 = vsel %vm2541_vm5, %v2606_v6, %v2605_v13  ;;  %5365 = vmatpush3.bf16.msra.mxu1 %v5364_v12  ;;  %v2663_v8 = vrot.slane %v7315_v3, 3  ;;  %v5402_v25 = vpack.c.bf16 %v3053_v40, %v3052_v43  ;;  %v2786_v41 = vrot.slane %v7336_v60, 7  ;;  %v3007_v13 = vld [vmem:[%s8640_s8 + $0x218] sm:$0xff]  ;;  %v3036_v40 = vld [vmem:[%s8640_s8 + $0x300] sm:$0xff] }
 0x633   :  { %5371 = vmatprep.subr.bf16.mxu0 %v5370_v30  ;;  %5367 = vmatprep.subr.bf16.mxu1 %v5366_v63  ;;  %v2742_v58 = vrot.slane %v7342_v53, 7  ;;  %v8659_v5 = vpack.i.bf16 %v7493_v34, %v7521_v10  ;;  %v2706_v46 = vrot.slane %v7230_v47, 4  ;;  %v8660_v34 = vpack.i.bf16 %v7536_v62, %v7553_v31 }
 0x634   :  { %5784 = vrot.lane.b32.xlu0 %v5783_v37, %s5844_s23  ;;  %v7715_v51 = vsel %vm2541_vm5, %v2663_v8, %v2662_v50  ;;  %v7719_v3 = vsel %vm2541_vm5, %v2786_v41, %v7248_v22  ;;  %v2707_v37 = vrot.slane %v7308_v7, 3  ;;  %v2886_v32 = vrot.slane %v7367_v44, 7  ;;  %v3037_v50 = vld [vmem:[%s8640_s8 + $0x308] sm:$0xff]  ;;  %v3024_v8 = vld [vmem:[%s8640_s8 + $0x2a0] sm:$0xff] }
 0x635   :  { %5789 = vrot.lane.b32.xlu1 %v8659_v5, %s5844_s23  ;;  %v7723_v29 = vsel %vm2541_vm5, %v2742_v58, %v7253_v24  ;;  %v8661_v0 = vpack.i.bf16 %v7558_v11, %v7563_v54  ;;  %v2842_v47 = vrot.slane %v7374_v55, 7  ;;  %v8662_v31 = vpack.i.bf16 %v7583_v48, %v7588_v39 }
 0x636   :  { %5369 = vmatpush3.bf16.msra.mxu1 %v5368_v14  ;;  %v7732_v10 = vsel %vm2541_vm5, %v2707_v37, %v2706_v46  ;;  %v7742_v7 = vsel %vm2541_vm5, %v2886_v32, %v7266_v18  ;;  %v2762_v21 = vrot.slane %v7253_v24, 4  ;;  %v2763_v11 = vrot.slane %v7342_v53, 3  ;;  %v3054_v46 = vld [vmem:[%s8640_s8 + $0x390] sm:$0xff]  ;;  %v3055_v37 = vld [vmem:[%s8640_s8 + $0x398] sm:$0xff] }
 0x637   :  { %5403 = vmatprep.subr.bf16.mxu1 %v5402_v25  ;;  %v7746_v62 = vsel %vm2541_vm5, %v2842_v47, %v7271_v20  ;;  %v2806_v26 = vrot.slane %v7248_v22, 4  ;;  %v2807_v45 = vrot.slane %v7336_v60, 3  ;;  %v2862_v48 = vrot.slane %v7271_v20, 4  ;;  %v3004_v20 = vld [vmem:[%s8640_s8 + $0x200] sm:$0xff]  ;;  %v3025_v25 = vld [vmem:[%s8640_s8 + $0x2a8] sm:$0xff] }
 0x638   :  { %5794 = vrot.lane.b32.xlu0 %v8660_v34, %s5847_s7  ;;  %v7759_v54 = vsel %vm2541_vm5, %v2763_v11, %v2762_v21  ;;  %v2863_v24 = vrot.slane %v7374_v55, 3  ;;  %v2906_v53 = vrot.slane %v7266_v18, 4  ;;  %v2907_v39 = vrot.slane %v7367_v44, 3  ;;  %v3005_v18 = vld [vmem:[%s8640_s8 + $0x208] sm:$0xff] }
 0x639   :  { %5799 = vrot.lane.b32.xlu1 %v8661_v0, %s5843_s22  ;;  %v7764_v56 = vsel %vm2541_vm5, %v2807_v45, %v2806_v26  ;;  %v5372_v19 = vpack.c.bf16 %v3005_v18, %v3004_v20  ;;  %v5376_v5 = vpack.c.bf16 %v3007_v13, %v3006_v49  ;;  %v5404_v26 = vpack.c.bf16 %v3037_v50, %v3036_v40  ;;  %v3056_v18 = vld [vmem:[%s8640_s8 + $0x3a0] sm:$0xff]  ;;  %v3058_v13 = vld [vmem:[%s8640_s8 + $0x3b0] sm:$0xff] }
 0x63a   :  { %v7771_v17 = vsel %vm2541_vm5, %v2863_v24, %v2862_v48  ;;  %v7774_v1 = vsel %vm2541_vm5, %v2907_v39, %v2906_v53  ;;  %v5378_v45 = vpack.c.bf16 %v3025_v25, %v3024_v8  ;;  %v3008_v48 = vld [vmem:[%s8640_s8 + $0x220] sm:$0xff]  ;;  %v3013_v25 = vld [vmem:[%s8640_s8 + $0x248] sm:$0xff] }
 0x63b   :  { %v3012_v8 = vld [vmem:[%s8640_s8 + $0x240] sm:$0xff] }
 0x63c   :  { %5809 = vrot.lane.b32.xlu0 %v8662_v31, %s5843_s22 }
 0x63d   :  { %5804 = vrot.lane.b32.xlu1 %v5803_v23, %s5847_s7 }
 0x682   :  { %v5695_v22 = vpop.permute.xlu0 %5694 }
 0x683   :  { %v5700_v23 = vpop.permute.xlu1 %5699  ;;  %v5697_v12 = vunpack.i.h.bf16 %v5695_v22  ;;  %v5696_v42 = vunpack.i.l.bf16 %v5695_v22  ;;  %v5406_v22 = vpack.c.bf16 %v3055_v37, %v3054_v46  ;;  %v3043_v46 = vld [vmem:[%s8640_s8 + $0x338] sm:$0xff]  ;;  %v3030_v37 = vld [vmem:[%s8640_s8 + $0x2d0] sm:$0xff] }
 0x684   :  { %v5702_v60 = vunpack.i.h.bf16 %v5700_v23  ;;  %v5701_v61 = vunpack.i.l.bf16 %v5700_v23  ;;  %v3039_v23 = vld [vmem:[%s8640_s8 + $0x318] sm:$0xff] }
 0x685   :  { %v2634_v34 = vsel %vm1368_vm3, %v7630_v27, %v5697_v12  ;;  %v2637_v47 = vsel %vm1368_vm3, %v7700_v59, %v5696_v42  ;;  %v3009_v27 = vld [vmem:[%s8640_s8 + $0x228] sm:$0xff]  ;;  %v3038_v59 = vld [vmem:[%s8640_s8 + $0x310] sm:$0xff]  ;;  %v3028_v42 = vld [vmem:[%s8640_s8 + $0x2c0] sm:$0xff] }
 0x686   :  { %v5705_v55 = vpop.permute.xlu0 %5704  ;;  %v2627_v52 = vsel %vm1368_vm3, %v7644_v57, %v5702_v60  ;;  %v2631_v35 = vsel %vm1368_vm3, %v7666_v36, %v5701_v61  ;;  %v5374_v36 = vpack.c.bf16 %v3023_v16, %v3022_v2  ;;  %v3026_v60 = vld [vmem:[%s8640_s8 + $0x2b0] sm:$0xff]  ;;  %v3027_v61 = vld [vmem:[%s8640_s8 + $0x2b8] sm:$0xff]  ;;  %v3041_v12 = vld [vmem:[%s8640_s8 + $0x328] sm:$0xff] }
 0x687   :  { %v5707_v44 = vunpack.i.h.bf16 %v5705_v55  ;;  %v5706_v15 = vunpack.i.l.bf16 %v5705_v55  ;;  %v5710_v28 = vpop.permute.xlu1 %5709  ;;  %v3057_v55 = vld [vmem:[%s8640_s8 + $0x3a8] sm:$0xff]  ;;  %v3010_v2 = vld [vmem:[%s8640_s8 + $0x230] sm:$0xff]  ;;  %v3011_v16 = vld [vmem:[%s8640_s8 + $0x238] sm:$0xff] }
 0x688   :  { %v5712_v4 = vunpack.i.h.bf16 %v5710_v28  ;;  %v5711_v30 = vunpack.i.l.bf16 %v5710_v28  ;;  %v5408_v28 = vpack.c.bf16 %v3039_v23, %v3038_v59  ;;  %v3045_v59 = vld [vmem:[%s8640_s8 + $0x348] sm:$0xff] }
 0x689   :  { %v2628_v63 = vsel %vm1304_vm1, %v2627_v52, %v5707_v44  ;;  %v2632_v33 = vsel %vm1304_vm1, %v2631_v35, %v5706_v15  ;;  %v5380_v44 = vpack.c.bf16 %v3009_v27, %v3008_v48  ;;  %v3040_v52 = vld [vmem:[%s8640_s8 + $0x320] sm:$0xff]  ;;  %v5410_v35 = vpack.c.bf16 %v3057_v55, %v3056_v18 }
 0x68a   :  { %v5720_v57 = vpop.permute.xlu0 %5719  ;;  %v2633_v6 = vsel %vm2629_vm6, %v2632_v33, %v5711_v30  ;;  %v2630_v43 = vsel %vm2629_vm6, %v2628_v63, %v5712_v4  ;;  %v3029_v63 = vld [vmem:[%s8640_s8 + $0x2c8] sm:$0xff]  ;;  %v3044_v27 = vld [vmem:[%s8640_s8 + $0x340] sm:$0xff] }
 0x68b   :  { %v5715_v14 = vpop.permute.xlu1 %5714  ;;  %3267 = vmatprep.mubr.f32.mxu0 %v2633_v6  ;;  %v5722_v32 = vunpack.i.h.bf16 %v5720_v57  ;;  %v5721_v0 = vunpack.i.l.bf16 %v5720_v57  ;;  %v3059_v57 = vld [vmem:[%s8640_s8 + $0x3b8] sm:$0xff]  ;;  %v5386_v50 = vpack.c.bf16 %v3029_v63, %v3028_v42  ;;  %v7988_v42 = vld [vmem:[%s8640_s8 + $0x270] sm:$0xff] }
 0x68c   :  { %v5717_v41 = vunpack.i.h.bf16 %v5715_v14  ;;  %v5716_v58 = vunpack.i.l.bf16 %v5715_v14  ;;  %3268 = vmatmul.mubr.f32.vlgmr.msra.gmra.mrb[48].mxu0 %v2630_v43  ;;  %v5412_v14 = vpack.c.bf16 %v3041_v12, %v3040_v52  ;;  %v7973_v52 = vld [vmem:[%s8640_s8 + $0x358] sm:$0xff] }
 0x68d   :  { %5373 = vmatpush3.bf16.msra.mxu0 %v5372_v19  ;;  %v5382_v19 = vpack.c.bf16 %v3027_v61, %v3026_v60  ;;  %v3033_v60 = vld [vmem:[%s8640_s8 + $0x2e8] sm:$0xff]  ;;  %v7948_v61 = vld [vmem:[%s8640_s8 + $0x260] sm:$0xff]  ;;  %v7993_v63 = vld [vmem:[%s8640_s8 + $0x278] sm:$0xff] }
 0x68e   :  { %v2635_v31 = vsel %vm1304_vm1, %v2634_v34, %v5717_v41  ;;  %v7825_v21 = vpop.permute.xlu0 %5724  ;;  %5375 = vmatprep.subr.bf16.mxu0 %v5374_v36  ;;  %v2638_v11 = vsel %vm1304_vm1, %v2637_v47, %v5716_v58  ;;  %v5384_v36 = vpack.c.bf16 %v3011_v16, %v3010_v2  ;;  %v3042_v41 = vld [vmem:[%s8640_s8 + $0x330] sm:$0xff]  ;;  %v3031_v34 = vld [vmem:[%s8640_s8 + $0x2d8] sm:$0xff] }
 0x68f   :  { %v7837_v24 = vpop.permute.xlu1 %5729  ;;  %v2639_v53 = vsel %vm2629_vm6, %v2638_v11, %v5721_v0  ;;  %v2636_v39 = vsel %vm2629_vm6, %v2635_v31, %v5722_v32  ;;  %v5726_v6 = vunpack.i.l.bf16 %v7825_v21  ;;  %v3014_v0 = vld [vmem:[%s8640_s8 + $0x250] sm:$0xff]  ;;  %v3015_v47 = vld [vmem:[%s8640_s8 + $0x258] sm:$0xff]  ;;  %v3060_v31 = vld [vmem:[%s8640_s8 + $0x3c0] sm:$0xff]  ;;  %v5416_v23 = vpack.c.bf16 %v3043_v46, %v3042_v41 }
 0x690   :  { %v5731_v20 = vunpack.i.l.bf16 %v7837_v24  ;;  %3337 = vmatprep.mubr.f32.mxu1 %v2639_v53  ;;  %v3061_v11 = vld [vmem:[%s8640_s8 + $0x3c8] sm:$0xff]  ;;  %v3032_v53 = vld [vmem:[%s8640_s8 + $0x2e0] sm:$0xff]  ;;  %v7967_v2 = vld [vmem:[%s8640_s8 + $0x350] sm:$0xff]  ;;  %v5392_v12 = vpack.c.bf16 %v3015_v47, %v3014_v0 }
 0x691   :  { %5377 = vmatpush3.bf16.msra.mxu0 %v5376_v5  ;;  %3338 = vmatmul.mubr.f32.vlgmr.msra.gmra.mrb[48].mxu1 %v2636_v39  ;;  %v5414_v5 = vpack.c.bf16 %v3059_v57, %v3058_v13  ;;  %v2737_v48 = vsel %vm1368_vm3, %v7732_v10, %v5726_v6  ;;  %v5390_v10 = vpack.c.bf16 %v3031_v34, %v3030_v37  ;;  %v8005_v6 = vld [vmem:[%s8640_s8 + $0x3e8] sm:$0xff]  ;;  %v8047_v0 = vld [vmem:[%s8640_s8 + $0x3f8] sm:$0xff]  ;;  %v8052_v47 = vld [vmem:[%s8640_s8 + $0x400] sm:$0xff] }
 0x692   :  { %5405 = vmatpush3.bf16.msra.mxu1 %v5404_v26  ;;  %v7857_v15 = vpop.permute.xlu0 %5734  ;;  %5379 = vmatprep.subr.bf16.mxu0 %v5378_v45  ;;  %v2731_v49 = vsel %vm1368_vm3, %v7715_v51, %v5731_v20  ;;  %v5388_v45 = vpack.c.bf16 %v3013_v25, %v3012_v8  ;;  %v7953_v20 = vld [vmem:[%s8640_s8 + $0x268] sm:$0xff]  ;;  %v5420_v13 = vpack.c.bf16 %v3045_v59, %v3044_v27  ;;  %v8025_v25 = vld [vmem:[%s8640_s8 + $0x480] sm:$0xff] }
 0x693   :  { %v5736_v4 = vunpack.i.l.bf16 %v7857_v15  ;;  %v7869_v30 = vpop.permute.xlu1 %5739  ;;  %5407 = vmatprep.subr.bf16.mxu1 %v5406_v22  ;;  %v5394_v57 = vpack.c.bf16 %v3033_v60, %v3032_v53  ;;  %v8030_v41 = vld [vmem:[%s8640_s8 + $0x488] sm:$0xff]  ;;  %v5424_v34 = vpack.c.bf16 %v7973_v52, %v7967_v2  ;;  %v8103_v2 = vld [vmem:[%s8640_s8 + $0x498] sm:$0xff] }
 0x694   :  { %v5741_v33 = vunpack.i.l.bf16 %v7869_v30 }
 0x695   :  { %5381 = vmatpush3.bf16.msra.mxu0 %v5380_v44  ;;  %v2732_v43 = vsel %vm1304_vm1, %v2731_v49, %v5736_v4  ;;  %v5418_v44 = vpack.c.bf16 %v3061_v11, %v3060_v31  ;;  %v7978_v4 = vld [vmem:[%s8640_s8 + $0x2f0] sm:$0xff]  ;;  %v5732_v31 = vunpack.i.h.bf16 %v7837_v24  ;;  %v5737_v24 = vunpack.i.h.bf16 %v7857_v15 }
 0x696   :  { %5409 = vmatpush3.bf16.msra.mxu1 %v5408_v28  ;;  %v7891_v40 = vpop.permute.xlu0 %5749  ;;  %5383 = vmatprep.subr.bf16.mxu0 %v5382_v19  ;;  %v2733_v51 = vsel %vm2629_vm6, %v2732_v43, %v5741_v33  ;;  %v3062_v28 = vld [vmem:[%s8640_s8 + $0x3d0] sm:$0xff]  ;;  %v3063_v19 = vld [vmem:[%s8640_s8 + $0x3d8] sm:$0xff]  ;;  %v7998_v33 = vld [vmem:[%s8640_s8 + $0x3e0] sm:$0xff]  ;;  %v5434_v15 = vpack.c.bf16 %v8030_v41, %v8025_v25 }
 0x697   :  { %v7903_v58 = vpop.permute.xlu1 %5744  ;;  %3407 = vmatprep.mubr.f32.mxu0 %v2733_v51  ;;  %5411 = vmatprep.subr.bf16.mxu1 %v5410_v35  ;;  %v5751_v26 = vunpack.i.l.bf16 %v7891_v40  ;;  %v7983_v35 = vld [vmem:[%s8640_s8 + $0x2f8] sm:$0xff]  ;;  %v8010_v43 = vld [vmem:[%s8640_s8 + $0x360] sm:$0xff]  ;;  %v5422_v8 = vpack.c.bf16 %v3063_v19, %v3062_v28  ;;  %v5426_v53 = vpack.c.bf16 %v8005_v6, %v7998_v33  ;;  %v3117_v33 = vld [vmem:[%s8640_s8 + $0x588] sm:$0xff] }
 0x698   :  { %v5746_v32 = vunpack.i.l.bf16 %v7903_v58 }
 0x699   :  { %5385 = vmatpush3.bf16.msra.mxu0 %v5384_v36  ;;  %v8015_v36 = vld [vmem:[%s8640_s8 + $0x368] sm:$0xff] }
 0x69a   :  { %5413 = vmatpush3.bf16.msra.mxu1 %v5412_v14  ;;  %v7939_v39 = vpop.permute.xlu0 %5754  ;;  %5387 = vmatprep.subr.bf16.mxu0 %v5386_v50  ;;  %v2738_v22 = vsel %vm1304_vm1, %v2737_v48, %v5746_v32  ;;  %v5396_v50 = vpack.c.bf16 %v7953_v20, %v7948_v61  ;;  %v5398_v32 = vpack.c.bf16 %v7983_v35, %v7978_v4  ;;  %v8071_v48 = vld [vmem:[%s8640_s8 + $0x378] sm:$0xff]  ;;  %v8114_v35 = vld [vmem:[%s8640_s8 + $0x410] sm:$0xff] }
 0x69b   :  { %v7955_v18 = vpop.permute.xlu1 %5759  ;;  %5415 = vmatprep.subr.bf16.mxu1 %v5414_v5  ;;  %v2739_v55 = vsel %vm2629_vm6, %v2738_v22, %v5751_v26  ;;  %v8035_v5 = vld [vmem:[%s8640_s8 + $0x3f0] sm:$0xff]  ;;  %v5757_v11 = vunpack.i.h.bf16 %v7939_v39  ;;  %v5400_v26 = vpack.c.bf16 %v7993_v63, %v7988_v42  ;;  %v5428_v22 = vpack.c.bf16 %v8015_v36, %v8010_v43 }
 0x69c   :  { %v5762_v16 = vunpack.i.h.bf16 %v7955_v18  ;;  %3477 = vmatprep.mubr.f32.mxu1 %v2739_v55  ;;  %v5430_v61 = vpack.c.bf16 %v8047_v0, %v8035_v5  ;;  %v5727_v55 = vunpack.i.h.bf16 %v7825_v21  ;;  %v5742_v21 = vunpack.i.h.bf16 %v7869_v30  ;;  %v3089_v0 = vld [vmem:[%s8640_s8 + $0x4a8] sm:$0xff] }
 0x69d   :  { %5389 = vmatpush3.bf16.msra.mxu0 %v5388_v45  ;;  %v8066_v45 = vld [vmem:[%s8640_s8 + $0x370] sm:$0xff]  ;;  %v2834_v52 = vsel %vm1368_vm3, %v7719_v3, %v5757_v11  ;;  %v5747_v3 = vunpack.i.h.bf16 %v7903_v58  ;;  %v5756_v30 = vunpack.i.l.bf16 %v7939_v39  ;;  %v8142_v58 = vld [vmem:[%s8640_s8 + $0x508] sm:$0xff] }
 0x69e   :  { %5417 = vmatpush3.bf16.msra.mxu1 %v5416_v23  ;;  %v8000_v49 = vpop.permute.xlu0 %5764  ;;  %5391 = vmatprep.subr.bf16.mxu0 %v5390_v10  ;;  %v2828_v46 = vsel %vm1368_vm3, %v7723_v29, %v5762_v16  ;;  %v8057_v29 = vld [vmem:[%s8640_s8 + $0x408] sm:$0xff]  ;;  %v5761_v10 = vunpack.i.l.bf16 %v7955_v18  ;;  %v5432_v19 = vpack.c.bf16 %v8071_v48, %v8066_v45  ;;  %v8098_v18 = vld [vmem:[%s8640_s8 + $0x490] sm:$0xff]  ;;  %v2728_v16 = vsel %vm1368_vm3, %v7691_v9, %v5732_v31  ;;  %v8124_v9 = vld [vmem:[%s8640_s8 + $0x580] sm:$0xff] }
 0x69f   :  { %v5767_v51 = vunpack.i.h.bf16 %v8000_v49  ;;  %v8018_v14 = vpop.permute.xlu1 %5769  ;;  %5419 = vmatprep.subr.bf16.mxu1 %v5418_v44  ;;  %v5436_v20 = vpack.c.bf16 %v8057_v29, %v8052_v47  ;;  %v5766_v44 = vunpack.i.l.bf16 %v8000_v49  ;;  %v2729_v63 = vsel %vm1304_vm1, %v2728_v16, %v5737_v24  ;;  %v8137_v49 = vld [vmem:[%s8640_s8 + $0x500] sm:$0xff]  ;;  %v3091_v45 = vld [vmem:[%s8640_s8 + $0x4b8] sm:$0xff] }
 0x6a0   :  { %v5772_v37 = vunpack.i.h.bf16 %v8018_v14  ;;  %v2831_v43 = vsel %vm1368_vm3, %v7759_v54, %v5761_v10  ;;  %v5438_v25 = vpack.c.bf16 %v8103_v2, %v8098_v18  ;;  %v2734_v41 = vsel %vm1368_vm3, %v7681_v38, %v5727_v55  ;;  %v3088_v38 = vld [vmem:[%s8640_s8 + $0x4a0] sm:$0xff]  ;;  %v3102_v55 = vld [vmem:[%s8640_s8 + $0x510] sm:$0xff] }
 0x6a1   :  { %5393 = vmatpush3.bf16.msra.mxu0 %v5392_v12  ;;  %v2829_v27 = vsel %vm1304_vm1, %v2828_v46, %v5767_v51  ;;  %v8119_v12 = vld [vmem:[%s8640_s8 + $0x418] sm:$0xff]  ;;  %v5466_v5 = vpack.c.bf16 %v3117_v33, %v8124_v9  ;;  %v5468_v54 = vpack.c.bf16 %v8142_v58, %v8137_v49 }
 0x6a2   :  { %5421 = vmatpush3.bf16.msra.mxu1 %v5420_v13  ;;  %v8075_v59 = vpop.permute.xlu0 %5779  ;;  %5395 = vmatprep.subr.bf16.mxu0 %v5394_v57  ;;  %v8082_v23 = vsel %vm2629_vm6, %v2829_v27, %v5772_v37  ;;  %v5771_v13 = vunpack.i.l.bf16 %v8018_v14  ;;  %v5440_v14 = vpack.c.bf16 %v8119_v12, %v8114_v35  ;;  %v2730_v37 = vsel %vm2629_vm6, %v2729_v63, %v5742_v21 }
 0x6a3   :  { %v5775_v60 = vpop.permute.xlu1 %5774  ;;  %5423 = vmatprep.subr.bf16.mxu1 %v5422_v8  ;;  %v5782_v4 = vunpack.i.h.bf16 %v8075_v59  ;;  %v2832_v8 = vsel %vm1304_vm1, %v2831_v43, %v5766_v44  ;;  %v3103_v44 = vld [vmem:[%s8640_s8 + $0x518] sm:$0xff]  ;;  %v5752_v21 = vunpack.i.h.bf16 %v7891_v40 }
 0x6a4   :  { %v5777_v28 = vunpack.i.h.bf16 %v5775_v60  ;;  %v5776_v57 = vunpack.i.l.bf16 %v5775_v60  ;;  %v2833_v27 = vsel %vm2629_vm6, %v2832_v8, %v5771_v13  ;;  %v5472_v40 = vpack.c.bf16 %v3103_v44, %v3102_v55  ;;  %v3093_v8 = vld [vmem:[%s8640_s8 + $0x4c8] sm:$0xff]  ;;  %v3096_v44 = vld [vmem:[%s8640_s8 + $0x4e0] sm:$0xff] }
 0x6a5   :  { %5397 = vmatpush3.bf16.msra.mxu0 %v5396_v50  ;;  %v3109_v55 = vld [vmem:[%s8640_s8 + $0x548] sm:$0xff] }
 0x6a6   :  { %5425 = vmatpush3.bf16.msra.mxu1 %v5424_v34  ;;  %v8128_v42 = vpop.permute.xlu0 %5784  ;;  %5399 = vmatprep.subr.bf16.mxu0 %v5398_v32  ;;  %v2835_v39 = vsel %vm1304_vm1, %v2834_v52, %v5777_v28  ;;  %v2735_v34 = vsel %vm1304_vm1, %v2734_v41, %v5747_v3  ;;  %v2837_v32 = vsel %vm1368_vm3, %v7764_v56, %v5756_v30  ;;  %v3072_v56 = vld [vmem:[%s8640_s8 + $0x420] sm:$0xff]  ;;  %v5781_v52 = vunpack.i.l.bf16 %v8075_v59  ;;  %v3090_v59 = vld [vmem:[%s8640_s8 + $0x4b0] sm:$0xff] }
 0x6a7   :  { %v5790_v6 = vpop.permute.xlu1 %5789  ;;  %5427 = vmatprep.subr.bf16.mxu1 %v5426_v53  ;;  %v8149_v36 = vsel %vm2629_vm6, %v2835_v39, %v5782_v4  ;;  %v2838_v24 = vsel %vm1304_vm1, %v2837_v32, %v5776_v57  ;;  %v3073_v53 = vld [vmem:[%s8640_s8 + $0x428] sm:$0xff]  ;;  %v5786_v18 = vunpack.i.l.bf16 %v8128_v42  ;;  %v2736_v9 = vsel %vm2629_vm6, %v2735_v34, %v5752_v21  ;;  %v3120_v30 = vld [vmem:[%s8640_s8 + $0x5a0] sm:$0xff]  ;;  %v3074_v57 = vld [vmem:[%s8640_s8 + $0x430] sm:$0xff] }
 0x6a8   :  { %v5792_v51 = vunpack.i.h.bf16 %v5790_v6  ;;  %v5791_v50 = vunpack.i.l.bf16 %v5790_v6  ;;  %v5444_v35 = vpack.c.bf16 %v3073_v53, %v3072_v56  ;;  %v2839_v3 = vsel %vm2629_vm6, %v2838_v24, %v5781_v52  ;;  %v3104_v6 = vld [vmem:[%s8640_s8 + $0x520] sm:$0xff]  ;;  %v3077_v32 = vld [vmem:[%s8640_s8 + $0x448] sm:$0xff] }
 0x6a9   :  { %5401 = vmatpush3.bf16.msra.mxu0 %v5400_v26  ;;  %v2937_v58 = vsel %vm1368_vm3, %v7774_v1, %v5786_v18  ;;  %v5446_v13 = vpack.c.bf16 %v3091_v45, %v3090_v59  ;;  %v3076_v34 = vld [vmem:[%s8640_s8 + $0x440] sm:$0xff]  ;;  %v3125_v24 = vld [vmem:[%s8640_s8 + $0x5c8] sm:$0xff]  ;;  %v3127_v18 = vld [vmem:[%s8640_s8 + $0x5d8] sm:$0xff] }
 0x6aa   :  { %5429 = vmatpush3.bf16.msra.mxu1 %v5428_v22  ;;  %v5795_v46 = vpop.permute.xlu0 %5794  ;;  %5435 = vmatprep.subr.bf16.mxu0 %v5434_v15  ;;  %v3118_v22 = vld [vmem:[%s8640_s8 + $0x590] sm:$0xff]  ;;  %v2928_v10 = vsel %vm1368_vm3, %v7746_v62, %v5792_v51  ;;  %v2931_v28 = vsel %vm1368_vm3, %v7771_v17, %v5791_v50  ;;  %v5787_v62 = vunpack.i.h.bf16 %v8128_v42  ;;  %v3121_v42 = vld [vmem:[%s8640_s8 + $0x5a8] sm:$0xff]  ;;  %v3092_v50 = vld [vmem:[%s8640_s8 + $0x4c0] sm:$0xff]  ;;  %v5452_v56 = vpack.c.bf16 %v3077_v32, %v3076_v34 }
 0x6ab   :  { %v5797_v31 = vunpack.i.h.bf16 %v5795_v46  ;;  %v5796_v11 = vunpack.i.l.bf16 %v5795_v46  ;;  %v5800_v26 = vpop.permute.xlu1 %5799  ;;  %5431 = vmatprep.subr.bf16.mxu1 %v5430_v61  ;;  %v3119_v61 = vld [vmem:[%s8640_s8 + $0x598] sm:$0xff]  ;;  %v5474_v1 = vpack.c.bf16 %v3121_v42, %v3120_v30  ;;  %v3105_v51 = vld [vmem:[%s8640_s8 + $0x528] sm:$0xff]  ;;  %v3080_v52 = vld [vmem:[%s8640_s8 + $0x460] sm:$0xff] }
 0x6ac   :  { %3408 = vmatmul.mubr.f32.vlgmr.msra.gmra.mrb[50].mxu0 %v2730_v37  ;;  %v5802_v60 = vunpack.i.h.bf16 %v5800_v26  ;;  %v5801_v15 = vunpack.i.l.bf16 %v5800_v26  ;;  %v5470_v12 = vpack.c.bf16 %v3119_v61, %v3118_v22  ;;  %v2934_v63 = vsel %vm1368_vm3, %v7742_v7, %v5787_v62  ;;  %v3075_v7 = vld [vmem:[%s8640_s8 + $0x438] sm:$0xff]  ;;  %v3126_v62 = vld [vmem:[%s8640_s8 + $0x5d0] sm:$0xff]  ;;  %v3128_v59 = vld [vmem:[%s8640_s8 + $0x5e0] sm:$0xff] }
 0x6ad   :  { %5437 = vmatpush3.bf16.msra.mxu0 %v5436_v20  ;;  %3547 = vmatprep.mubr.f32.mxu0 %v2833_v27  ;;  %v2932_v2 = vsel %vm1304_vm1, %v2931_v28, %v5796_v11  ;;  %v2929_v16 = vsel %vm1304_vm1, %v2928_v10, %v5797_v31  ;;  %v5442_v20 = vpack.c.bf16 %v3089_v0, %v3088_v38  ;;  %v3106_v38 = vld [vmem:[%s8640_s8 + $0x530] sm:$0xff]  ;;  %v3107_v31 = vld [vmem:[%s8640_s8 + $0x538] sm:$0xff]  ;;  %v3124_v27 = vld [vmem:[%s8640_s8 + $0x5c0] sm:$0xff] }
 0x6ae   :  { %5433 = vmatpush3.bf16.msra.mxu1 %v5432_v19  ;;  %v5810_v17 = vpop.permute.xlu0 %5809  ;;  %5439 = vmatprep.subr.bf16.mxu0 %v5438_v25  ;;  %v8208_v4 = vsel %vm2629_vm6, %v2932_v2, %v5801_v15  ;;  %v8211_v47 = vsel %vm2629_vm6, %v2929_v16, %v5802_v60  ;;  %v5476_v46 = vpack.c.bf16 %v3105_v51, %v3104_v6  ;;  %v3094_v11 = vld [vmem:[%s8640_s8 + $0x4d0] sm:$0xff]  ;;  %v3095_v26 = vld [vmem:[%s8640_s8 + $0x4d8] sm:$0xff]  ;;  %v3108_v15 = vld [vmem:[%s8640_s8 + $0x540] sm:$0xff] }
 0x6af   :  { %v5805_v29 = vpop.permute.xlu1 %5804  ;;  %5467 = vmatprep.subr.bf16.mxu1 %v5466_v5  ;;  %v5812_v33 = vunpack.i.h.bf16 %v5810_v17  ;;  %v5811_v49 = vunpack.i.l.bf16 %v5810_v17  ;;  %v3123_v5 = vld [vmem:[%s8640_s8 + $0x5b8] sm:$0xff]  ;;  %v5450_v37 = vpack.c.bf16 %v3093_v8, %v3092_v50  ;;  %v5480_v53 = vpack.c.bf16 %v3107_v31, %v3106_v38  ;;  %v3078_v10 = vld [vmem:[%s8640_s8 + $0x450] sm:$0xff]  ;;  %v3097_v28 = vld [vmem:[%s8640_s8 + $0x4e8] sm:$0xff] }
 0x6b0   :  { %v5807_v48 = vunpack.i.h.bf16 %v5805_v29  ;;  %v5806_v19 = vunpack.i.l.bf16 %v5805_v29  ;;  %v5454_v22 = vpack.c.bf16 %v3095_v26, %v3094_v11  ;;  %v3079_v60 = vld [vmem:[%s8640_s8 + $0x458] sm:$0xff]  ;;  %v5482_v61 = vpack.c.bf16 %v3125_v24, %v3124_v27  ;;  %v3081_v17 = vld [vmem:[%s8640_s8 + $0x468] sm:$0xff]  ;;  %v3110_v29 = vld [vmem:[%s8640_s8 + $0x550] sm:$0xff] }
 0x6b1   :  { %3478 = vmatmul.mubr.f32.vlgmr.msra.gmra.mrb[50].mxu1 %v2736_v9  ;;  %5441 = vmatpush3.bf16.msra.mxu0 %v5440_v14  ;;  %v3122_v14 = vld [vmem:[%s8640_s8 + $0x5b0] sm:$0xff]  ;;  %v5456_v2 = vpack.c.bf16 %v3079_v60, %v3078_v10  ;;  %v5484_v16 = vpack.c.bf16 %v3109_v55, %v3108_v15  ;;  %v5458_v21 = vpack.c.bf16 %v3097_v28, %v3096_v44  ;;  %v3129_v45 = vld [vmem:[%s8640_s8 + $0x5e8] sm:$0xff]  ;;  %v3083_v30 = vld [vmem:[%s8640_s8 + $0x478] sm:$0xff] }
 0x6b2   :  { %v2935_v39 = vsel %vm1304_vm1, %v2934_v63, %v5807_v48  ;;  %5469 = vmatpush3.bf16.msra.mxu1 %v5468_v54  ;;  %3617 = vmatprep.mubr.f32.mxu1 %v2839_v3  ;;  %v2938_v43 = vsel %vm1304_vm1, %v2937_v58, %v5806_v19  ;;  %v5448_v54 = vpack.c.bf16 %v3075_v7, %v3074_v57  ;;  %v3082_v3 = vld [vmem:[%s8640_s8 + $0x470] sm:$0xff]  ;;  %v3112_v42 = vld [vmem:[%s8640_s8 + $0x560] sm:$0xff]  ;;  %v3149_v58 = vld [vmem:[%s8640_s8 + $0x688] sm:$0xff] }
 0x6b3   :  { %5443 = vmatprep.subr.bf16.mxu0 %v5442_v20  ;;  %5471 = vmatprep.subr.bf16.mxu1 %v5470_v12  ;;  %v8252_v25 = vsel %vm2629_vm6, %v2938_v43, %v5811_v49  ;;  %v8255_v41 = vsel %vm2629_vm6, %v2935_v39, %v5812_v33  ;;  %v5478_v0 = vpack.c.bf16 %v3123_v5, %v3122_v14  ;;  %v3098_v12 = vld [vmem:[%s8640_s8 + $0x4f0] sm:$0xff]  ;;  %v3113_v33 = vld [vmem:[%s8640_s8 + $0x568] sm:$0xff]  ;;  %v3148_v49 = vld [vmem:[%s8640_s8 + $0x680] sm:$0xff] }
 0x6b4   :  { %v5486_v20 = vpack.c.bf16 %v3127_v18, %v3126_v62  ;;  %v5460_v48 = vpack.c.bf16 %v3081_v17, %v3080_v52  ;;  %v5490_v63 = vpack.c.bf16 %v3129_v45, %v3128_v59  ;;  %v3130_v39 = vld [vmem:[%s8640_s8 + $0x5f0] sm:$0xff]  ;;  %v5464_v57 = vpack.c.bf16 %v3083_v30, %v3082_v3  ;;  %v3132_v43 = vld [vmem:[%s8640_s8 + $0x600] sm:$0xff]  ;;  %v3115_v8 = vld [vmem:[%s8640_s8 + $0x578] sm:$0xff] }
 0x6b5   :  { %5445 = vmatpush3.bf16.msra.mxu0 %v5444_v35  ;;  %v3111_v35 = vld [vmem:[%s8640_s8 + $0x558] sm:$0xff]  ;;  %v5492_v7 = vpack.c.bf16 %v3113_v33, %v3112_v42  ;;  %v5498_v6 = vpack.c.bf16 %v3149_v58, %v3148_v49  ;;  %v3114_v51 = vld [vmem:[%s8640_s8 + $0x570] sm:$0xff]  ;;  %v3164_v11 = vld [vmem:[%s8640_s8 + $0x700] sm:$0xff] }
 0x6b6   :  { %5473 = vmatpush3.bf16.msra.mxu1 %v5472_v40  ;;  %5447 = vmatprep.subr.bf16.mxu0 %v5446_v13  ;;  %v3099_v40 = vld [vmem:[%s8640_s8 + $0x4f8] sm:$0xff]  ;;  %v5488_v19 = vpack.c.bf16 %v3111_v35, %v3110_v29  ;;  %v3150_v14 = vld [vmem:[%s8640_s8 + $0x690] sm:$0xff]  ;;  %v5496_v34 = vpack.c.bf16 %v3115_v8, %v3114_v51  ;;  %v3165_v26 = vld [vmem:[%s8640_s8 + $0x708] sm:$0xff] }
 0x6b7   :  { %5475 = vmatprep.subr.bf16.mxu1 %v5474_v1  ;;  %v5462_v9 = vpack.c.bf16 %v3099_v40, %v3098_v12  ;;  %v3131_v13 = vld [vmem:[%s8640_s8 + $0x5f8] sm:$0xff]  ;;  %v3133_v1 = vld [vmem:[%s8640_s8 + $0x608] sm:$0xff]  ;;  %v3134_v38 = vld [vmem:[%s8640_s8 + $0x610] sm:$0xff]  ;;  %v5532_v10 = vpack.c.bf16 %v3165_v26, %v3164_v11 }
 0x6b8   :  { %v5494_v50 = vpack.c.bf16 %v3131_v13, %v3130_v39  ;;  %v3151_v5 = vld [vmem:[%s8640_s8 + $0x698] sm:$0xff]  ;;  %v3152_v27 = vld [vmem:[%s8640_s8 + $0x6a0] sm:$0xff]  ;;  %v3153_v24 = vld [vmem:[%s8640_s8 + $0x6a8] sm:$0xff] }
 0x6b9   :  { %5449 = vmatpush3.bf16.msra.mxu0 %v5448_v54  ;;  %v3180_v54 = vld [vmem:[%s8640_s8 + $0x780] sm:$0xff]  ;;  %v5502_v32 = vpack.c.bf16 %v3151_v5, %v3150_v14  ;;  %v3137_v60 = vld [vmem:[%s8640_s8 + $0x628] sm:$0xff]  ;;  %v3166_v15 = vld [vmem:[%s8640_s8 + $0x710] sm:$0xff] }
 0x6ba   :  { %5477 = vmatpush3.bf16.msra.mxu1 %v5476_v46  ;;  %5451 = vmatprep.subr.bf16.mxu0 %v5450_v37  ;;  %v3181_v46 = vld [vmem:[%s8640_s8 + $0x788] sm:$0xff]  ;;  %v5500_v37 = vpack.c.bf16 %v3133_v1, %v3132_v43  ;;  %v3154_v44 = vld [vmem:[%s8640_s8 + $0x6b0] sm:$0xff]  ;;  %v3155_v28 = vld [vmem:[%s8640_s8 + $0x6b8] sm:$0xff] }
 0x6bb   :  { %5479 = vmatprep.subr.bf16.mxu1 %v5478_v0  ;;  %v3135_v0 = vld [vmem:[%s8640_s8 + $0x618] sm:$0xff]  ;;  %v5530_v31 = vpack.c.bf16 %v3181_v46, %v3180_v54  ;;  %v3184_v62 = vld [vmem:[%s8640_s8 + $0x7a0] sm:$0xff]  ;;  %v3185_v18 = vld [vmem:[%s8640_s8 + $0x7a8] sm:$0xff] }
 0x6bc   :  { %v3138_v52 = vld [vmem:[%s8640_s8 + $0x630] sm:$0xff]  ;;  %v3139_v17 = vld [vmem:[%s8640_s8 + $0x638] sm:$0xff]  ;;  %v3168_v29 = vld [vmem:[%s8640_s8 + $0x720] sm:$0xff] }
 0x6bd   :  { %5453 = vmatpush3.bf16.msra.mxu0 %v5452_v56  ;;  %v3182_v56 = vld [vmem:[%s8640_s8 + $0x790] sm:$0xff]  ;;  %v3157_v35 = vld [vmem:[%s8640_s8 + $0x6c8] sm:$0xff]  ;;  %v3187_v40 = vld [vmem:[%s8640_s8 + $0x7b8] sm:$0xff]  ;;  %v5512_v59 = vpack.c.bf16 %v3139_v17, %v3138_v52 }
 0x6be   :  { %5481 = vmatpush3.bf16.msra.mxu1 %v5480_v53  ;;  %5455 = vmatprep.subr.bf16.mxu0 %v5454_v22  ;;  %v3183_v53 = vld [vmem:[%s8640_s8 + $0x798] sm:$0xff]  ;;  %v5504_v22 = vpack.c.bf16 %v3135_v0, %v3134_v38  ;;  %v3186_v12 = vld [vmem:[%s8640_s8 + $0x7b0] sm:$0xff]  ;;  %v3188_v49 = vld [vmem:[%s8640_s8 + $0x7c0] sm:$0xff] }
 0x6bf   :  { %5483 = vmatprep.subr.bf16.mxu1 %v5482_v61  ;;  %v5506_v61 = vpack.c.bf16 %v3153_v24, %v3152_v27  ;;  %v5534_v55 = vpack.c.bf16 %v3183_v53, %v3182_v56  ;;  %v3170_v3 = vld [vmem:[%s8640_s8 + $0x730] sm:$0xff]  ;;  %v5542_v30 = vpack.c.bf16 %v3187_v40, %v3186_v12  ;;  %v3171_v42 = vld [vmem:[%s8640_s8 + $0x738] sm:$0xff]  ;;  %v3189_v58 = vld [vmem:[%s8640_s8 + $0x7c8] sm:$0xff] }
 0x6c0   :  { %v3159_v33 = vld [vmem:[%s8640_s8 + $0x6d8] sm:$0xff]  ;;  %v5544_v13 = vpack.c.bf16 %v3171_v42, %v3170_v3  ;;  %v3172_v43 = vld [vmem:[%s8640_s8 + $0x740] sm:$0xff]  ;;  %v5546_v1 = vpack.c.bf16 %v3189_v58, %v3188_v49  ;;  %v3173_v51 = vld [vmem:[%s8640_s8 + $0x748] sm:$0xff] }
 0x6c1   :  { %5457 = vmatpush3.bf16.msra.mxu0 %v5456_v2  ;;  %v3161_v8 = vld [vmem:[%s8640_s8 + $0x6e8] sm:$0xff]  ;;  %v3190_v14 = vld [vmem:[%s8640_s8 + $0x7d0] sm:$0xff]  ;;  %v3191_v5 = vld [vmem:[%s8640_s8 + $0x7d8] sm:$0xff]  ;;  %v5548_v46 = vpack.c.bf16 %v3173_v51, %v3172_v43 }
 0x6c2   :  { %5485 = vmatpush3.bf16.msra.mxu1 %v5484_v16  ;;  %5459 = vmatprep.subr.bf16.mxu0 %v5458_v21  ;;  %v5510_v21 = vpack.c.bf16 %v3155_v28, %v3154_v44  ;;  %v3174_v38 = vld [vmem:[%s8640_s8 + $0x750] sm:$0xff]  ;;  %v5550_v0 = vpack.c.bf16 %v3191_v5, %v3190_v14  ;;  %v3163_v26 = vld [vmem:[%s8640_s8 + $0x6f8] sm:$0xff]  ;;  %v3192_v27 = vld [vmem:[%s8640_s8 + $0x7e0] sm:$0xff] }
 0x6c3   :  { %5487 = vmatprep.subr.bf16.mxu1 %v5486_v20  ;;  %v3156_v20 = vld [vmem:[%s8640_s8 + $0x6c0] sm:$0xff]  ;;  %v3162_v11 = vld [vmem:[%s8640_s8 + $0x6f0] sm:$0xff]  ;;  %v3193_v24 = vld [vmem:[%s8640_s8 + $0x7e8] sm:$0xff] }
 0x6c4   :  { %v3764_v52 = vld [vmem:[%s8642_s10] sm:$0xff]  ;;  %v3765_v17 = vld [vmem:[%s8642_s10 + $0x8] sm:$0xff]  ;;  %v3770_v12 = vld [vmem:[%s8642_s10 + $0x30] sm:$0xff] }
 0x6c5   :  { %5461 = vmatpush3.bf16.msra.mxu0 %v5460_v48  ;;  %v5514_v48 = vpack.c.bf16 %v3157_v35, %v3156_v20  ;;  %v3769_v20 = vld [vmem:[%s8642_s10 + $0x28] sm:$0xff]  ;;  %v3771_v40 = vld [vmem:[%s8642_s10 + $0x38] sm:$0xff]  ;;  %v3776_v42 = vld [vmem:[%s8642_s10 + $0x60] sm:$0xff] }
 0x6c6   :  { %5489 = vmatpush3.bf16.msra.mxu1 %v5488_v19  ;;  %5463 = vmatprep.subr.bf16.mxu0 %v5462_v9  ;;  %v3140_v19 = vld [vmem:[%s8640_s8 + $0x640] sm:$0xff]  ;;  %v3141_v9 = vld [vmem:[%s8640_s8 + $0x648] sm:$0xff]  ;;  %v3775_v3 = vld [vmem:[%s8642_s10 + $0x58] sm:$0xff] }
 0x6c7   :  { %5491 = vmatprep.subr.bf16.mxu1 %v5490_v63  ;;  %v3158_v63 = vld [vmem:[%s8640_s8 + $0x6d0] sm:$0xff]  ;;  %v5516_v39 = vpack.c.bf16 %v3141_v9, %v3140_v19  ;;  %v3779_v58 = vld [vmem:[%s8642_s10 + $0x78] sm:$0xff]  ;;  %v4027_v43 = vld [vmem:[%s8641_s9] ss:$0 sm:$0xff] }
 0x6c8   :  { %v3774_v9 = vld [vmem:[%s8642_s10 + $0x50] sm:$0xff] }
 0x6c9   :  { %5465 = vmatpush3.bf16.msra.mxu0 %v5464_v57  ;;  %v5518_v57 = vpack.c.bf16 %v3159_v33, %v3158_v63  ;;  %v3777_v63 = vld [vmem:[%s8642_s10 + $0x68] sm:$0xff]  ;;  %v3778_v33 = vld [vmem:[%s8642_s10 + $0x70] sm:$0xff] }
 0x6ca   :  { %5493 = vmatpush3.bf16.msra.mxu1 %v5492_v7  ;;  %5499 = vmatprep.subr.bf16.mxu0 %v5498_v6  ;;  %v3142_v7 = vld [vmem:[%s8640_s8 + $0x650] sm:$0xff]  ;;  %v3143_v6 = vld [vmem:[%s8640_s8 + $0x658] sm:$0xff]  ;;  %v5581_v49 = vpack.c.bf16 %v3777_v63, %v3776_v42 }
 0x6cb   :  { %5495 = vmatprep.subr.bf16.mxu1 %v5494_v50  ;;  %v3160_v50 = vld [vmem:[%s8640_s8 + $0x6e0] sm:$0xff]  ;;  %v5520_v54 = vpack.c.bf16 %v3143_v6, %v3142_v7 }
 0x6cc   :  { %3548 = vmatmul.mubr.f32.vlgmr.msra.gmra.mrb[52].mxu0 %v8082_v23  ;;  %v3136_v23 = vld [vmem:[%s8640_s8 + $0x620] sm:$0xff] }
 0x6cd   :  { %5501 = vmatpush3.bf16.msra.mxu0 %v5500_v37  ;;  %3687 = vmatprep.mubr.f32.mxu0 %v8208_v4  ;;  %v3167_v4 = vld [vmem:[%s8640_s8 + $0x718] sm:$0xff]  ;;  %v5508_v2 = vpack.c.bf16 %v3137_v60, %v3136_v23  ;;  %v5522_v37 = vpack.c.bf16 %v3161_v8, %v3160_v50  ;;  %v5554_v60 = vpack.c.bf16 %v3193_v24, %v3192_v27 }
 0x6ce   :  { %5497 = vmatpush3.bf16.msra.mxu1 %v5496_v34  ;;  %5503 = vmatprep.subr.bf16.mxu0 %v5502_v32  ;;  %v5536_v16 = vpack.c.bf16 %v3167_v4, %v3166_v15  ;;  %v3144_v34 = vld [vmem:[%s8640_s8 + $0x660] sm:$0xff]  ;;  %v3145_v32 = vld [vmem:[%s8640_s8 + $0x668] sm:$0xff]  ;;  %v3147_v23 = vld [vmem:[%s8640_s8 + $0x678] sm:$0xff] }
 0x6cf   :  { %5531 = vmatprep.subr.bf16.mxu1 %v5530_v31  ;;  %v3175_v31 = vld [vmem:[%s8640_s8 + $0x758] sm:$0xff]  ;;  %v5524_v56 = vpack.c.bf16 %v3145_v32, %v3144_v34  ;;  %v3176_v15 = vld [vmem:[%s8640_s8 + $0x760] sm:$0xff] }
 0x6d0   :  { %v5552_v53 = vpack.c.bf16 %v3175_v31, %v3174_v38  ;;  %v3195_v4 = vld [vmem:[%s8640_s8 + $0x7f8] sm:$0xff] }
 0x6d1   :  { %3618 = vmatmul.mubr.f32.vlgmr.msra.gmra.mrb[52].mxu1 %v8149_v36  ;;  %5505 = vmatpush3.bf16.msra.mxu0 %v5504_v22  ;;  %v5538_v36 = vpack.c.bf16 %v3185_v18, %v3184_v62  ;;  %v5526_v22 = vpack.c.bf16 %v3163_v26, %v3162_v11  ;;  %v3178_v18 = vld [vmem:[%s8640_s8 + $0x770] sm:$0xff] }
 0x6d2   :  { %5533 = vmatpush3.bf16.msra.mxu1 %v5532_v10  ;;  %3757 = vmatprep.mubr.f32.mxu1 %v8252_v25  ;;  %v3169_v25 = vld [vmem:[%s8640_s8 + $0x728] sm:$0xff]  ;;  %v3146_v10 = vld [vmem:[%s8640_s8 + $0x670] sm:$0xff] }
 0x6d3   :  { %5507 = vmatprep.subr.bf16.mxu0 %v5506_v61  ;;  %5535 = vmatprep.subr.bf16.mxu1 %v5534_v55  ;;  %v5540_v45 = vpack.c.bf16 %v3169_v25, %v3168_v29  ;;  %v3177_v61 = vld [vmem:[%s8640_s8 + $0x768] sm:$0xff]  ;;  %v3194_v55 = vld [vmem:[%s8640_s8 + $0x7f0] sm:$0xff]  ;;  %v5528_v44 = vpack.c.bf16 %v3147_v23, %v3146_v10 }
 0x6d4   :  { %v5556_v28 = vpack.c.bf16 %v3177_v61, %v3176_v15  ;;  %v5558_v62 = vpack.c.bf16 %v3195_v4, %v3194_v55  ;;  %v3766_v29 = vld [vmem:[%s8642_s10 + $0x10] sm:$0xff] }
 0x6d5   :  { %5509 = vmatpush3.bf16.msra.mxu0 %v5508_v2  ;;  %v3179_v2 = vld [vmem:[%s8640_s8 + $0x778] sm:$0xff] }
 0x6d6   :  { %5537 = vmatpush3.bf16.msra.mxu1 %v5536_v16  ;;  %5511 = vmatprep.subr.bf16.mxu0 %v5510_v21  ;;  %v5560_v16 = vpack.c.bf16 %v3179_v2, %v3178_v18  ;;  %v8663_v21 = vmov 0.0|0.0  }
 0x6d7   :  { %5539 = vmatprep.subr.bf16.mxu1 %v5538_v36  ;;  %v5563_v36 = vpack.c.bf16 %v3765_v17, %v3764_v52 }
 0x6d9   :  { %5513 = vmatpush3.bf16.msra.mxu0 %v5512_v59  ;;  %v5572_v59 = vpack.c.bf16 %v3771_v40, %v3770_v12 }
 0x6da   :  { %5541 = vmatpush3.bf16.msra.mxu1 %v5540_v45  ;;  %5515 = vmatprep.subr.bf16.mxu0 %v5514_v48  ;;  %v3772_v45 = vld [vmem:[%s8642_s10 + $0x40] sm:$0xff]  ;;  %v3773_v48 = vld [vmem:[%s8642_s10 + $0x48] sm:$0xff] }
 0x6db   :  { %5543 = vmatprep.subr.bf16.mxu1 %v5542_v30  ;;  %v5575_v19 = vpack.c.bf16 %v3773_v48, %v3772_v45  ;;  %v5578_v30 = vpack.c.bf16 %v3775_v3, %v3774_v9 }
 0x6dd   :  { %5517 = vmatpush3.bf16.msra.mxu0 %v5516_v39  ;;  %v8664_v39 = vmov 0.0  }
 0x6de   :  { %5545 = vmatpush3.bf16.msra.mxu1 %v5544_v13  ;;  %5519 = vmatprep.subr.bf16.mxu0 %v5518_v57  ;;  %v5584_v13 = vpack.c.bf16 %v3779_v58, %v3778_v33 }
 0x6df   :  { %5547 = vmatprep.subr.bf16.mxu1 %v5546_v1 }
 0x6e1   :  { %5521 = vmatpush3.bf16.msra.mxu0 %v5520_v54 }
 0x6e2   :  { %5549 = vmatpush3.bf16.msra.mxu1 %v5548_v46  ;;  %5523 = vmatprep.subr.bf16.mxu0 %v5522_v37 }
 0x6e3   :  { %5551 = vmatprep.subr.bf16.mxu1 %v5550_v0 }
 0x6e5   :  { %5525 = vmatpush3.bf16.msra.mxu0 %v5524_v56 }
 0x6e6   :  { %5553 = vmatpush3.bf16.msra.mxu1 %v5552_v53  ;;  %5527 = vmatprep.subr.bf16.mxu0 %v5526_v22 }
 0x6e7   :  { %5555 = vmatprep.subr.bf16.mxu1 %v5554_v60 }
 0x6e9   :  { %5529 = vmatpush3.bf16.msra.mxu0 %v5528_v44 }
 0x6ea   :  { %5557 = vmatpush3.bf16.msra.mxu1 %v5556_v28  ;;  %5562 = vmatprep.subr.bf16.mxu0 %v8663_v21 }
 0x6eb   :  { %5559 = vmatprep.subr.bf16.mxu1 %v5558_v62  ;;  %v4028_v62 = vld [vmem:[%s8643_s11] ss:$0 sm:$0xff] }
 0x6ec   :  { %3688 = vmatmul.mubr.f32.vlgmr.msra.gmra.mrb[54].mxu0 %v8211_v47  ;;  %v3767_v47 = vld [vmem:[%s8642_s10 + $0x18] sm:$0xff] }
 0x6ed   :  { %5564 = vmatpush3.bf16.msra.mxu0 %v5563_v36  ;;  %v5566_v25 = vpack.c.bf16 %v3767_v47, %v3766_v29  ;;  %5046 = vmatprep.mubr.msk.f32.mxu0 %vm5848_vm7, %v8664_v39 }
 0x6ee   :  { %5561 = vmatpush3.bf16.msra.mxu1 %v5560_v16  ;;  %5565 = vmatprep.subr.bf16.mxu0 %v8663_v21 }
 0x6f1   :  { %3758 = vmatmul.mubr.f32.vlgmr.msra.gmra.mrb[54].mxu1 %v8255_v41  ;;  %v3768_v41 = vld [vmem:[%s8642_s10 + $0x20] sm:$0xff]  ;;  %5567 = vmatpush3.bf16.msra.mxu0 %v5566_v25 }
 0x6f2   :  { %v5569_v35 = vpack.c.bf16 %v3769_v20, %v3768_v41  ;;  %5568 = vmatprep.subr.bf16.mxu0 %v8663_v21 }
 0x6f5   :  { %5570 = vmatpush3.bf16.msra.mxu0 %v5569_v35 }
 0x6f6   :  { %5571 = vmatprep.subr.bf16.mxu0 %v8663_v21 }
 0x6f9   :  { %5573 = vmatpush3.bf16.msra.mxu0 %v5572_v59 }
 0x6fa   :  { %5574 = vmatprep.subr.bf16.mxu0 %v8663_v21 }
 0x6fd   :  { %5576 = vmatpush3.bf16.msra.mxu0 %v5575_v19 }
 0x6fe   :  { %5577 = vmatprep.subr.bf16.mxu0 %v8663_v21 }
 0x701   :  { %5579 = vmatpush3.bf16.msra.mxu0 %v5578_v30 }
 0x702   :  { %5580 = vmatprep.subr.bf16.mxu0 %v8663_v21 }
 0x705   :  { %5582 = vmatpush3.bf16.msra.mxu0 %v5581_v49 }
 0x706   :  { %5583 = vmatprep.subr.bf16.mxu0 %v8663_v21 }
 0x709   :  { %5585 = vmatpush3.bf16.msra.mxu0 %v5584_v13 }
 0x75f   :  { %v4365_v57 = vpop.f32.mrb[48].mxu0 }
 0x760   :  { %v4366_v7 = vpop.f32.mrb[49].mxu0 }
 0x761   :  { %v4367_v6 = vadd.f32 %v4366_v7, %v4365_v57 }
 0x763   :  { %v3270_v50 = vadd.f32 %v4367_v6, %v4027_v43 }
 0x764   :  { %v4400_v1 = vpop.f32.mrb[48].mxu1 }
 0x765   :  { %v4401_v51 = vpop.f32.mrb[49].mxu1 }
 0x766   :  { %v4402_v8 = vadd.f32 %v4401_v51, %v4400_v1 }
 0x768   :  { %v3340_v14 = vadd.f32 %v4402_v8, %v3270_v50 }
 0x77f   :  { %v4435_v5 = vpop.f32.mrb[50].mxu0 }
 0x780   :  { %v4436_v54 = vpop.f32.mrb[51].mxu0 }
 0x781   :  { %v4437_v46 = vadd.f32 %v4436_v54, %v4435_v5 }
 0x783   :  { %v3410_v37 = vadd.f32 %v4437_v46, %v3340_v14 }
 0x784   :  { %v4470_v34 = vpop.f32.mrb[50].mxu1 }
 0x785   :  { %v4471_v32 = vpop.f32.mrb[51].mxu1 }
 0x786   :  { %v4472_v38 = vadd.f32 %v4471_v32, %v4470_v34 }
 0x788   :  { %v3480_v0 = vadd.f32 %v4472_v38, %v3410_v37 }
 0x79f   :  { %v4505_v31 = vpop.f32.mrb[52].mxu0 }
 0x7a0   :  { %v4506_v11 = vpop.f32.mrb[53].mxu0 }
 0x7a1   :  { %v4507_v26 = vadd.f32 %v4506_v11, %v4505_v31 }
 0x7a3   :  { %v3550_v27 = vadd.f32 %v4507_v26, %v3480_v0 }
 0x7a4   :  { %v4540_v24 = vpop.f32.mrb[52].mxu1 }
 0x7a5   :  { %v4541_v56 = vpop.f32.mrb[53].mxu1 }
 0x7a6   :  { %v4542_v53 = vadd.f32 %v4541_v56, %v4540_v24 }
 0x7a8   :  { %v3620_v22 = vadd.f32 %v4542_v53, %v3550_v27 }
 0x7bf   :  { %v4575_v10 = vpop.f32.mrb[54].mxu0 }
 0x7c0   :  { %v4576_v23 = vpop.f32.mrb[55].mxu0 }
 0x7c1   :  { %v4577_v60 = vadd.f32 %v4576_v23, %v4575_v10 }
 0x7c3   :  { %v3690_v15 = vadd.f32 %v4577_v60, %v3620_v22 }
 0x7c4   :  { %v4610_v61 = vpop.f32.mrb[54].mxu1 }
 0x7c5   :  { %v4611_v55 = vpop.f32.mrb[55].mxu1 }
 0x7c6   :  { %v4612_v4 = vadd.f32 %v4611_v55, %v4610_v61 }
 0x7c8   :  { %v3760_v44 = vadd.f32 %v4612_v4, %v3690_v15 }
 0x7ca   :  { %v3763_v28 = vmax.f32 %v3760_v44, 0.0 }
 0x7cc   :  { %5047 = vmatmul.mubr.f32.vlgmr.msra.gmra.mrb[56].mxu0 %v3763_v28 }
 0x89f   :  { %v3853_v18 = vpop.f32.mrb[56].mxu0 }
 0x8a0   :  { %v3854_v2 = vadd.f32 %v4028_v62, %v3853_v18  ;;  %v5048_v16 = vpop.f32.mrb[57].mxu0 }
 0x8a2   :  { %3858 = vst.msk [vmem:[#allocation4] sm:$0x3] %vm3857_vm8, %v3854_v2 }
 0x8a3   :  { %5826 = shalt.err (!%p5823_p4)
}
 0x8a4   :  { %s5827_s5 = scalar_lea.hbm %s8644_s12, 32 }
 0x8a5   :  { %p5828_p5 = scmp.ne.s32.totalorder %s8644_s12, %s5827_s5  ;;  %p5831_p6 = scmp.lt.u32.totalorder %s5827_s5, %s8644_s12 }
 0x8a7   :  { %p5833_p7 = pnand %p5831_p6, %p5828_p5 }
 0x8a9   :  { %5836 = shalt.err (!%p5833_p7)
}
 0x8aa   :  { %3868 = dma.vmem_to_hbm [thread:$0]  %s3866_s21, 32, %s8644_s12, [#allocation5]  }
 0x8ab   :  { %5837 = dma.done.wait [#allocation5], 32  }
 0x8ac   :  { %5838 = vsyncadd [#allocation5], 4294967264 }
 0x8ad   :  { %3872 = vsyncpa [#allocation5], 1 }

</bundles_post_ra>
